<compile_context>
chip_gen: v6e
topology: v6e:2x2x1
jax: 0.10.0
libtpu: 0.0.40
codegen_flags: <defaults>
</compile_context>

<pallas_src>
import functools

import jax
import jax.numpy as jnp
import numpy as np
from jax import lax
from jax.experimental import pallas as pl
from jax.experimental.pallas import tpu as pltpu


def _avgpool_hw(t, stride):
    """(H, W, C) -> (H//s, W//s, C) average pool using only slices/reshapes/adds (VPU only).

    Keeps the lane (channel) dim untouched by every reshape so Mosaic never needs a
    lane-changing relayout.
    """
    if stride == 1:
        return t
    H, W, C = t.shape
    Ho, Wo = H // stride, W // stride
    # pool along H: split of the leading (outer) dim -> pure outer-dim selection
    th = t.reshape(Ho, stride, W, C)
    acc = th[:, 0]
    for d in range(1, stride):
        acc = acc + th[:, d]                                   # (Ho, W, C)
    # pool along W: split of the sublane dim (lane dim unchanged)
    tw = acc.reshape(Ho, Wo, stride, C)
    acc = tw[:, :, 0:1, :].reshape(Ho, Wo, C)
    for d in range(1, stride):
        acc = acc + tw[:, :, d:d + 1, :].reshape(Ho, Wo, C)
    return acc * (1.0 / (stride * stride))


def bottleneck_kernel(stride, has_downsample, x_ref, *refs):
    if has_downsample:
        (w1_ref, w2_ref, w3_ref, wd_ref,
         s1_ref, b1_ref, s2_ref, b2_ref, s3_ref, b3_ref,
         sd_ref, bd_ref, o_ref) = refs
    else:
        (w1_ref, w2_ref, w3_ref,
         s1_ref, b1_ref, s2_ref, b2_ref, s3_ref, b3_ref, o_ref) = refs

    _, H, W, Cin = x_ref.shape
    P = w1_ref.shape[1]
    C4 = w3_ref.shape[1]
    Ho, Wo = H // stride, W // stride

    x32 = x_ref[0].astype(jnp.float32)                  # (H, W, Cin)
    x_flat = x32.reshape(H * W, Cin)

    # --- conv1 (1x1) + bn1 + relu : bf16 MXU matmul, f32 accumulate, f32 BN/ReLU ---
    y = jnp.dot(x_flat.astype(jnp.bfloat16), w1_ref[...],
                preferred_element_type=jnp.float32)     # (H*W, P)
    y = jnp.maximum(y * s1_ref[0] + b1_ref[0], 0.0)

    # --- conv2 (3x3, padding=1) + bn2 + relu ---
    # Pad once (f32), cast the padded tile to bf16, then 9 shifted bf16 matmuls into an f32 acc.
    # (A single im2col matmul with K=9P would use the MXU better, but requires a lane-dim
    #  concatenation; the 9-tap form keeps every op in well-supported layout territory.)
    yp = jnp.pad(y.reshape(H, W, P), ((1, 1), (1, 1), (0, 0))).astype(jnp.bfloat16)
    acc = jnp.zeros((H * W, P), jnp.float32)
    for ky in range(3):
        for kx in range(3):
            patch = yp[ky:ky + H, kx:kx + W, :].reshape(H * W, P)
            acc = acc + jnp.dot(patch, w2_ref[ky, kx],
                                preferred_element_type=jnp.float32)
    y2 = jnp.maximum(acc * s2_ref[0] + b2_ref[0], 0.0)  # (H*W, P) f32

    # --- AvgPool2d(stride): strided average on the VPU (no pooling matrix) ---
    if stride > 1:
        y2 = _avgpool_hw(y2.reshape(H, W, P), stride).reshape(Ho * Wo, P)

    # --- conv3 (1x1) + bn3 ---
    out = jnp.dot(y2.astype(jnp.bfloat16), w3_ref[...],
                  preferred_element_type=jnp.float32)   # (Ho*Wo, C4)
    out = out * s3_ref[0] + b3_ref[0]

    # --- identity / downsample path ---
    if has_downsample:
        if stride > 1:
            idn = _avgpool_hw(x32, stride).reshape(Ho * Wo, Cin)
        else:
            idn = x_flat
        idn = jnp.dot(idn.astype(jnp.bfloat16), wd_ref[...],
                      preferred_element_type=jnp.float32)
        idn = idn * sd_ref[0] + bd_ref[0]
    else:
        idn = x_flat                                     # Cin == C4 and stride == 1

    out = jnp.maximum(out + idn, 0.0)
    o_ref[0] = out.reshape(Ho, Wo, C4).astype(o_ref.dtype)


def bottleneck_forward(x, params, stride):
    N, H, W, Cin = x.shape
    P = params["w1"].shape[1]
    C4 = params["w3"].shape[1]
    assert H % stride == 0 and W % stride == 0, "H and W must be divisible by stride"
    Ho, Wo = H // stride, W // stride
    has_downsample = stride > 1 or Cin != C4

    # Weights stored bf16 in HBM (MXU-native, halves weight DMA); folded BN scale/bias stay f32.
    w1 = params["w1"].astype(jnp.bfloat16)               # (Cin, P)
    w2 = params["w2"].astype(jnp.bfloat16)               # (3, 3, P, P)
    w3 = params["w3"].astype(jnp.bfloat16)               # (P, C4)

    def full(shape):
        nd = len(shape)
        return pl.BlockSpec(shape, lambda n, _nd=nd: (0,) * _nd)

    operands = [x, w1, w2, w3]
    in_specs = [pl.BlockSpec((1, H, W, Cin), lambda n: (n, 0, 0, 0)),
                full(w1.shape), full(w2.shape), full(w3.shape)]
    if has_downsample:
        wd = params["wd"].astype(jnp.bfloat16)            # (Cin, C4)
        operands.append(wd)
        in_specs.append(full(wd.shape))
    for name in ("s1", "b1", "s2", "b2", "s3", "b3"):
        operands.append(params[name])
        in_specs.append(full(params[name].shape))
    if has_downsample:
        for name in ("sd", "bd"):
            operands.append(params[name])
            in_specs.append(full(params[name].shape))

    kern = functools.partial(bottleneck_kernel, stride, has_downsample)
    # NOTE: for production shapes (e.g. 56x56x256 on v5e/v7x) tile over H / set vmem_limit_bytes;
    # the demo shapes comfortably fit the default scoped VMEM on all generations.
    return pl.pallas_call(
        kern,
        out_shape=jax.ShapeDtypeStruct((N, Ho, Wo, C4), x.dtype),
        grid_spec=pltpu.PrefetchScalarGridSpec(
            num_scalar_prefetch=0,
            grid=(N,),
            in_specs=in_specs,
            out_specs=pl.BlockSpec((1, Ho, Wo, C4), lambda n: (n, 0, 0, 0)),
        ),
        compiler_params=pltpu.CompilerParams(
            dimension_semantics=("parallel",)),   # batch elements independent -> 2-TC shard on v7x
    )(*operands)


# ----------------------- pure-JAX reference (for verification) -----------------------
def reference_forward(x, params, stride):
    def conv1x1(t, w):
        return lax.conv_general_dilated(
            t, w.reshape(1, 1, *w.shape), window_strides=(1, 1), padding="VALID",
            dimension_numbers=("NHWC", "HWIO", "NHWC"))

    def conv3x3(t, w):
        return lax.conv_general_dilated(
            t, w, window_strides=(1, 1), padding=((1, 1), (1, 1)),
            dimension_numbers=("NHWC", "HWIO", "NHWC"))

    def bn(t, s, b):
        return t * s[0] + b[0]

    def avgpool(t, s):
        n, h, w, c = t.shape
        return t.reshape(n, h // s, s, w // s, s, c).mean(axis=(2, 4))

    out = jnp.maximum(bn(conv1x1(x, params["w1"]), params["s1"], params["b1"]), 0.0)
    out = jnp.maximum(bn(conv3x3(out, params["w2"]), params["s2"], params["b2"]), 0.0)
    if stride > 1:
        out = avgpool(out, stride)
    out = bn(conv1x1(out, params["w3"]), params["s3"], params["b3"])
    C4 = params["w3"].shape[1]
    if stride > 1 or x.shape[-1] != C4:
        idn = avgpool(x, stride) if stride > 1 else x
        idn = bn(conv1x1(idn, params["wd"]), params["sd"], params["bd"])
    else:
        idn = x
    return jnp.maximum(out + idn, 0.0)


# ----------------------------- deterministic parameter init -----------------------------
def init_params(key, inplanes, planes, eps=1e-5):
    C4 = planes * 4
    ks = jax.random.split(key, 20)

    def bn_fold(kg, kb, km, kv, c):
        gamma = 1.0 + 0.1 * jax.random.normal(kg, (c,), jnp.float32)
        beta = 0.1 * jax.random.normal(kb, (c,), jnp.float32)
        mean = 0.1 * jax.random.normal(km, (c,), jnp.float32)
        var = jax.random.uniform(kv, (c,), jnp.float32, minval=0.5, maxval=1.5)
        scale = gamma / jnp.sqrt(var + eps)
        bias = beta - mean * scale
        return scale.reshape(1, c), bias.reshape(1, c)

    p = {}
    p["w1"] = 0.1 * jax.random.normal(ks[0], (inplanes, planes), jnp.float32)
    p["w2"] = 0.1 * jax.random.normal(ks[1], (3, 3, planes, planes), jnp.float32)
    p["w3"] = 0.1 * jax.random.normal(ks[2], (planes, C4), jnp.float32)
    p["wd"] = 0.1 * jax.random.normal(ks[3], (inplanes, C4), jnp.float32)
    p["s1"], p["b1"] = bn_fold(ks[4], ks[5], ks[6], ks[7], planes)
    p["s2"], p["b2"] = bn_fold(ks[8], ks[9], ks[10], ks[11], planes)
    p["s3"], p["b3"] = bn_fold(ks[12], ks[13], ks[14], ks[15], C4)
    p["sd"], p["bd"] = bn_fold(ks[16], ks[17], ks[18], ks[19], C4)
    return p


if __name__ == "__main__":
    key = jax.random.PRNGKey(0)

    # Config 1: stride-2 bottleneck with downsample path.
    # N=2, inplanes=8, planes=4 (-> out channels 16), H=W=16, stride=2.
    N, inplanes, planes, H, W, stride = 2, 8, 4, 16, 16, 2
    kx, kp, key = jax.random.split(key, 3)
    x = jax.random.normal(kx, (N, H, W, inplanes), jnp.float32)  # NHWC (PyTorch x would be NCHW)
    params = init_params(kp, inplanes, planes)
    out = jax.block_until_ready(bottleneck_forward(x, params, stride))
    ref = jax.block_until_ready(reference_forward(x, params, stride))
    np.testing.assert_allclose(np.asarray(out), np.asarray(ref), rtol=2e-2, atol=2e-2)

    # Config 2: stride-1 bottleneck with identity skip (no downsample): inplanes == 4*planes.
    N, inplanes, planes, H, W, stride = 2, 16, 4, 16, 16, 1
    kx, kp = jax.random.split(key)
    x = jax.random.normal(kx, (N, H, W, inplanes), jnp.float32)
    params = init_params(kp, inplanes, planes)
    out = jax.block_until_ready(bottleneck_forward(x, params, stride))
    ref = jax.block_until_ready(reference_forward(x, params, stride))
    np.testing.assert_allclose(np.asarray(out), np.asarray(ref), rtol=2e-2, atol=2e-2)

    print("KERNEL_OK")
</pallas_src>

<mosaic_0001>
module attributes {stable_mosaic.version = 11 : i64} {
  func.func @bottleneck_kernel(%arg0: i32, %arg1: memref<1x16x16x8xf32, #tpu.memory_space<vmem>>, %arg2: memref<8x4xbf16, #tpu.memory_space<vmem>>, %arg3: memref<3x3x4x4xbf16, #tpu.memory_space<vmem>>, %arg4: memref<4x16xbf16, #tpu.memory_space<vmem>>, %arg5: memref<8x16xbf16, #tpu.memory_space<vmem>>, %arg6: memref<1x4xf32, #tpu.memory_space<vmem>>, %arg7: memref<1x4xf32, #tpu.memory_space<vmem>>, %arg8: memref<1x4xf32, #tpu.memory_space<vmem>>, %arg9: memref<1x4xf32, #tpu.memory_space<vmem>>, %arg10: memref<1x16xf32, #tpu.memory_space<vmem>>, %arg11: memref<1x16xf32, #tpu.memory_space<vmem>>, %arg12: memref<1x16xf32, #tpu.memory_space<vmem>>, %arg13: memref<1x16xf32, #tpu.memory_space<vmem>>, %arg14: memref<1x8x8x16xf32, #tpu.memory_space<vmem>>) attributes {dimension_semantics = [#tpu.dimension_semantics<parallel>], iteration_bounds = array<i64: 2>, scalar_prefetch = 0 : i64, scratch_operands = 0 : i64, tpu.core_type = #tpu.core_type<tc>, window_params = [{transform_indices = @transform_0, window_bounds = array<i64: 1, 16, 16, 8>}, {pipeline_mode = #tpu.pipeline_mode<synchronous>, transform_indices = @transform_1, window_bounds = array<i64: 8, 4>}, {pipeline_mode = #tpu.pipeline_mode<synchronous>, transform_indices = @transform_2, window_bounds = array<i64: 3, 3, 4, 4>}, {pipeline_mode = #tpu.pipeline_mode<synchronous>, transform_indices = @transform_3, window_bounds = array<i64: 4, 16>}, {pipeline_mode = #tpu.pipeline_mode<synchronous>, transform_indices = @transform_4, window_bounds = array<i64: 8, 16>}, {pipeline_mode = #tpu.pipeline_mode<synchronous>, transform_indices = @transform_5, window_bounds = array<i64: 1, 4>}, {pipeline_mode = #tpu.pipeline_mode<synchronous>, transform_indices = @transform_6, window_bounds = array<i64: 1, 4>}, {pipeline_mode = #tpu.pipeline_mode<synchronous>, transform_indices = @transform_7, window_bounds = array<i64: 1, 4>}, {pipeline_mode = #tpu.pipeline_mode<synchronous>, transform_indices = @transform_8, window_bounds = array<i64: 1, 4>}, {pipeline_mode = #tpu.pipeline_mode<synchronous>, transform_indices = @transform_9, window_bounds = array<i64: 1, 16>}, {pipeline_mode = #tpu.pipeline_mode<synchronous>, transform_indices = @transform_10, window_bounds = array<i64: 1, 16>}, {pipeline_mode = #tpu.pipeline_mode<synchronous>, transform_indices = @transform_11, window_bounds = array<i64: 1, 16>}, {pipeline_mode = #tpu.pipeline_mode<synchronous>, transform_indices = @transform_12, window_bounds = array<i64: 1, 16>}, {transform_indices = @transform_13, window_bounds = array<i64: 1, 8, 8, 16>}]} {
    %c0 = arith.constant 0 : index
    %c0_0 = arith.constant 0 : index
    %c0_1 = arith.constant 0 : index
    %c0_2 = arith.constant 0 : index
    %0 = vector.load %arg1[%c0, %c0_0, %c0_1, %c0_2] : memref<1x16x16x8xf32, #tpu.memory_space<vmem>>, vector<1x16x16x8xf32>
    %1 = vector.shape_cast %0 : vector<1x16x16x8xf32> to vector<16x16x8xf32>
    %2 = vector.shape_cast %1 : vector<16x16x8xf32> to vector<256x8xf32>
    %3 = arith.truncf %2 : vector<256x8xf32> to vector<256x8xbf16>
    %c0_3 = arith.constant 0 : index
    %c0_4 = arith.constant 0 : index
    %4 = vector.load %arg2[%c0_3, %c0_4] : memref<8x4xbf16, #tpu.memory_space<vmem>>, vector<8x4xbf16>
    %cst = arith.constant dense<0.000000e+00> : vector<256x4xf32>
    %5 = tpu.matmul %3, %4, %cst {dimension_numbers = #tpu.dot_dimension_numbers<[1], [0], [0], [1], [0, 0, 1, 1], [], []>} : vector<256x8xbf16>, vector<8x4xbf16>, vector<256x4xf32> -> vector<256x4xf32>
    %c0_5 = arith.constant 0 : index
    %c0_6 = arith.constant 0 : index
    %6 = vector.load %arg6[%c0_5, %c0_6] : memref<1x4xf32, #tpu.memory_space<vmem>>, vector<1x4xf32>
    %7 = vector.shape_cast %6 : vector<1x4xf32> to vector<4xf32>
    %8 = vector.shape_cast %7 : vector<4xf32> to vector<1x4xf32>
    %9 = vector.broadcast %8 : vector<1x4xf32> to vector<256x4xf32>
    %10 = arith.mulf %5, %9 : vector<256x4xf32>
    %c0_7 = arith.constant 0 : index
    %c0_8 = arith.constant 0 : index
    %11 = vector.load %arg7[%c0_7, %c0_8] : memref<1x4xf32, #tpu.memory_space<vmem>>, vector<1x4xf32>
    %12 = vector.shape_cast %11 : vector<1x4xf32> to vector<4xf32>
    %13 = vector.shape_cast %12 : vector<4xf32> to vector<1x4xf32>
    %14 = vector.broadcast %13 : vector<1x4xf32> to vector<256x4xf32>
    %15 = arith.addf %10, %14 : vector<256x4xf32>
    %cst_9 = arith.constant 0.000000e+00 : f32
    %16 = vector.broadcast %cst_9 : f32 to vector<256x4xf32>
    %17 = arith.maximumf %15, %16 : vector<256x4xf32>
    %18 = vector.shape_cast %17 : vector<256x4xf32> to vector<16x16x4xf32>
    %c0_i32 = arith.constant 0 : i32
    %19 = arith.sitofp %c0_i32 : i32 to f32
    %20 = vector.broadcast %19 : f32 to vector<1x16x4xf32>
    %21 = tpu.concatenate %20, %18 in 0 : vector<1x16x4xf32>, vector<16x16x4xf32> -> vector<17x16x4xf32>
    %22 = vector.broadcast %19 : f32 to vector<1x16x4xf32>
    %23 = tpu.concatenate %21, %22 in 0 : vector<17x16x4xf32>, vector<1x16x4xf32> -> vector<18x16x4xf32>
    %24 = vector.broadcast %19 : f32 to vector<18x1x4xf32>
    %25 = tpu.concatenate %24, %23 in 1 : vector<18x1x4xf32>, vector<18x16x4xf32> -> vector<18x17x4xf32>
    %26 = vector.broadcast %19 : f32 to vector<18x1x4xf32>
    %27 = tpu.concatenate %25, %26 in 1 : vector<18x17x4xf32>, vector<18x1x4xf32> -> vector<18x18x4xf32>
    %28 = arith.truncf %27 : vector<18x18x4xf32> to vector<18x18x4xbf16>
    %cst_10 = arith.constant 0.000000e+00 : f32
    %29 = vector.broadcast %cst_10 : f32 to vector<256x4xf32>
    %30 = vector.extract_strided_slice %28 {offsets = [0, 0, 0], sizes = [16, 16, 4], strides = [1, 1, 1]} : vector<18x18x4xbf16> to vector<16x16x4xbf16>
    %31 = vector.shape_cast %30 : vector<16x16x4xbf16> to vector<256x4xbf16>
    %c0_11 = arith.constant 0 : index
    %c0_12 = arith.constant 0 : index
    %c0_13 = arith.constant 0 : index
    %c0_14 = arith.constant 0 : index
    %32 = vector.load %arg3[%c0_11, %c0_12, %c0_13, %c0_14] : memref<3x3x4x4xbf16, #tpu.memory_space<vmem>>, vector<1x1x4x4xbf16>
    %33 = vector.shape_cast %32 : vector<1x1x4x4xbf16> to vector<4x4xbf16>
    %cst_15 = arith.constant dense<0.000000e+00> : vector<256x4xf32>
    %34 = tpu.matmul %31, %33, %cst_15 {dimension_numbers = #tpu.dot_dimension_numbers<[1], [0], [0], [1], [0, 0, 1, 1], [], []>} : vector<256x4xbf16>, vector<4x4xbf16>, vector<256x4xf32> -> vector<256x4xf32>
    %35 = arith.addf %29, %34 : vector<256x4xf32>
    %36 = vector.extract_strided_slice %28 {offsets = [0, 1, 0], sizes = [16, 16, 4], strides = [1, 1, 1]} : vector<18x18x4xbf16> to vector<16x16x4xbf16>
    %37 = vector.shape_cast %36 : vector<16x16x4xbf16> to vector<256x4xbf16>
    %c0_16 = arith.constant 0 : index
    %c1 = arith.constant 1 : index
    %c0_17 = arith.constant 0 : index
    %c0_18 = arith.constant 0 : index
    %38 = vector.load %arg3[%c0_16, %c1, %c0_17, %c0_18] : memref<3x3x4x4xbf16, #tpu.memory_space<vmem>>, vector<1x1x4x4xbf16>
    %39 = vector.shape_cast %38 : vector<1x1x4x4xbf16> to vector<4x4xbf16>
    %cst_19 = arith.constant dense<0.000000e+00> : vector<256x4xf32>
    %40 = tpu.matmul %37, %39, %cst_19 {dimension_numbers = #tpu.dot_dimension_numbers<[1], [0], [0], [1], [0, 0, 1, 1], [], []>} : vector<256x4xbf16>, vector<4x4xbf16>, vector<256x4xf32> -> vector<256x4xf32>
    %41 = arith.addf %35, %40 : vector<256x4xf32>
    %42 = vector.extract_strided_slice %28 {offsets = [0, 2, 0], sizes = [16, 16, 4], strides = [1, 1, 1]} : vector<18x18x4xbf16> to vector<16x16x4xbf16>
    %43 = vector.shape_cast %42 : vector<16x16x4xbf16> to vector<256x4xbf16>
    %c0_20 = arith.constant 0 : index
    %c2 = arith.constant 2 : index
    %c0_21 = arith.constant 0 : index
    %c0_22 = arith.constant 0 : index
    %44 = vector.load %arg3[%c0_20, %c2, %c0_21, %c0_22] : memref<3x3x4x4xbf16, #tpu.memory_space<vmem>>, vector<1x1x4x4xbf16>
    %45 = vector.shape_cast %44 : vector<1x1x4x4xbf16> to vector<4x4xbf16>
    %cst_23 = arith.constant dense<0.000000e+00> : vector<256x4xf32>
    %46 = tpu.matmul %43, %45, %cst_23 {dimension_numbers = #tpu.dot_dimension_numbers<[1], [0], [0], [1], [0, 0, 1, 1], [], []>} : vector<256x4xbf16>, vector<4x4xbf16>, vector<256x4xf32> -> vector<256x4xf32>
    %47 = arith.addf %41, %46 : vector<256x4xf32>
    %48 = vector.extract_strided_slice %28 {offsets = [1, 0, 0], sizes = [16, 16, 4], strides = [1, 1, 1]} : vector<18x18x4xbf16> to vector<16x16x4xbf16>
    %49 = vector.shape_cast %48 : vector<16x16x4xbf16> to vector<256x4xbf16>
    %c1_24 = arith.constant 1 : index
    %c0_25 = arith.constant 0 : index
    %c0_26 = arith.constant 0 : index
    %c0_27 = arith.constant 0 : index
    %50 = vector.load %arg3[%c1_24, %c0_25, %c0_26, %c0_27] : memref<3x3x4x4xbf16, #tpu.memory_space<vmem>>, vector<1x1x4x4xbf16>
    %51 = vector.shape_cast %50 : vector<1x1x4x4xbf16> to vector<4x4xbf16>
    %cst_28 = arith.constant dense<0.000000e+00> : vector<256x4xf32>
    %52 = tpu.matmul %49, %51, %cst_28 {dimension_numbers = #tpu.dot_dimension_numbers<[1], [0], [0], [1], [0, 0, 1, 1], [], []>} : vector<256x4xbf16>, vector<4x4xbf16>, vector<256x4xf32> -> vector<256x4xf32>
    %53 = arith.addf %47, %52 : vector<256x4xf32>
    %54 = vector.extract_strided_slice %28 {offsets = [1, 1, 0], sizes = [16, 16, 4], strides = [1, 1, 1]} : vector<18x18x4xbf16> to vector<16x16x4xbf16>
    %55 = vector.shape_cast %54 : vector<16x16x4xbf16> to vector<256x4xbf16>
    %c1_29 = arith.constant 1 : index
    %c1_30 = arith.constant 1 : index
    %c0_31 = arith.constant 0 : index
    %c0_32 = arith.constant 0 : index
    %56 = vector.load %arg3[%c1_29, %c1_30, %c0_31, %c0_32] : memref<3x3x4x4xbf16, #tpu.memory_space<vmem>>, vector<1x1x4x4xbf16>
    %57 = vector.shape_cast %56 : vector<1x1x4x4xbf16> to vector<4x4xbf16>
    %cst_33 = arith.constant dense<0.000000e+00> : vector<256x4xf32>
    %58 = tpu.matmul %55, %57, %cst_33 {dimension_numbers = #tpu.dot_dimension_numbers<[1], [0], [0], [1], [0, 0, 1, 1], [], []>} : vector<256x4xbf16>, vector<4x4xbf16>, vector<256x4xf32> -> vector<256x4xf32>
    %59 = arith.addf %53, %58 : vector<256x4xf32>
    %60 = vector.extract_strided_slice %28 {offsets = [1, 2, 0], sizes = [16, 16, 4], strides = [1, 1, 1]} : vector<18x18x4xbf16> to vector<16x16x4xbf16>
    %61 = vector.shape_cast %60 : vector<16x16x4xbf16> to vector<256x4xbf16>
    %c1_34 = arith.constant 1 : index
    %c2_35 = arith.constant 2 : index
    %c0_36 = arith.constant 0 : index
    %c0_37 = arith.constant 0 : index
    %62 = vector.load %arg3[%c1_34, %c2_35, %c0_36, %c0_37] : memref<3x3x4x4xbf16, #tpu.memory_space<vmem>>, vector<1x1x4x4xbf16>
    %63 = vector.shape_cast %62 : vector<1x1x4x4xbf16> to vector<4x4xbf16>
    %cst_38 = arith.constant dense<0.000000e+00> : vector<256x4xf32>
    %64 = tpu.matmul %61, %63, %cst_38 {dimension_numbers = #tpu.dot_dimension_numbers<[1], [0], [0], [1], [0, 0, 1, 1], [], []>} : vector<256x4xbf16>, vector<4x4xbf16>, vector<256x4xf32> -> vector<256x4xf32>
    %65 = arith.addf %59, %64 : vector<256x4xf32>
    %66 = vector.extract_strided_slice %28 {offsets = [2, 0, 0], sizes = [16, 16, 4], strides = [1, 1, 1]} : vector<18x18x4xbf16> to vector<16x16x4xbf16>
    %67 = vector.shape_cast %66 : vector<16x16x4xbf16> to vector<256x4xbf16>
    %c2_39 = arith.constant 2 : index
    %c0_40 = arith.constant 0 : index
    %c0_41 = arith.constant 0 : index
    %c0_42 = arith.constant 0 : index
    %68 = vector.load %arg3[%c2_39, %c0_40, %c0_41, %c0_42] : memref<3x3x4x4xbf16, #tpu.memory_space<vmem>>, vector<1x1x4x4xbf16>
    %69 = vector.shape_cast %68 : vector<1x1x4x4xbf16> to vector<4x4xbf16>
    %cst_43 = arith.constant dense<0.000000e+00> : vector<256x4xf32>
    %70 = tpu.matmul %67, %69, %cst_43 {dimension_numbers = #tpu.dot_dimension_numbers<[1], [0], [0], [1], [0, 0, 1, 1], [], []>} : vector<256x4xbf16>, vector<4x4xbf16>, vector<256x4xf32> -> vector<256x4xf32>
    %71 = arith.addf %65, %70 : vector<256x4xf32>
    %72 = vector.extract_strided_slice %28 {offsets = [2, 1, 0], sizes = [16, 16, 4], strides = [1, 1, 1]} : vector<18x18x4xbf16> to vector<16x16x4xbf16>
    %73 = vector.shape_cast %72 : vector<16x16x4xbf16> to vector<256x4xbf16>
    %c2_44 = arith.constant 2 : index
    %c1_45 = arith.constant 1 : index
    %c0_46 = arith.constant 0 : index
    %c0_47 = arith.constant 0 : index
    %74 = vector.load %arg3[%c2_44, %c1_45, %c0_46, %c0_47] : memref<3x3x4x4xbf16, #tpu.memory_space<vmem>>, vector<1x1x4x4xbf16>
    %75 = vector.shape_cast %74 : vector<1x1x4x4xbf16> to vector<4x4xbf16>
    %cst_48 = arith.constant dense<0.000000e+00> : vector<256x4xf32>
    %76 = tpu.matmul %73, %75, %cst_48 {dimension_numbers = #tpu.dot_dimension_numbers<[1], [0], [0], [1], [0, 0, 1, 1], [], []>} : vector<256x4xbf16>, vector<4x4xbf16>, vector<256x4xf32> -> vector<256x4xf32>
    %77 = arith.addf %71, %76 : vector<256x4xf32>
    %78 = vector.extract_strided_slice %28 {offsets = [2, 2, 0], sizes = [16, 16, 4], strides = [1, 1, 1]} : vector<18x18x4xbf16> to vector<16x16x4xbf16>
    %79 = vector.shape_cast %78 : vector<16x16x4xbf16> to vector<256x4xbf16>
    %c2_49 = arith.constant 2 : index
    %c2_50 = arith.constant 2 : index
    %c0_51 = arith.constant 0 : index
    %c0_52 = arith.constant 0 : index
    %80 = vector.load %arg3[%c2_49, %c2_50, %c0_51, %c0_52] : memref<3x3x4x4xbf16, #tpu.memory_space<vmem>>, vector<1x1x4x4xbf16>
    %81 = vector.shape_cast %80 : vector<1x1x4x4xbf16> to vector<4x4xbf16>
    %cst_53 = arith.constant dense<0.000000e+00> : vector<256x4xf32>
    %82 = tpu.matmul %79, %81, %cst_53 {dimension_numbers = #tpu.dot_dimension_numbers<[1], [0], [0], [1], [0, 0, 1, 1], [], []>} : vector<256x4xbf16>, vector<4x4xbf16>, vector<256x4xf32> -> vector<256x4xf32>
    %83 = arith.addf %77, %82 : vector<256x4xf32>
    %c0_54 = arith.constant 0 : index
    %c0_55 = arith.constant 0 : index
    %84 = vector.load %arg8[%c0_54, %c0_55] : memref<1x4xf32, #tpu.memory_space<vmem>>, vector<1x4xf32>
    %85 = vector.shape_cast %84 : vector<1x4xf32> to vector<4xf32>
    %86 = vector.shape_cast %85 : vector<4xf32> to vector<1x4xf32>
    %87 = vector.broadcast %86 : vector<1x4xf32> to vector<256x4xf32>
    %88 = arith.mulf %83, %87 : vector<256x4xf32>
    %c0_56 = arith.constant 0 : index
    %c0_57 = arith.constant 0 : index
    %89 = vector.load %arg9[%c0_56, %c0_57] : memref<1x4xf32, #tpu.memory_space<vmem>>, vector<1x4xf32>
    %90 = vector.shape_cast %89 : vector<1x4xf32> to vector<4xf32>
    %91 = vector.shape_cast %90 : vector<4xf32> to vector<1x4xf32>
    %92 = vector.broadcast %91 : vector<1x4xf32> to vector<256x4xf32>
    %93 = arith.addf %88, %92 : vector<256x4xf32>
    %cst_58 = arith.constant 0.000000e+00 : f32
    %94 = vector.broadcast %cst_58 : f32 to vector<256x4xf32>
    %95 = arith.maximumf %93, %94 : vector<256x4xf32>
    %96 = vector.shape_cast %95 : vector<256x4xf32> to vector<16x16x4xf32>
    %97 = vector.shape_cast %96 : vector<16x16x4xf32> to vector<8x2x16x4xf32>
    %98 = vector.extract_strided_slice %97 {offsets = [0, 0, 0, 0], sizes = [8, 1, 16, 4], strides = [1, 1, 1, 1]} : vector<8x2x16x4xf32> to vector<8x1x16x4xf32>
    %99 = vector.shape_cast %98 : vector<8x1x16x4xf32> to vector<8x16x4xf32>
    %100 = vector.extract_strided_slice %97 {offsets = [0, 1, 0, 0], sizes = [8, 1, 16, 4], strides = [1, 1, 1, 1]} : vector<8x2x16x4xf32> to vector<8x1x16x4xf32>
    %101 = vector.shape_cast %100 : vector<8x1x16x4xf32> to vector<8x16x4xf32>
    %102 = arith.addf %99, %101 : vector<8x16x4xf32>
    %103 = vector.shape_cast %102 : vector<8x16x4xf32> to vector<8x8x2x4xf32>
    %104 = vector.extract_strided_slice %103 {offsets = [0, 0, 0, 0], sizes = [8, 8, 1, 4], strides = [1, 1, 1, 1]} : vector<8x8x2x4xf32> to vector<8x8x1x4xf32>
    %105 = vector.shape_cast %104 : vector<8x8x1x4xf32> to vector<8x8x4xf32>
    %106 = vector.extract_strided_slice %103 {offsets = [0, 0, 1, 0], sizes = [8, 8, 1, 4], strides = [1, 1, 1, 1]} : vector<8x8x2x4xf32> to vector<8x8x1x4xf32>
    %107 = vector.shape_cast %106 : vector<8x8x1x4xf32> to vector<8x8x4xf32>
    %108 = arith.addf %105, %107 : vector<8x8x4xf32>
    %cst_59 = arith.constant 2.500000e-01 : f32
    %109 = vector.broadcast %cst_59 : f32 to vector<8x8x4xf32>
    %110 = arith.mulf %108, %109 : vector<8x8x4xf32>
    %111 = vector.shape_cast %110 : vector<8x8x4xf32> to vector<64x4xf32>
    %112 = arith.truncf %111 : vector<64x4xf32> to vector<64x4xbf16>
    %c0_60 = arith.constant 0 : index
    %c0_61 = arith.constant 0 : index
    %113 = vector.load %arg4[%c0_60, %c0_61] : memref<4x16xbf16, #tpu.memory_space<vmem>>, vector<4x16xbf16>
    %cst_62 = arith.constant dense<0.000000e+00> : vector<64x16xf32>
    %114 = tpu.matmul %112, %113, %cst_62 {dimension_numbers = #tpu.dot_dimension_numbers<[1], [0], [0], [1], [0, 0, 1, 1], [], []>} : vector<64x4xbf16>, vector<4x16xbf16>, vector<64x16xf32> -> vector<64x16xf32>
    %c0_63 = arith.constant 0 : index
    %c0_64 = arith.constant 0 : index
    %115 = vector.load %arg10[%c0_63, %c0_64] : memref<1x16xf32, #tpu.memory_space<vmem>>, vector<1x16xf32>
    %116 = vector.shape_cast %115 : vector<1x16xf32> to vector<16xf32>
    %117 = vector.shape_cast %116 : vector<16xf32> to vector<1x16xf32>
    %118 = vector.broadcast %117 : vector<1x16xf32> to vector<64x16xf32>
    %119 = arith.mulf %114, %118 : vector<64x16xf32>
    %c0_65 = arith.constant 0 : index
    %c0_66 = arith.constant 0 : index
    %120 = vector.load %arg11[%c0_65, %c0_66] : memref<1x16xf32, #tpu.memory_space<vmem>>, vector<1x16xf32>
    %121 = vector.shape_cast %120 : vector<1x16xf32> to vector<16xf32>
    %122 = vector.shape_cast %121 : vector<16xf32> to vector<1x16xf32>
    %123 = vector.broadcast %122 : vector<1x16xf32> to vector<64x16xf32>
    %124 = arith.addf %119, %123 : vector<64x16xf32>
    %125 = vector.shape_cast %1 : vector<16x16x8xf32> to vector<8x2x16x8xf32>
    %126 = vector.extract_strided_slice %125 {offsets = [0, 0, 0, 0], sizes = [8, 1, 16, 8], strides = [1, 1, 1, 1]} : vector<8x2x16x8xf32> to vector<8x1x16x8xf32>
    %127 = vector.shape_cast %126 : vector<8x1x16x8xf32> to vector<8x16x8xf32>
    %128 = vector.extract_strided_slice %125 {offsets = [0, 1, 0, 0], sizes = [8, 1, 16, 8], strides = [1, 1, 1, 1]} : vector<8x2x16x8xf32> to vector<8x1x16x8xf32>
    %129 = vector.shape_cast %128 : vector<8x1x16x8xf32> to vector<8x16x8xf32>
    %130 = arith.addf %127, %129 : vector<8x16x8xf32>
    %131 = vector.shape_cast %130 : vector<8x16x8xf32> to vector<8x8x2x8xf32>
    %132 = vector.extract_strided_slice %131 {offsets = [0, 0, 0, 0], sizes = [8, 8, 1, 8], strides = [1, 1, 1, 1]} : vector<8x8x2x8xf32> to vector<8x8x1x8xf32>
    %133 = vector.shape_cast %132 : vector<8x8x1x8xf32> to vector<8x8x8xf32>
    %134 = vector.extract_strided_slice %131 {offsets = [0, 0, 1, 0], sizes = [8, 8, 1, 8], strides = [1, 1, 1, 1]} : vector<8x8x2x8xf32> to vector<8x8x1x8xf32>
    %135 = vector.shape_cast %134 : vector<8x8x1x8xf32> to vector<8x8x8xf32>
    %136 = arith.addf %133, %135 : vector<8x8x8xf32>
    %cst_67 = arith.constant 2.500000e-01 : f32
    %137 = vector.broadcast %cst_67 : f32 to vector<8x8x8xf32>
    %138 = arith.mulf %136, %137 : vector<8x8x8xf32>
    %139 = vector.shape_cast %138 : vector<8x8x8xf32> to vector<64x8xf32>
    %140 = arith.truncf %139 : vector<64x8xf32> to vector<64x8xbf16>
    %c0_68 = arith.constant 0 : index
    %c0_69 = arith.constant 0 : index
    %141 = vector.load %arg5[%c0_68, %c0_69] : memref<8x16xbf16, #tpu.memory_space<vmem>>, vector<8x16xbf16>
    %cst_70 = arith.constant dense<0.000000e+00> : vector<64x16xf32>
    %142 = tpu.matmul %140, %141, %cst_70 {dimension_numbers = #tpu.dot_dimension_numbers<[1], [0], [0], [1], [0, 0, 1, 1], [], []>} : vector<64x8xbf16>, vector<8x16xbf16>, vector<64x16xf32> -> vector<64x16xf32>
    %c0_71 = arith.constant 0 : index
    %c0_72 = arith.constant 0 : index
    %143 = vector.load %arg12[%c0_71, %c0_72] : memref<1x16xf32, #tpu.memory_space<vmem>>, vector<1x16xf32>
    %144 = vector.shape_cast %143 : vector<1x16xf32> to vector<16xf32>
    %145 = vector.shape_cast %144 : vector<16xf32> to vector<1x16xf32>
    %146 = vector.broadcast %145 : vector<1x16xf32> to vector<64x16xf32>
    %147 = arith.mulf %142, %146 : vector<64x16xf32>
    %c0_73 = arith.constant 0 : index
    %c0_74 = arith.constant 0 : index
    %148 = vector.load %arg13[%c0_73, %c0_74] : memref<1x16xf32, #tpu.memory_space<vmem>>, vector<1x16xf32>
    %149 = vector.shape_cast %148 : vector<1x16xf32> to vector<16xf32>
    %150 = vector.shape_cast %149 : vector<16xf32> to vector<1x16xf32>
    %151 = vector.broadcast %150 : vector<1x16xf32> to vector<64x16xf32>
    %152 = arith.addf %147, %151 : vector<64x16xf32>
    %153 = arith.addf %124, %152 : vector<64x16xf32>
    %cst_75 = arith.constant 0.000000e+00 : f32
    %154 = vector.broadcast %cst_75 : f32 to vector<64x16xf32>
    %155 = arith.maximumf %153, %154 : vector<64x16xf32>
    %156 = vector.shape_cast %155 : vector<64x16xf32> to vector<8x8x16xf32>
    %c0_76 = arith.constant 0 : index
    %c0_77 = arith.constant 0 : index
    %c0_78 = arith.constant 0 : index
    %c0_79 = arith.constant 0 : index
    %157 = vector.load %arg14[%c0_76, %c0_77, %c0_78, %c0_79] : memref<1x8x8x16xf32, #tpu.memory_space<vmem>>, vector<1x8x8x16xf32>
    %158 = vector.shape_cast %157 : vector<1x8x8x16xf32> to vector<8x8x16xf32>
    %159 = vector.shape_cast %156 : vector<8x8x16xf32> to vector<1x8x8x16xf32>
    tpu.vector_store %arg14[%c0_76, %c0_77, %c0_78, %c0_79], %159 {strides = array<i32>} : memref<1x8x8x16xf32, #tpu.memory_space<vmem>>, vector<1x8x8x16xf32>,
    return
  }
  func.func @transform_0(%arg0: i32) -> (i32, i32, i32, i32) {
    %c0_i32 = arith.constant 0 : i32
    %c0_i32_0 = arith.constant 0 : i32
    %c0_i32_1 = arith.constant 0 : i32
    %c0_i32_2 = arith.constant 0 : i32
    return %arg0, %c0_i32, %c0_i32_0, %c0_i32_1 : i32, i32, i32, i32
  }
  func.func @transform_1(%arg0: i32) -> (i32, i32) {
    %c0_i32 = arith.constant 0 : i32
    %c0_i32_0 = arith.constant 0 : i32
    %c0_i32_1 = arith.constant 0 : i32
    return %c0_i32, %c0_i32_0 : i32, i32
  }
  func.func @transform_2(%arg0: i32) -> (i32, i32, i32, i32) {
    %c0_i32 = arith.constant 0 : i32
    %c0_i32_0 = arith.constant 0 : i32
    %c0_i32_1 = arith.constant 0 : i32
    %c0_i32_2 = arith.constant 0 : i32
    %c0_i32_3 = arith.constant 0 : i32
    return %c0_i32, %c0_i32_0, %c0_i32_1, %c0_i32_2 : i32, i32, i32, i32
  }
  func.func @transform_3(%arg0: i32) -> (i32, i32) {
    %c0_i32 = arith.constant 0 : i32
    %c0_i32_0 = arith.constant 0 : i32
    %c0_i32_1 = arith.constant 0 : i32
    return %c0_i32, %c0_i32_0 : i32, i32
  }
  func.func @transform_4(%arg0: i32) -> (i32, i32) {
    %c0_i32 = arith.constant 0 : i32
    %c0_i32_0 = arith.constant 0 : i32
    %c0_i32_1 = arith.constant 0 : i32
    return %c0_i32, %c0_i32_0 : i32, i32
  }
  func.func @transform_5(%arg0: i32) -> (i32, i32) {
    %c0_i32 = arith.constant 0 : i32
    %c0_i32_0 = arith.constant 0 : i32
    %c0_i32_1 = arith.constant 0 : i32
    return %c0_i32, %c0_i32_0 : i32, i32
  }
  func.func @transform_6(%arg0: i32) -> (i32, i32) {
    %c0_i32 = arith.constant 0 : i32
    %c0_i32_0 = arith.constant 0 : i32
    %c0_i32_1 = arith.constant 0 : i32
    return %c0_i32, %c0_i32_0 : i32, i32
  }
  func.func @transform_7(%arg0: i32) -> (i32, i32) {
    %c0_i32 = arith.constant 0 : i32
    %c0_i32_0 = arith.constant 0 : i32
    %c0_i32_1 = arith.constant 0 : i32
    return %c0_i32, %c0_i32_0 : i32, i32
  }
  func.func @transform_8(%arg0: i32) -> (i32, i32) {
    %c0_i32 = arith.constant 0 : i32
    %c0_i32_0 = arith.constant 0 : i32
    %c0_i32_1 = arith.constant 0 : i32
    return %c0_i32, %c0_i32_0 : i32, i32
  }
  func.func @transform_9(%arg0: i32) -> (i32, i32) {
    %c0_i32 = arith.constant 0 : i32
    %c0_i32_0 = arith.constant 0 : i32
    %c0_i32_1 = arith.constant 0 : i32
    return %c0_i32, %c0_i32_0 : i32, i32
  }
  func.func @transform_10(%arg0: i32) -> (i32, i32) {
    %c0_i32 = arith.constant 0 : i32
    %c0_i32_0 = arith.constant 0 : i32
    %c0_i32_1 = arith.constant 0 : i32
    return %c0_i32, %c0_i32_0 : i32, i32
  }
  func.func @transform_11(%arg0: i32) -> (i32, i32) {
    %c0_i32 = arith.constant 0 : i32
    %c0_i32_0 = arith.constant 0 : i32
    %c0_i32_1 = arith.constant 0 : i32
    return %c0_i32, %c0_i32_0 : i32, i32
  }
  func.func @transform_12(%arg0: i32) -> (i32, i32) {
    %c0_i32 = arith.constant 0 : i32
    %c0_i32_0 = arith.constant 0 : i32
    %c0_i32_1 = arith.constant 0 : i32
    return %c0_i32, %c0_i32_0 : i32, i32
  }
  func.func @transform_13(%arg0: i32) -> (i32, i32, i32, i32) {
    %c0_i32 = arith.constant 0 : i32
    %c0_i32_0 = arith.constant 0 : i32
    %c0_i32_1 = arith.constant 0 : i32
    %c0_i32_2 = arith.constant 0 : i32
    return %arg0, %c0_i32, %c0_i32_0, %c0_i32_1 : i32, i32, i32, i32
  }
}

</mosaic_0001>

<bundles_post_ra>
// kernel: tpu_custom_call.1
= control target key start
LH: loop header
LB: loop body
LE: loop exit
PB: predicated region body
PF: predicated region fallthrough
CT: control target
= control target key end

     0   :  { %s8982_s0 = inlined_call_operand.vmem [shape: f32[2,16,16,8], index: 0, kind: input, shape index: {}]   ;;  %s8983_s1 = inlined_call_operand.vmem [shape: bf16[8,4], index: 1, kind: input, shape index: {}]   ;;  %s8984_s2 = inlined_call_operand.vmem [shape: bf16[3,3,4,4], index: 2, kind: input, shape index: {}]   ;;  %s8985_s3 = inlined_call_operand.vmem [shape: bf16[4,16], index: 3, kind: input, shape index: {}]   ;;  %s8986_s4 = inlined_call_operand.vmem [shape: bf16[8,16], index: 4, kind: input, shape index: {}]   ;;  %s8987_s5 = inlined_call_operand.vmem [shape: f32[1,4], index: 5, kind: input, shape index: {}]   ;;  %s8988_s6 = inlined_call_operand.vmem [shape: f32[1,4], index: 6, kind: input, shape index: {}]   ;;  %s8989_s7 = inlined_call_operand.vmem [shape: f32[1,4], index: 7, kind: input, shape index: {}]   ;;  %s8990_s8 = inlined_call_operand.vmem [shape: f32[1,4], index: 8, kind: input, shape index: {}]   ;;  %s8991_s9 = inlined_call_operand.vmem [shape: f32[1,16], index: 9, kind: input, shape index: {}]   ;;  %s8992_s10 = inlined_call_operand.vmem [shape: f32[1,16], index: 10, kind: input, shape index: {}]   ;;  %s8993_s11 = inlined_call_operand.vmem [shape: f32[1,16], index: 11, kind: input, shape index: {}]   ;;  %s8994_s12 = inlined_call_operand.vmem [shape: f32[1,16], index: 12, kind: input, shape index: {}]   ;;  %s8995_s13 = inlined_call_operand.hbm [shape: f32[2,8,8,16], index: 13, kind: output, shape index: {}]  }
   0x1   :  { %9070 = sst [smem:[#allocation81_spill]] %s8982_s0 }
   0x2   :  { %9071 = sst [smem:[#allocation82_spill]] %s8983_s1 }
   0x3   :  { %9072 = sst [smem:[#allocation83_spill]] %s8984_s2 }
   0x4   :  { %18 = vsyncpa [#allocation3], 0 }
   0x5   :  { %20 = vsyncpa [#allocation3 + $0x1], 0  ;;  %s6653_s25 = smov 0   ;;  %s6655_s26 = smov 0  }
   0x6   :  { %s6657_s27 = smov 0   ;;  %s6659_s28 = smov 0  }
   0x7 LB: > { %s6674_s29 = sadd.s32 4294967295, %s6576_s28   ;;  %s5593_s30 = sadd.s32 4294967294, %s6576_s28   ;;  %s6576_s28 = sphi %s6659_s28, %s9362_s28   ;;  %s6572_s27 = sphi %s6657_s27, %s9361_s27   ;;  %s6568_s26 = sphi %s6655_s26, %s9360_s26   ;;  %s6564_s25 = sphi %s6653_s25, %s9359_s25  }
   0x8   : > { %s6678_s14 = sadd.s32 1, %s6576_s28   ;;  %s311_s15 = sadd.s32 1, %s6572_s27 }
   0x9   : > { %s308_s16 = ssub.s32 %s6576_s28, %s6678_s14  ;;  %p321_p0 = scmp.ne.s32.totalorder %s6572_s27, %s6568_s26 }
   0xa   : > { %p309_p1 = scmp.eq.s32.totalorder %s308_s16, 0  ;;  %p322_p2 = scmp.eq.s32.totalorder %s6674_s29, 1 }
   0xb   : > { %p327_p3 = scmp.ne.s32.totalorder %s6568_s26, %s6564_s25  ;;  %p328_p4 = scmp.eq.s32.totalorder %s5593_s30, 1 }
   0xc   : > { %s6689_s17 = scalar_select %p309_p1, %s6572_s27, %s311_s15  }
   0xd   : > { %p6691_p5 = por %p322_p2, %p321_p0  ;;  %p6695_p6 = por %p328_p4, %p327_p3 }
   0xe   : > { %p5596_p7 = scmp.ge.s32.totalorder %s6576_s28, 1  ;;  %p390_p8 = scmp.lt.s32.totalorder %s6576_s28, 3 }
  0x10   : > { %p391_p9 = pnand %p5596_p7, %p390_p8 }
  0x12   : > { %394 = sbr.rel (%p391_p9) target bundleno = 1155 (0x483), region = 72 }
  0x17   : > { %s9075_s1 = sld [smem:[#allocation82_spill]]  ;;  %vm538_vm0 = vcmask 1043456   ;;  %p434_p10 = scmp.lt.s32.totalorder %s6674_s29, 1  ;;  %vm489_vm1 = vcmask 64512   ;;  %v6578_v21 = vmov 1983009808   ;;  %v3307_v23 = vlaneseq }
  0x18   : > { %s9076_s0 = sld [smem:[#allocation81_spill]]  ;;  %v3305_v22 = vunpack.c.l.s4 %v6578_v21  ;;  %vm4153_vm2 = vcmask 1041409   ;;  %vm4156_vm3 = vcmask 1042434   ;;  %vm4159_vm4 = vcmask 1043459   ;;  %s431_s16 = sand.u32 1, %s6568_s26  }
  0x19   : > { %s435_s22 = scalar_select %p434_p10, %s6674_s29, 1  ;;  %v3308_v27 = vshrl.u32 %v3307_v23, 7  ;;  %vm4162_vm5 = vcmask 1044484   ;;  %vm4165_vm6 = vcmask 1045509   ;;  %vm4168_vm7 = vcmask 1046534  }
  0x1a   : > { %v3306_v26 = vunpack.c.0.s8 %v3305_v22  ;;  %s9094_s2 = sld [smem:[#allocation83_spill]]  ;;  %vm1260_vm8 = vcmask 1041408   ;;  %vm846_vm9 = vcmask 1040384   ;;  %vm1211_vm10 = vcmask 31744   ;;  %s5918_s24 = sshll.u32 %s6674_s29, 10 }
  0x1b   : > { %s5917_s23 = sshll.u32 %s435_s22, 8  ;;  %vm1016_vm11 = vsmask.f32 7424  ;;  %vm1653_vm12 = vcmask 1046528   ;;  %vm4171_vm13 = vcmask 1047559   ;;  %s5597_s22 = sshll.u32 %s431_s16, 6 }
  0x1c   : > { %v6738_v30 = vsub.s32 %v3306_v26, %v3308_v27  ;;  %vm5508_vm14 = vcmask 130048   ;;  %s8932_s21 = scalar_lea.hbm %s8995_s13, %s5918_s24  ;;  %s8942_s29 = scalar_lea.sflag [#allocation3], %s431_s16 }
  0x1d   : > { %v488_v0 = vld [vmem:[%s9075_s1] sm:$0xf]  ;;  %s6580_s24 = smov [#allocation2]  }
  0x1e   : > { %6459 = vmatprep.subr.msk.bf16.mxu0 %vm538_vm0, %v488_v0  ;;  %v540_v1 = vsel %vm538_vm0, %v488_v0, 0  ;;  %s6711_s15 = scalar_lea.vmem %s9076_s0, %s5917_s23  ;;  %9081 = vst [vmem:[#allocation9_spill] sm:$0xff] %v6738_v30  ;;  %s8905_s23 = scalar_lea.vmem [#allocation2], %s5597_s22 }
  0x1f   : > { %6100 = vmatpush3.bf16.msra.mxu0 %v540_v1  ;;  %v440_v2 = vld [vmem:[%s6711_s15] sm:$0xff]  ;;  %v441_v3 = vld [vmem:[%s6711_s15 + $0x8] sm:$0xff]  ;;  %v442_v4 = vld [vmem:[%s6711_s15 + $0x10] sm:$0xff]  ;;  %s5531_s30 = sshll.u32 %s8905_s23, 4  ;;  %s8934_s30 = int_to_ptr.vmem [resolvable:$true] %s5531_s30 }
  0x20   : > { %v443_v5 = vld [vmem:[%s6711_s15 + $0x18] sm:$0xff]  ;;  %v472_v6 = vpack.c.bf16 %v441_v3, %v440_v2  ;;  %v6717_v7 = vadd.f32 %v442_v4, %v440_v2  ;;  %v444_v8 = vld [vmem:[%s6711_s15 + $0x20] sm:$0xff]  ;;  %v445_v9 = vld [vmem:[%s6711_s15 + $0x28] sm:$0xff]  ;;  %s6516_s22 = scalar_lea.vmem %s8934_s30, 1024 }
  0x21   : > { %v473_v10 = vpack.c.bf16 %v443_v5, %v442_v4  ;;  %v6721_v11 = vadd.f32 %v443_v5, %v441_v3  ;;  %v474_v12 = vpack.c.bf16 %v445_v9, %v444_v8  ;;  %v446_v13 = vld [vmem:[%s6711_s15 + $0x30] sm:$0xff]  ;;  %v447_v14 = vld [vmem:[%s6711_s15 + $0x38] sm:$0xff]  ;;  %v448_v17 = vld [vmem:[%s6711_s15 + $0x40] sm:$0xff]  ;;  %p6517_p11 = scmp.ne.s32.totalorder %s8934_s30, %s6516_s22 }
  0x22   : > { %9077 = vst [vmem:[#allocation5_spill] sm:$0xff] %v6717_v7  ;;  %6101 = vmatprep.mubr.msk.bf16.mxu0 %vm489_vm1, %v472_v6  ;;  %v6726_v15 = vadd.f32 %v446_v13, %v444_v8  ;;  %v6729_v16 = vadd.f32 %v447_v14, %v445_v9  ;;  %v449_v18 = vld [vmem:[%s6711_s15 + $0x48] sm:$0xff]  ;;  %v475_v19 = vpack.c.bf16 %v447_v14, %v446_v13  ;;  %v450_v24 = vld [vmem:[%s6711_s15 + $0x50] sm:$0xff]  ;;  %v451_v25 = vld [vmem:[%s6711_s15 + $0x58] sm:$0xff] }
  0x23   : > { %9078 = vst [vmem:[#allocation6_spill] sm:$0xff] %v6721_v11  ;;  %6102 = vmatmul.mubr.msk.bf16.vlgmr.msra.gmra.mxu0 %vm489_vm1, %v473_v10  ;;  %v476_v20 = vpack.c.bf16 %v449_v18, %v448_v17  ;;  %v477_v28 = vpack.c.bf16 %v451_v25, %v450_v24  ;;  %v4389_v29 = vadd.f32 %v450_v24, %v448_v17  ;;  %v452_v2 = vld [vmem:[%s6711_s15 + $0x60] sm:$0xff]  ;;  %v453_v3 = vld [vmem:[%s6711_s15 + $0x68] sm:$0xff]  ;;  %v454_v13 = vld [vmem:[%s6711_s15 + $0x70] sm:$0xff]  ;;  %p6518_p12 = pnand %p6517_p11, %p6691_p5 }
  0x24   : > { %9079 = vst [vmem:[#allocation7_spill] sm:$0xff] %v6726_v15  ;;  %9080 = vst [vmem:[#allocation8_spill] sm:$0xff] %v6729_v16  ;;  %6105 = vmatprep.mubr.msk.bf16.mxu0 %vm489_vm1, %v474_v12  ;;  %v4390_v31 = vadd.f32 %v451_v25, %v449_v18  ;;  %v455_v14 = vld [vmem:[%s6711_s15 + $0x78] sm:$0xff]  ;;  %v457_v25 = vld [vmem:[%s6711_s15 + $0x88] sm:$0xff] }
  0x25   : > { %v4485_v32 = vcombine.high %v4389_v29, %v4389_v29  ;;  %v4492_v33 = vrot.slane %v4389_v29, %v6738_v30  ;;  %v458_v26 = vld [vmem:[%s6711_s15 + $0x90] sm:$0xff]  ;;  %v459_v27 = vld [vmem:[%s6711_s15 + $0x98] sm:$0xff]  ;;  %v479_v29 = vpack.c.bf16 %v455_v14, %v454_v13  ;;  %p6519_p13 = pneg %p6518_p12 }
  0x26   : > { %v4502_v36 = vcombine.high %v4390_v31, %v4390_v31  ;;  %v4509_v38 = vrot.slane %v4390_v31, %v6738_v30 }
  0x27   : > { %v4499_v34 = vrot.slane %v4485_v32, %v6738_v30  ;;  %v4500_v35 = vcombine.high %v4492_v33, %v4492_v33  ;;  %v5858_v40 = vrot.slane %v4492_v33, 9 }
  0x28   : > { %v6745_v39 = vrot.slane %v4502_v36, %v6738_v30  ;;  %v4517_v42 = vcombine.high %v4509_v38, %v4509_v38  ;;  %v5862_v45 = vrot.slane %v4509_v38, 9 }
  0x29   : > { %v4501_v37 = vcombine.high %v4499_v34, %v4499_v34  ;;  %v5859_v41 = vrot.slane %v4500_v35, 9  ;;  %v5860_v43 = vrot.slane %v4499_v34, 9  ;;  %v4961_v47 = vadd.f32 %v5858_v40, %v4492_v33 }
  0x2a   : > { %9082 = vst [vmem:[#allocation10_spill] sm:$0xff] %v6745_v39  ;;  %v5864_v46 = vrot.slane %v6745_v39, 9  ;;  %v5863_v48 = vrot.slane %v4517_v42, 9  ;;  %v4965_v52 = vadd.f32 %v5862_v45, %v4509_v38  ;;  %v4391_v33 = vadd.f32 %v454_v13, %v452_v2 }
  0x2b   : > { %6106 = vmatmul.mubr.msk.bf16.gmra.mxu0 %vm489_vm1, %v475_v19  ;;  %v5861_v44 = vrot.slane %v4501_v37, 9  ;;  %v4962_v49 = vadd.f32 %v5859_v41, %v4500_v35  ;;  %v4963_v50 = vadd.f32 %v5860_v43, %v4499_v34  ;;  %v5025_v54 = vmul.f32 0.25, %v4961_v47 }
  0x2c   : > { %6109 = vmatprep.mubr.msk.bf16.mxu0 %vm489_vm1, %v476_v20  ;;  %v4967_v53 = vadd.f32 %v5864_v46, %v6745_v39  ;;  %v4966_v55 = vadd.f32 %v5863_v48, %v4517_v42  ;;  %v5029_v59 = vmul.f32 0.25, %v4965_v52  ;;  %v478_v19 = vpack.c.bf16 %v453_v3, %v452_v2  ;;  %v456_v20 = vld [vmem:[%s6711_s15 + $0x80] sm:$0xff] }
  0x2d   : > { %v4964_v51 = vadd.f32 %v5861_v44, %v4501_v37  ;;  %v5026_v56 = vmul.f32 0.25, %v4962_v49  ;;  %v5027_v57 = vmul.f32 0.25, %v4963_v50  ;;  %v5089_v61 = vpack.c.bf16 %v5025_v54, %v5025_v54 }
  0x2e   : > { %v5031_v60 = vmul.f32 0.25, %v4967_v53  ;;  %v5030_v62 = vmul.f32 0.25, %v4966_v55  ;;  %v5093_v4 = vpack.c.bf16 %v5029_v59, %v5029_v59  ;;  %v4392_v34 = vadd.f32 %v455_v14, %v453_v3 }
  0x2f   : > { %v5028_v58 = vmul.f32 0.25, %v4964_v51  ;;  %v5090_v63 = vpack.c.bf16 %v5026_v56, %v5026_v56  ;;  %v5091_v0 = vpack.c.bf16 %v5027_v57, %v5027_v57  ;;  %v5218_v6 = vunpack.c.l.b16 %v5089_v61 }
  0x30   : > { %v5095_v5 = vpack.c.bf16 %v5031_v60, %v5031_v60  ;;  %v5094_v8 = vpack.c.bf16 %v5030_v62, %v5030_v62  ;;  %v5222_v17 = vunpack.c.l.b16 %v5093_v4  ;;  %v480_v37 = vpack.c.bf16 %v457_v25, %v456_v20 }
  0x31   : > { %v5092_v1 = vpack.c.bf16 %v5028_v58, %v5028_v58  ;;  %v5219_v9 = vunpack.c.l.b16 %v5090_v63  ;;  %v5220_v10 = vunpack.c.l.b16 %v5091_v0  ;;  %v481_v38 = vpack.c.bf16 %v459_v27, %v458_v26 }
  0x32   : > { %v5224_v18 = vunpack.c.l.b16 %v5095_v5  ;;  %v5223_v21 = vunpack.c.l.b16 %v5094_v8  ;;  %v4519_v41 = vcombine.high %v4391_v33, %v4391_v33  ;;  %v4526_v42 = vrot.slane %v4391_v33, %v6738_v30 }
  0x33   : > { %6110 = vmatmul.mubr.msk.bf16.gmra.mxu0 %vm489_vm1, %v477_v28  ;;  %v5221_v12 = vunpack.c.l.b16 %v5092_v1  ;;  %v5294_v22 = vrot.slane %v5219_v9, 7  ;;  %v5296_v23 = vrot.slane %v5220_v10, 6  ;;  %v5300_v28 = vrot.slane %v5222_v17, 4 }
  0x34   : > { %6113 = vmatprep.mubr.msk.bf16.mxu0 %vm489_vm1, %v478_v19  ;;  %v5302_v32 = vrot.slane %v5223_v21, 3  ;;  %v5304_v36 = vrot.slane %v5224_v18, 2  ;;  %v4536_v43 = vcombine.high %v4392_v34, %v4392_v34  ;;  %v4543_v45 = vrot.slane %v4392_v34, %v6738_v30 }
  0x35   : > { %v5298_v24 = vrot.slane %v5221_v12, 5  ;;  %v5295_v31 = vsel %vm4153_vm2, %v5294_v22, %v5218_v6  ;;  %v6766_v46 = vadd.f32 %v458_v26, %v456_v20  ;;  %v6768_v47 = vadd.f32 %v459_v27, %v457_v25 }
  0x36   : > { %v5297_v35 = vsel %vm4156_vm3, %v5296_v23, %v5295_v31  ;;  %v4533_v49 = vrot.slane %v4519_v41, %v6738_v30  ;;  %v4534_v50 = vcombine.high %v4526_v42, %v4526_v42  ;;  %v6773_v51 = vrot.slane %v4536_v43, %v6738_v30  ;;  %v461_v43 = vld [vmem:[%s6711_s15 + $0xa8] sm:$0xff] }
  0x37   : > { %v5299_v40 = vsel %vm4159_vm4, %v5298_v24, %v5297_v35  ;;  %9083 = vst [vmem:[#allocation11_spill] sm:$0xff] %v6766_v46  ;;  %9084 = vst [vmem:[#allocation12_spill] sm:$0xff] %v6768_v47  ;;  %v4551_v53 = vcombine.high %v4543_v45, %v4543_v45  ;;  %v5866_v54 = vrot.slane %v4526_v42, 9  ;;  %v5870_v55 = vrot.slane %v4543_v45, 9 }
  0x38   : > { %v5301_v44 = vsel %vm4162_vm5, %v5300_v28, %v5299_v40  ;;  %9085 = vst [vmem:[#allocation13_spill] sm:$0xff] %v6773_v51  ;;  %v4535_v56 = vcombine.high %v4533_v49, %v4533_v49  ;;  %v5867_v57 = vrot.slane %v4534_v50, 9  ;;  %v5868_v58 = vrot.slane %v4533_v49, 9 }
  0x39   : > { %v5303_v48 = vsel %vm4165_vm6, %v5302_v32, %v5301_v44  ;;  %v5871_v59 = vrot.slane %v4551_v53, 9  ;;  %v5872_v60 = vrot.slane %v6773_v51, 9  ;;  %v4969_v61 = vadd.f32 %v5866_v54, %v4526_v42  ;;  %v460_v42 = vld [vmem:[%s6711_s15 + $0xa0] sm:$0xff] }
  0x3a   : > { %v6776_v52 = vsel %vm4168_vm7, %v5304_v36, %v5303_v48  ;;  %v4973_v62 = vadd.f32 %v5870_v55, %v4543_v45  ;;  %v5869_v63 = vrot.slane %v4535_v56, 9  ;;  %v4970_v0 = vadd.f32 %v5867_v57, %v4534_v50  ;;  %v462_v45 = vld [vmem:[%s6711_s15 + $0xb0] sm:$0xff]  ;;  %v463_v48 = vld [vmem:[%s6711_s15 + $0xb8] sm:$0xff]  ;;  %v465_v57 = vld [vmem:[%s6711_s15 + $0xc8] sm:$0xff] }
  0x3b   : > { %6114 = vmatmul.mubr.msk.bf16.gmra.mxu0 %vm489_vm1, %v479_v29  ;;  %9086 = vst [vmem:[#allocation14_spill] sm:$0xff] %v6776_v52  ;;  %v4971_v1 = vadd.f32 %v5868_v58, %v4533_v49  ;;  %v4974_v2 = vadd.f32 %v5871_v59, %v4551_v53  ;;  %v4975_v3 = vadd.f32 %v5872_v60, %v6773_v51  ;;  %v5033_v4 = vmul.f32 0.25, %v4969_v61  ;;  %v466_v58 = vld [vmem:[%s6711_s15 + $0xd0] sm:$0xff]  ;;  %v467_v59 = vld [vmem:[%s6711_s15 + $0xd8] sm:$0xff] }
  0x3c   : > { %6117 = vmatprep.mubr.msk.bf16.mxu0 %vm489_vm1, %v480_v37  ;;  %v5037_v5 = vmul.f32 0.25, %v4973_v62  ;;  %v4972_v6 = vadd.f32 %v5869_v63, %v4535_v56  ;;  %v5034_v8 = vmul.f32 0.25, %v4970_v0  ;;  %v482_v50 = vpack.c.bf16 %v461_v43, %v460_v42  ;;  %v464_v56 = vld [vmem:[%s6711_s15 + $0xc0] sm:$0xff] }
  0x3d   : > { %v5035_v9 = vmul.f32 0.25, %v4971_v1  ;;  %v5038_v10 = vmul.f32 0.25, %v4974_v2  ;;  %v5039_v12 = vmul.f32 0.25, %v4975_v3  ;;  %v5097_v13 = vpack.c.bf16 %v5033_v4, %v5033_v4  ;;  %v468_v0 = vld [vmem:[%s6711_s15 + $0xe0] sm:$0xff]  ;;  %v469_v1 = vld [vmem:[%s6711_s15 + $0xe8] sm:$0xff]  ;;  %v470_v2 = vld [vmem:[%s6711_s15 + $0xf0] sm:$0xff] }
  0x3e   : > { %v5101_v14 = vpack.c.bf16 %v5037_v5, %v5037_v5  ;;  %v5036_v17 = vmul.f32 0.25, %v4972_v6  ;;  %v5098_v18 = vpack.c.bf16 %v5034_v8, %v5034_v8  ;;  %v483_v53 = vpack.c.bf16 %v463_v48, %v462_v45  ;;  %v471_v3 = vld [vmem:[%s6711_s15 + $0xf8] sm:$0xff]  ;;  %s6520_s15 = sshll.u32 %s6580_s24, 4  ;;  %s6521_s15 = int_to_ptr.vmem [resolvable:$false] %s6520_s15 }
  0x3f   : > { %v5099_v19 = vpack.c.bf16 %v5035_v9, %v5035_v9  ;;  %v5102_v20 = vpack.c.bf16 %v5038_v10, %v5038_v10  ;;  %v5103_v21 = vpack.c.bf16 %v5039_v12, %v5039_v12  ;;  %v5226_v24 = vunpack.c.l.b16 %v5097_v13  ;;  %v1015_v9 = vld [vmem:[%s9094_s2] sm:$0x3]  ;;  %v5618_v10 = vld [vmem:[%s9094_s2 + $0x2] sm:$0x3]  ;;  %s6522_s20 = scalar_lea.vmem %s6521_s15, 2048  ;;  %p6523_p0 = scmp.lt.s32.totalorder %s8934_s30, %s6521_s15 }
  0x40   : > { %v5230_v22 = vunpack.c.l.b16 %v5101_v14  ;;  %v5100_v23 = vpack.c.bf16 %v5036_v17, %v5036_v17  ;;  %v5227_v25 = vunpack.c.l.b16 %v5098_v18  ;;  %v6794_v54 = vadd.f32 %v462_v45, %v460_v42  ;;  %6461 = vmatprep.subr.msk.bf16.mxu0 %vm1260_vm8, %v1015_v9  ;;  %6460 = vmatprep.subr.msk.bf16.mxu1 %vm1260_vm8, %v5618_v10  ;;  %p6524_p1 = scmp.lt.s32.totalorder %s6522_s20, %s6516_s22 }
  0x41   : > { %v5228_v26 = vunpack.c.l.b16 %v5099_v19  ;;  %v5231_v27 = vunpack.c.l.b16 %v5102_v20  ;;  %v5232_v28 = vunpack.c.l.b16 %v5103_v21  ;;  %v6797_v55 = vadd.f32 %v463_v48, %v461_v43 }
  0x42   : > { %v5229_v29 = vunpack.c.l.b16 %v5100_v23  ;;  %v5308_v31 = vrot.slane %v5227_v25, 7  ;;  %v5314_v33 = vrot.slane %v5230_v22, 4  ;;  %9088 = vst [vmem:[#allocation16_spill] sm:$0xff] %v6794_v54  ;;  %v484_v60 = vpack.c.bf16 %v465_v57, %v464_v56  ;;  %p6525_p2 = por %p6524_p1, %p6523_p0 }
  0x43   : > { %6118 = vmatmul.mubr.msk.bf16.gmra.mxu0 %vm489_vm1, %v481_v38  ;;  %v5310_v32 = vrot.slane %v5228_v26, 6  ;;  %v5316_v36 = vrot.slane %v5231_v27, 3  ;;  %v5318_v38 = vrot.slane %v5232_v28, 2  ;;  %9089 = vst [vmem:[#allocation17_spill] sm:$0xff] %v6797_v55  ;;  %v485_v61 = vpack.c.bf16 %v467_v59, %v466_v58 }
  0x44   : > { %v5309_v34 = vsel %vm4153_vm2, %v5308_v31, %v5226_v24  ;;  %v5312_v35 = vrot.slane %v5229_v29, 5  ;;  %6121 = vmatprep.mubr.msk.bf16.mxu0 %vm489_vm1, %v482_v50  ;;  %v6804_v62 = vadd.f32 %v466_v58, %v464_v56  ;;  %v6807_v63 = vadd.f32 %v467_v59, %v465_v57  ;;  %v6842_v24 = vld [vmem:[%s9094_s2 + $0x4] sm:$0x3]  ;;  %v5668_v31 = vld [vmem:[%s9094_s2 + $0x6] sm:$0x3]  ;;  %p6526_p3 = pnand %p6525_p2, %p6519_p13 }
  0x45   : > { %v5311_v37 = vsel %vm4156_vm3, %v5310_v32, %v5309_v34  ;;  %v486_v4 = vpack.c.bf16 %v469_v1, %v468_v0  ;;  %v487_v5 = vpack.c.bf16 %v471_v3, %v470_v2  ;;  %v6815_v6 = vadd.f32 %v470_v2, %v468_v0  ;;  %v6859_v32 = vld [vmem:[%s8987_s5] ss:$0 sm:$0xff] }
  0x46   : > { %v5313_v40 = vsel %vm4159_vm4, %v5312_v35, %v5311_v37  ;;  %9090 = vst [vmem:[#allocation18_spill] sm:$0xff] %v6804_v62  ;;  %9091 = vst [vmem:[#allocation19_spill] sm:$0xff] %v6807_v63  ;;  %v6817_v8 = vadd.f32 %v471_v3, %v469_v1  ;;  %v1458_v12 = vsel %vm1260_vm8, %v1015_v9, 0  ;;  %v6579_v13 = vmov 0.0   ;;  %v6864_v34 = vld [vmem:[%s8988_s6] ss:$0 sm:$0xff] }
  0x47   : > { %v5315_v41 = vsel %vm4162_vm5, %v5314_v33, %v5313_v40  ;;  %9092 = vst [vmem:[#allocation20_spill] sm:$0xff] %v6815_v6  ;;  %6168 = vmatpush3.bf16.msra.mxu0 %v1458_v12  ;;  %v847_v14 = vrot.slane %v6579_v13, 7  ;;  %v1262_v17 = vsel %vm1260_vm8, %v5618_v10, 0 }
  0x48   : > { %v5317_v44 = vsel %vm4165_vm6, %v5316_v36, %v5315_v41  ;;  %9093 = vst [vmem:[#allocation21_spill] sm:$0xff] %v6817_v8  ;;  %6134 = vmatpush3.bf16.msra.mxu1 %v1262_v17  ;;  %6463 = vmatprep.subr.msk.bf16.mxu0 %vm1260_vm8, %v5668_v31 }
  0x49   : > { %v6791_v49 = vsel %vm4168_vm7, %v5318_v38, %v5317_v44  ;;  %v947_v18 = vsel %vm846_vm9, 0.0, %v847_v14  ;;  %v964_v20 = vsel %vm846_vm9, %v847_v14, 0.0  ;;  %6462 = vmatprep.subr.msk.bf16.mxu1 %vm1260_vm8, %v6842_v24 }
  0x4a   : > { %9087 = vst [vmem:[#allocation15_spill] sm:$0xff] %v6791_v49  ;;  %v6830_v19 = vpack.c.bf16 %v847_v14, %v947_v18  ;;  %v6837_v23 = vpack.c.bf16 %v964_v20, %v964_v20 }
  0x4b   : > { %6122 = vmatmul.mubr.msk.bf16.gmra.mxu0 %vm489_vm1, %v483_v53 }
  0x4c   : > { %6125 = vmatprep.mubr.msk.bf16.mxu0 %vm489_vm1, %v484_v60  ;;  %v1018_v21 = vshrl.u32 %v6830_v19, 16  ;;  %v1020_v22 = vshll.u32 %v6830_v19, 16  ;;  %v1025_v26 = vshll.u32 %v6837_v23, 16 }
  0x4e   : > { %v1022_v25 = vrot.slane %v1020_v22, 1  ;;  %v1027_v28 = vrot.slane %v1025_v26, 1 }
  0x50   : > { %v1023_v27 = vor.u32 %v1022_v25, %v1018_v21 }
  0x52   : > { %v6848_v29 = vsel %vm1016_vm11, %v1023_v27, %v1027_v28 }
  0x53   : > { %6126 = vmatmul.mubr.msk.bf16.gmra.mxu0 %vm489_vm1, %v485_v61  ;;  %9095 = vst [vmem:[#allocation22_spill] sm:$0xff] %v6848_v29  ;;  %6135 = vmatprep.mubr.msk.bf16.mxu1 %vm1211_vm10, %v6848_v29 }
  0x54   : > { %6129 = vmatprep.mubr.msk.bf16.mxu0 %vm489_vm1, %v486_v4 }
  0x5b   : > { %6130 = vmatmul.mubr.msk.bf16.gmra.mxu0 %vm489_vm1, %v487_v5  ;;  %v1954_v5 = vsel %vm1260_vm8, %v5668_v31, 0 }
  0x5c   : > { %6169 = vmatprep.mubr.msk.bf16.mxu0 %vm1211_vm10, %v6830_v19 }
  0xe3   : > { %v6103_v33 = vpop.f32.mrf.mxu0 }
  0xe4   : > { %v712_v35 = vmul.f32 %v6103_v33, %v6859_v32 }
  0xe5   : > { %v576_v36 = vpop.f32.mrf.mxu0 }
  0xe6   : > { %v751_v37 = vadd.f32 %v6864_v34, %v712_v35  ;;  %v710_v38 = vmul.f32 %v6859_v32, %v576_v36 }
  0xe7   : > { %v6104_v40 = vpop.f32.mrf.mxu0 }
  0xe8   : > { %v749_v41 = vadd.f32 %v6864_v34, %v710_v38  ;;  %v713_v42 = vmul.f32 %v6104_v40, %v6859_v32  ;;  %v783_v43 = vmax.f32 %v751_v37, 0.0 }
  0xe9   : > { %v579_v44 = vpop.f32.mrf.mxu0 }
  0xea   : > { %v781_v45 = vmax.f32 %v749_v41, 0.0  ;;  %v752_v48 = vadd.f32 %v6864_v34, %v713_v42  ;;  %v711_v50 = vmul.f32 %v6859_v32, %v579_v44  ;;  %v852_v58 = vrot.slane %v783_v43, 7 }
  0xeb   : > { %v6107_v53 = vpop.f32.mrf.mxu0 }
  0xec   : > { %v784_v56 = vmax.f32 %v752_v48, 0.0  ;;  %v750_v57 = vadd.f32 %v6864_v34, %v711_v50  ;;  %v849_v59 = vrot.slane %v781_v45, 7  ;;  %v716_v60 = vmul.f32 %v6107_v53, %v6859_v32 }
  0xed   : > { %v592_v61 = vpop.f32.mrf.mxu0  ;;  %v949_v14 = vsel %vm846_vm9, 0.0, %v852_v58  ;;  %v1753_v45 = vsel %vm1260_vm8, %v6842_v24, 0 }
  0xee   : > { %v853_v0 = vrot.slane %v784_v56, 7  ;;  %v782_v1 = vmax.f32 %v750_v57, 0.0  ;;  %v714_v2 = vmul.f32 %v6859_v32, %v592_v61  ;;  %v755_v3 = vadd.f32 %v6864_v34, %v716_v60 }
  0xef   : > { %v6108_v4 = vpop.f32.mrf.mxu0  ;;  %v948_v17 = vsel %vm846_vm9, 0.0, %v849_v59 }
  0xf0   : > { %v854_v9 = vsel %vm846_vm9, %v852_v58, %v853_v0  ;;  %v966_v10 = vsel %vm846_vm9, %v853_v0, 0.0  ;;  %v850_v12 = vrot.slane %v782_v1, 7  ;;  %v753_v13 = vadd.f32 %v6864_v34, %v714_v2 }
  0xf1   : > { %v787_v18 = vmax.f32 %v755_v3, 0.0  ;;  %v717_v20 = vmul.f32 %v6108_v4, %v6859_v32  ;;  %v595_v21 = vpop.f32.mrf.mxu0  ;;  %v6887_v28 = vpack.c.bf16 %v854_v9, %v949_v14  ;;  %v6889_v31 = vpack.c.bf16 %v966_v10, %v966_v10 }
  0xf2   : > { %v851_v22 = vsel %vm846_vm9, %v849_v59, %v850_v12  ;;  %v965_v25 = vsel %vm846_vm9, %v850_v12, 0.0  ;;  %v785_v26 = vmax.f32 %v753_v13, 0.0  ;;  %v715_v27 = vmul.f32 %v6859_v32, %v595_v21 }
  0xf3   : > { %v6891_v33 = vpack.c.bf16 %v851_v22, %v948_v17  ;;  %v6893_v35 = vpack.c.bf16 %v965_v25, %v965_v25  ;;  %v858_v36 = vrot.slane %v787_v18, 7  ;;  %v756_v37 = vadd.f32 %v6864_v34, %v717_v20  ;;  %v6111_v50 = vpop.f32.mrf.mxu0 }
  0xf4   : > { %v754_v38 = vadd.f32 %v6864_v34, %v715_v27  ;;  %v855_v40 = vrot.slane %v785_v26, 7  ;;  %v1049_v48 = vshll.u32 %v6889_v31, 16  ;;  %v1044_v57 = vshll.u32 %v6887_v28, 16  ;;  %v6931_v26 = vld [vmem:[%s9094_s2 + $0x8] sm:$0x3] }
  0xf5   : > { %6170 = vmatmul.mubr.msk.bf16.vlgmr.msra.gmra.mxu0 %vm1211_vm10, %v6891_v33  ;;  %v1032_v41 = vshll.u32 %v6891_v33, 16  ;;  %v1037_v42 = vshll.u32 %v6893_v35, 16  ;;  %v788_v43 = vmax.f32 %v756_v37, 0.0  ;;  %v1030_v53 = vshrl.u32 %v6891_v33, 16  ;;  %v608_v1 = vpop.f32.mrf.mxu0 }
  0xf6   : > { %v786_v44 = vmax.f32 %v754_v38, 0.0  ;;  %6173 = vmatprep.mubr.msk.bf16.mxu0 %vm1211_vm10, %v6887_v28  ;;  %6236 = vmatpush3.bf16.msra.mxu0 %v1954_v5  ;;  %v951_v58 = vsel %vm846_vm9, 0.0, %v858_v36  ;;  %v720_v61 = vmul.f32 %v6111_v50, %v6859_v32  ;;  %v950_v0 = vsel %vm846_vm9, 0.0, %v855_v40 }
  0xf7   : > { %v1034_v56 = vrot.slane %v1032_v41, 1  ;;  %v859_v59 = vrot.slane %v788_v43, 7  ;;  %v1039_v24 = vrot.slane %v1037_v42, 1  ;;  %v1046_v3 = vrot.slane %v1044_v57, 1  ;;  %v6112_v17 = vpop.f32.mrf.mxu0 }
  0xf8   : > { %v856_v60 = vrot.slane %v786_v44, 7  ;;  %v1042_v18 = vshrl.u32 %v6887_v28, 16  ;;  %v759_v20 = vadd.f32 %v6864_v34, %v720_v61  ;;  %v718_v21 = vmul.f32 %v6859_v32, %v608_v1 }
  0xf9   : > { %v1035_v2 = vor.u32 %v1034_v56, %v1030_v53  ;;  %v860_v4 = vsel %vm846_vm9, %v858_v36, %v859_v59  ;;  %v968_v5 = vsel %vm846_vm9, %v859_v59, 0.0  ;;  %v721_v22 = vmul.f32 %v6112_v17, %v6859_v32  ;;  %v611_v36 = vpop.f32.mrf.mxu0 }
  0xfa   : > { %v857_v9 = vsel %vm846_vm9, %v855_v40, %v856_v60  ;;  %v967_v10 = vsel %vm846_vm9, %v856_v60, 0.0  ;;  %v6915_v12 = vpack.c.bf16 %v860_v4, %v951_v58  ;;  %v6933_v27 = vpack.c.bf16 %v968_v5, %v968_v5 }
  0xfb   : > { %v6917_v13 = vpack.c.bf16 %v857_v9, %v950_v0  ;;  %v6919_v14 = vpack.c.bf16 %v967_v10, %v967_v10  ;;  %v6926_v25 = vsel %vm1016_vm11, %v1035_v2, %v1039_v24  ;;  %v1047_v37 = vor.u32 %v1046_v3, %v1042_v18 }
  0xfc   : > { %6136 = vmatmul.mubr.msk.bf16.vlgmr.msra.gmra.mxu1 %vm1211_vm10, %v6926_v25  ;;  %v1051_v38 = vrot.slane %v1049_v48, 1  ;;  %v791_v40 = vmax.f32 %v759_v20, 0.0  ;;  %v757_v41 = vadd.f32 %v6864_v34, %v718_v21  ;;  %v760_v42 = vadd.f32 %v6864_v34, %v721_v22 }
  0xfd   : > { %6174 = vmatmul.mubr.msk.bf16.gmra.mxu0 %vm1211_vm10, %v6917_v13  ;;  %v719_v43 = vmul.f32 %v6859_v32, %v611_v36  ;;  %6202 = vmatpush3.bf16.msra.mxu1 %v1753_v45  ;;  %v1056_v50 = vshll.u32 %v6917_v13, 16  ;;  %v1061_v48 = vshll.u32 %v6919_v14, 16  ;;  %v1073_v45 = vshll.u32 %v6933_v27, 16 }
  0xfe   : > { %6177 = vmatprep.mubr.msk.bf16.mxu0 %vm1211_vm10, %v6915_v12  ;;  %v6945_v44 = vsel %vm1016_vm11, %v1047_v37, %v1051_v38  ;;  %6464 = vmatprep.subr.msk.bf16.mxu1 %vm1260_vm8, %v6931_v26  ;;  %v864_v53 = vrot.slane %v791_v40, 7  ;;  %v789_v56 = vmax.f32 %v757_v41, 0.0  ;;  %v792_v57 = vmax.f32 %v760_v42, 0.0 }
  0xff   : > { %v758_v58 = vadd.f32 %v6864_v34, %v719_v43  ;;  %6139 = vmatprep.mubr.msk.bf16.mxu1 %vm1211_vm10, %v6945_v44  ;;  %v1054_v59 = vshrl.u32 %v6917_v13, 16  ;;  %v1058_v60 = vrot.slane %v1056_v50, 1  ;;  %v1068_v61 = vshll.u32 %v6915_v12, 16 }
 0x100   : > { %v861_v0 = vrot.slane %v789_v56, 7  ;;  %v865_v1 = vrot.slane %v792_v57, 7  ;;  %v1063_v3 = vrot.slane %v1061_v48, 1  ;;  %v1066_v4 = vshrl.u32 %v6915_v12, 16 }
 0x101   : > { %v790_v2 = vmax.f32 %v758_v58, 0.0  ;;  %v1059_v24 = vor.u32 %v1058_v60, %v1054_v59  ;;  %v1070_v5 = vrot.slane %v1068_v61, 1  ;;  %v953_v9 = vsel %vm846_vm9, 0.0, %v864_v53  ;;  %v6115_v59 = vpop.f32.mrf.mxu0 }
 0x102   : > { %v866_v10 = vsel %vm846_vm9, %v864_v53, %v865_v1  ;;  %v970_v17 = vsel %vm846_vm9, %v865_v1, 0.0  ;;  %v1075_v36 = vrot.slane %v1073_v45, 1  ;;  %v952_v37 = vsel %vm846_vm9, 0.0, %v861_v0 }
 0x103   : > { %v862_v18 = vrot.slane %v790_v2, 7  ;;  %v6961_v20 = vpack.c.bf16 %v866_v10, %v953_v9  ;;  %v6964_v21 = vsel %vm1016_vm11, %v1059_v24, %v1063_v3  ;;  %v1071_v22 = vor.u32 %v1070_v5, %v1066_v4  ;;  %v624_v2 = vpop.f32.mrf.mxu0 }
 0x104   : > { %v6967_v38 = vpack.c.bf16 %v970_v17, %v970_v17  ;;  %6140 = vmatmul.mubr.msk.bf16.gmra.mxu1 %vm1211_vm10, %v6964_v21  ;;  %v722_v5 = vmul.f32 %v6859_v32, %v624_v2 }
 0x105   : > { %v863_v40 = vsel %vm846_vm9, %v861_v0, %v862_v18  ;;  %v969_v41 = vsel %vm846_vm9, %v862_v18, 0.0  ;;  %v6978_v50 = vsel %vm1016_vm11, %v1071_v22, %v1075_v36  ;;  %v1092_v48 = vshll.u32 %v6961_v20, 16  ;;  %v6116_v10 = vpop.f32.mrf.mxu0 }
 0x106   : > { %v6973_v42 = vpack.c.bf16 %v863_v40, %v952_v37  ;;  %v6975_v43 = vpack.c.bf16 %v969_v41, %v969_v41  ;;  %6143 = vmatprep.mubr.msk.bf16.mxu1 %vm1211_vm10, %v6978_v50  ;;  %v1097_v57 = vshll.u32 %v6967_v38, 16  ;;  %v1090_v58 = vshrl.u32 %v6961_v20, 16 }
 0x107   : > { %v1094_v45 = vrot.slane %v1092_v48, 1  ;;  %v724_v0 = vmul.f32 %v6115_v59, %v6859_v32  ;;  %v761_v18 = vadd.f32 %v6864_v34, %v722_v5  ;;  %v725_v22 = vmul.f32 %v6116_v10, %v6859_v32  ;;  %v627_v40 = vpop.f32.mrf.mxu0 }
 0x108   : > { %6178 = vmatmul.mubr.msk.bf16.gmra.mxu0 %vm1211_vm10, %v6973_v42  ;;  %v1080_v53 = vshll.u32 %v6973_v42, 16  ;;  %v1085_v56 = vshll.u32 %v6975_v43, 16  ;;  %v1078_v60 = vshrl.u32 %v6973_v42, 16  ;;  %v1099_v9 = vrot.slane %v1097_v57, 1 }
 0x109   : > { %6181 = vmatprep.mubr.msk.bf16.mxu0 %vm1211_vm10, %v6961_v20  ;;  %v1095_v1 = vor.u32 %v1094_v45, %v1090_v58  ;;  %v763_v4 = vadd.f32 %v6864_v34, %v724_v0  ;;  %v793_v41 = vmax.f32 %v761_v18, 0.0  ;;  %v764_v48 = vadd.f32 %v6864_v34, %v725_v22  ;;  %v6119_v57 = vpop.f32.mrf.mxu0 }
 0x10a   : > { %v1082_v61 = vrot.slane %v1080_v53, 1  ;;  %v1087_v3 = vrot.slane %v1085_v56, 1  ;;  %v723_v53 = vmul.f32 %v6859_v32, %v627_v40  ;;  %v7012_v56 = vld [vmem:[%s9094_s2 + $0xa] sm:$0x3] }
 0x10b   : > { %v7003_v36 = vsel %vm1016_vm11, %v1095_v1, %v1099_v9  ;;  %v795_v37 = vmax.f32 %v763_v4, 0.0  ;;  %6465 = vmatprep.subr.msk.bf16.mxu0 %vm1260_vm8, %v7012_v56  ;;  %v796_v58 = vmax.f32 %v764_v48, 0.0  ;;  %v640_v0 = vpop.f32.mrf.mxu0 }
 0x10c   : > { %v1083_v24 = vor.u32 %v1082_v61, %v1078_v60  ;;  %v762_v45 = vadd.f32 %v6864_v34, %v723_v53  ;;  %v867_v60 = vrot.slane %v793_v41, 7  ;;  %v728_v61 = vmul.f32 %v6119_v57, %v6859_v32 }
 0x10d   : > { %v870_v59 = vrot.slane %v795_v37, 7  ;;  %v871_v1 = vrot.slane %v796_v58, 7  ;;  %v6120_v4 = vpop.f32.mrf.mxu0 }
 0x10e   : > { %v6996_v17 = vsel %vm1016_vm11, %v1083_v24, %v1087_v3  ;;  %v794_v2 = vmax.f32 %v762_v45, 0.0  ;;  %v726_v24 = vmul.f32 %v6859_v32, %v640_v0  ;;  %v767_v3 = vadd.f32 %v6864_v34, %v728_v61 }
 0x10f   : > { %6144 = vmatmul.mubr.msk.bf16.gmra.mxu1 %vm1211_vm10, %v6996_v17  ;;  %v872_v5 = vsel %vm846_vm9, %v870_v59, %v871_v1  ;;  %v972_v9 = vsel %vm846_vm9, %v871_v1, 0.0  ;;  %v955_v22 = vsel %vm846_vm9, 0.0, %v870_v59  ;;  %v954_v37 = vsel %vm846_vm9, 0.0, %v867_v60  ;;  %v643_v48 = vpop.f32.mrf.mxu0 }
 0x110   : > { %6147 = vmatprep.mubr.msk.bf16.mxu1 %vm1211_vm10, %v7003_v36  ;;  %v868_v10 = vrot.slane %v794_v2, 7  ;;  %v765_v18 = vadd.f32 %v6864_v34, %v726_v24  ;;  %v799_v40 = vmax.f32 %v767_v3, 0.0  ;;  %v729_v41 = vmul.f32 %v6120_v4, %v6859_v32 }
 0x111   : > { %v727_v45 = vmul.f32 %v6859_v32, %v643_v48  ;;  %v7029_v61 = vpack.c.bf16 %v872_v5, %v955_v22  ;;  %v7031_v0 = vpack.c.bf16 %v972_v9, %v972_v9 }
 0x112   : > { %v869_v53 = vsel %vm846_vm9, %v867_v60, %v868_v10  ;;  %v971_v57 = vsel %vm846_vm9, %v868_v10, 0.0  ;;  %v797_v58 = vmax.f32 %v765_v18, 0.0  ;;  %v876_v2 = vrot.slane %v799_v40, 7 }
 0x113   : > { %v7033_v1 = vpack.c.bf16 %v869_v53, %v954_v37  ;;  %v7035_v59 = vpack.c.bf16 %v971_v57, %v971_v57  ;;  %v768_v24 = vadd.f32 %v6864_v34, %v729_v41  ;;  %v766_v3 = vadd.f32 %v6864_v34, %v727_v45 }
 0x114   : > { %v873_v4 = vrot.slane %v797_v58, 7  ;;  %v1121_v18 = vshll.u32 %v7031_v0, 16  ;;  %v1116_v40 = vshll.u32 %v7029_v61, 16  ;;  %v957_v41 = vsel %vm846_vm9, 0.0, %v876_v2 }
 0x115   : > { %6182 = vmatmul.mubr.msk.bf16.gmra.mxu0 %vm1211_vm10, %v7033_v1  ;;  %v1104_v60 = vshll.u32 %v7033_v1, 16  ;;  %v1109_v5 = vshll.u32 %v7035_v59, 16  ;;  %v800_v10 = vmax.f32 %v768_v24, 0.0  ;;  %v798_v9 = vmax.f32 %v766_v3, 0.0 }
 0x116   : > { %6185 = vmatprep.mubr.msk.bf16.mxu0 %vm1211_vm10, %v7029_v61  ;;  %v1102_v22 = vshrl.u32 %v7033_v1, 16  ;;  %v1114_v57 = vshrl.u32 %v7029_v61, 16  ;;  %v956_v58 = vsel %vm846_vm9, 0.0, %v873_v4  ;;  %v1118_v3 = vrot.slane %v1116_v40, 1 }
 0x117   : > { %v1106_v37 = vrot.slane %v1104_v60, 1  ;;  %v877_v48 = vrot.slane %v800_v10, 7  ;;  %v874_v53 = vrot.slane %v798_v9, 7  ;;  %v1111_v24 = vrot.slane %v1109_v5, 1 }
 0x118   : > { %v1119_v5 = vor.u32 %v1118_v3, %v1114_v57 }
 0x119   : > { %v1107_v45 = vor.u32 %v1106_v37, %v1102_v22  ;;  %v878_v49 = vsel %vm846_vm9, %v876_v2, %v877_v48  ;;  %v974_v52 = vsel %vm846_vm9, %v877_v48, 0.0  ;;  %v875_v8 = vsel %vm846_vm9, %v873_v4, %v874_v53  ;;  %v6123_v2 = vpop.f32.mrf.mxu0 }
 0x11a   : > { %v973_v60 = vsel %vm846_vm9, %v874_v53, 0.0  ;;  %v7055_v6 = vpack.c.bf16 %v878_v49, %v957_v41  ;;  %v7057_v63 = vpack.c.bf16 %v974_v52, %v974_v52  ;;  %v7059_v10 = vpack.c.bf16 %v875_v8, %v956_v58 }
 0x11b   : > { %v7061_v9 = vpack.c.bf16 %v973_v60, %v973_v60  ;;  %v7064_v22 = vsel %vm1016_vm11, %v1107_v45, %v1111_v24  ;;  %v1123_v37 = vrot.slane %v1121_v18, 1  ;;  %v732_v52 = vmul.f32 %v6123_v2, %v6859_v32  ;;  %v656_v40 = vpop.f32.mrf.mxu0 }
 0x11c   : > { %6148 = vmatmul.mubr.msk.bf16.gmra.mxu1 %vm1211_vm10, %v7064_v22  ;;  %v1128_v49 = vshll.u32 %v7059_v10, 16  ;;  %v1145_v18 = vshll.u32 %v7057_v63, 16  ;;  %v1126_v41 = vshrl.u32 %v7059_v10, 16  ;;  %v1140_v53 = vshll.u32 %v7055_v6, 16 }
 0x11d   : > { %6186 = vmatmul.mubr.msk.bf16.gmra.mxu0 %vm1211_vm10, %v7059_v10  ;;  %v7073_v8 = vsel %vm1016_vm11, %v1119_v5, %v1123_v37  ;;  %v1133_v4 = vshll.u32 %v7061_v9, 16  ;;  %v771_v57 = vadd.f32 %v6864_v34, %v732_v52  ;;  %v730_v58 = vmul.f32 %v6859_v32, %v656_v40  ;;  %v6124_v45 = vpop.f32.mrf.mxu0 }
 0x11e   : > { %9096 = vst [vmem:[#allocation23_spill] sm:$0xff] %v7073_v8  ;;  %6189 = vmatprep.mubr.msk.bf16.mxu0 %vm1211_vm10, %v7055_v6  ;;  %6151 = vmatprep.mubr.msk.bf16.mxu1 %vm1211_vm10, %v7073_v8  ;;  %v1130_v48 = vrot.slane %v1128_v49, 1  ;;  %v1138_v60 = vshrl.u32 %v7055_v6, 16  ;;  %v1142_v5 = vrot.slane %v1140_v53, 1  ;;  %v733_v2 = vmul.f32 %v6124_v45, %v6859_v32 }
 0x11f   : > { %v1135_v3 = vrot.slane %v1133_v4, 1  ;;  %v769_v37 = vadd.f32 %v6864_v34, %v730_v58  ;;  %v803_v62 = vmax.f32 %v771_v57, 0.0  ;;  %v659_v55 = vpop.f32.mrf.mxu0  ;;  %v1147_v54 = vrot.slane %v1145_v18, 1 }
 0x120   : > { %v1131_v24 = vor.u32 %v1130_v48, %v1126_v41  ;;  %v1143_v47 = vor.u32 %v1142_v5, %v1138_v60  ;;  %v772_v40 = vadd.f32 %v6864_v34, %v733_v2  ;;  %v731_v41 = vmul.f32 %v6859_v32, %v659_v55 }
 0x121   : > { %v801_v52 = vmax.f32 %v769_v37, 0.0  ;;  %v882_v57 = vrot.slane %v803_v62, 7  ;;  %v6127_v18 = vpop.f32.mrf.mxu0 }
 0x122   : > { %v7089_v49 = vsel %vm1016_vm11, %v1131_v24, %v1135_v3  ;;  %v7096_v4 = vsel %vm1016_vm11, %v1143_v47, %v1147_v54  ;;  %v804_v48 = vmax.f32 %v772_v40, 0.0  ;;  %v770_v53 = vadd.f32 %v6864_v34, %v731_v41 }
 0x123   : > { %9097 = vst [vmem:[#allocation24_spill] sm:$0xff] %v7089_v49  ;;  %9098 = vst [vmem:[#allocation25_spill] sm:$0xff] %v7096_v4  ;;  %v879_v58 = vrot.slane %v801_v52, 7  ;;  %v736_v3 = vmul.f32 %v6127_v18, %v6859_v32  ;;  %v672_v55 = vpop.f32.mrf.mxu0  ;;  %v959_v37 = vsel %vm846_vm9, 0.0, %v882_v57 }
 0x124   : > { %6152 = vmatmul.mubr.msk.bf16.gmra.mxu1 %vm1211_vm10, %v7089_v49  ;;  %v883_v45 = vrot.slane %v804_v48, 7  ;;  %v802_v24 = vmax.f32 %v770_v53, 0.0  ;;  %v734_v62 = vmul.f32 %v6859_v32, %v672_v55 }
 0x125   : > { %6155 = vmatprep.mubr.msk.bf16.mxu1 %vm1211_vm10, %v7096_v4  ;;  %v775_v54 = vadd.f32 %v6864_v34, %v736_v3  ;;  %v958_v2 = vsel %vm846_vm9, 0.0, %v879_v58  ;;  %v6128_v52 = vpop.f32.mrf.mxu0 }
 0x126   : > { %v884_v60 = vsel %vm846_vm9, %v882_v57, %v883_v45  ;;  %v976_v5 = vsel %vm846_vm9, %v883_v45, 0.0  ;;  %v880_v47 = vrot.slane %v802_v24, 7  ;;  %v737_v53 = vmul.f32 %v6128_v52, %v6859_v32 }
 0x127   : > { %v807_v48 = vmax.f32 %v775_v54, 0.0  ;;  %v7111_v18 = vpack.c.bf16 %v884_v60, %v959_v37  ;;  %v7113_v45 = vpack.c.bf16 %v976_v5, %v976_v5  ;;  %v675_v57 = vpop.f32.mrf.mxu0  ;;  %v773_v46 = vadd.f32 %v6864_v34, %v734_v62 }
 0x128   : > { %v881_v40 = vsel %vm846_vm9, %v879_v58, %v880_v47  ;;  %v975_v41 = vsel %vm846_vm9, %v880_v47, 0.0  ;;  %v776_v55 = vadd.f32 %v6864_v34, %v737_v53  ;;  %v735_v58 = vmul.f32 %v6859_v32, %v675_v57 }
 0x129   : > { %v7115_v24 = vpack.c.bf16 %v881_v40, %v958_v2  ;;  %v7117_v3 = vpack.c.bf16 %v975_v41, %v975_v41  ;;  %v888_v5 = vrot.slane %v807_v48, 7  ;;  %v805_v54 = vmax.f32 %v773_v46, 0.0 }
 0x12a   : > { %v808_v37 = vmax.f32 %v776_v55, 0.0  ;;  %v774_v2 = vadd.f32 %v6864_v34, %v735_v58  ;;  %v1169_v62 = vshll.u32 %v7113_v45, 16  ;;  %v1164_v41 = vshll.u32 %v7111_v18, 16 }
 0x12b   : > { %6190 = vmatmul.mubr.msk.bf16.gmra.mxu0 %vm1211_vm10, %v7115_v24  ;;  %v1152_v47 = vshll.u32 %v7115_v24, 16  ;;  %v1157_v60 = vshll.u32 %v7117_v3, 16  ;;  %v1150_v52 = vshrl.u32 %v7115_v24, 16  ;;  %v885_v53 = vrot.slane %v805_v54, 7 }
 0x12c   : > { %6193 = vmatprep.mubr.msk.bf16.mxu0 %vm1211_vm10, %v7111_v18  ;;  %v889_v57 = vrot.slane %v808_v37, 7  ;;  %v806_v51 = vmax.f32 %v774_v2, 0.0  ;;  %v1162_v46 = vshrl.u32 %v7111_v18, 16  ;;  %v1166_v48 = vrot.slane %v1164_v41, 1  ;;  %v6131_v41 = vpop.f32.mrf.mxu0 }
 0x12d   : > { %v1154_v40 = vrot.slane %v1152_v47, 1  ;;  %v1159_v16 = vrot.slane %v1157_v60, 1  ;;  %v961_v55 = vsel %vm846_vm9, 0.0, %v888_v5  ;;  %v1171_v37 = vrot.slane %v1169_v62, 1 }
 0x12e   : > { %v890_v58 = vsel %vm846_vm9, %v888_v5, %v889_v57  ;;  %v978_v15 = vsel %vm846_vm9, %v889_v57, 0.0  ;;  %v886_v11 = vrot.slane %v806_v51, 7  ;;  %v1167_v54 = vor.u32 %v1166_v48, %v1162_v46 }
 0x12f   : > { %v1155_v39 = vor.u32 %v1154_v40, %v1150_v52  ;;  %v7136_v30 = vpack.c.bf16 %v890_v58, %v961_v55  ;;  %v960_v2 = vsel %vm846_vm9, 0.0, %v885_v53  ;;  %v7142_v60 = vpack.c.bf16 %v978_v15, %v978_v15 }
 0x130   : > { %v887_v52 = vsel %vm846_vm9, %v885_v53, %v886_v11  ;;  %v977_v40 = vsel %vm846_vm9, %v886_v11, 0.0  ;;  %v7154_v62 = vsel %vm1016_vm11, %v1167_v54, %v1171_v37 }
 0x131   : > { %v7139_v47 = vsel %vm1016_vm11, %v1155_v39, %v1159_v16  ;;  %v7148_v51 = vpack.c.bf16 %v887_v52, %v960_v2  ;;  %v7150_v5 = vpack.c.bf16 %v977_v40, %v977_v40  ;;  %v740_v16 = vmul.f32 %v6131_v41, %v6859_v32  ;;  %v688_v39 = vpop.f32.mrf.mxu0  ;;  %9100 = vst [vmem:[#allocation27_spill] sm:$0xff] %v7154_v62 }
 0x132   : > { %9099 = vst [vmem:[#allocation26_spill] sm:$0xff] %v7139_v47  ;;  %6156 = vmatmul.mubr.msk.bf16.gmra.mxu1 %vm1211_vm10, %v7139_v47  ;;  %v1188_v15 = vshll.u32 %v7136_v30, 16  ;;  %v738_v53 = vmul.f32 %v6859_v32, %v688_v39  ;;  %v1193_v46 = vshll.u32 %v7142_v60, 16  ;;  %v1186_v58 = vshrl.u32 %v7136_v30, 16 }
 0x133   : > { %6159 = vmatprep.mubr.msk.bf16.mxu1 %vm1211_vm10, %v7154_v62  ;;  %6194 = vmatmul.mubr.msk.bf16.gmra.mxu0 %vm1211_vm10, %v7148_v51  ;;  %v1176_v11 = vshll.u32 %v7148_v51, 16  ;;  %v1181_v57 = vshll.u32 %v7150_v5, 16  ;;  %v779_v48 = vadd.f32 %v6864_v34, %v740_v16  ;;  %v6132_v55 = vpop.f32.mrf.mxu0  ;;  %v1174_v52 = vshrl.u32 %v7148_v51, 16 }
 0x134   : > { %6197 = vmatprep.mubr.msk.bf16.mxu0 %vm1211_vm10, %v7136_v30  ;;  %v1190_v54 = vrot.slane %v1188_v15, 1  ;;  %v777_v37 = vadd.f32 %v6864_v34, %v738_v53  ;;  %v741_v2 = vmul.f32 %v6132_v55, %v6859_v32  ;;  %v1195_v49 = vrot.slane %v1193_v46, 1 }
 0x135   : > { %v1178_v40 = vrot.slane %v1176_v11, 1  ;;  %v811_v41 = vmax.f32 %v779_v48, 0.0  ;;  %v691_v39 = vpop.f32.mrf.mxu0  ;;  %v1183_v7 = vrot.slane %v1181_v57, 1 }
 0x136   : > { %v1191_v29 = vor.u32 %v1190_v54, %v1186_v58  ;;  %v809_v62 = vmax.f32 %v777_v37, 0.0  ;;  %v780_v16 = vadd.f32 %v6864_v34, %v741_v2  ;;  %v739_v47 = vmul.f32 %v6859_v32, %v691_v39 }
 0x137   : > { %v1179_v4 = vor.u32 %v1178_v40, %v1174_v52  ;;  %v894_v8 = vrot.slane %v811_v41, 7  ;;  %v1654_v37 = vrot.slane %v6830_v19, 1  ;;  %v1655_v2 = vrot.slane %v6837_v23, 1  ;;  %v7221_v23 = vld [vmem:[%s9094_s2 + $0xe] sm:$0x3] }
 0x138   : > { %v812_v15 = vmax.f32 %v780_v16, 0.0  ;;  %v778_v53 = vadd.f32 %v6864_v34, %v739_v47  ;;  %v7181_v11 = vsel %vm1016_vm11, %v1191_v29, %v1195_v49  ;;  %v891_v57 = vrot.slane %v809_v62, 7 }
 0x139   : > { %v7176_v55 = vsel %vm1016_vm11, %v1179_v4, %v1183_v7  ;;  %v963_v32 = vsel %vm846_vm9, 0.0, %v894_v8  ;;  %v7209_v16 = vsel %vm1653_vm12, %v1654_v37, %v1655_v2  ;;  %v1672_v37 = vrot.slane %v6961_v20, 1 }
 0x13a   : > { %6160 = vmatmul.mubr.msk.bf16.gmra.mxu1 %vm1211_vm10, %v7176_v55  ;;  %v7183_v48 = vrot.slane %v812_v15, 7  ;;  %v810_v58 = vmax.f32 %v778_v53, 0.0  ;;  %v962_v47 = vsel %vm846_vm9, 0.0, %v891_v57  ;;  %9101 = vst [vmem:[#allocation28_spill] sm:$0xff] %v7209_v16  ;;  %v2372_v53 = vsel %vm1260_vm8, %v7012_v56, 0 }
 0x13b   : > { %6163 = vmatprep.mubr.msk.bf16.mxu1 %vm1211_vm10, %v7181_v11  ;;  %v1658_v56 = vrot.slane %v6893_v35, 1  ;;  %v1664_v35 = vrot.slane %v6919_v14, 1  ;;  %v1669_v14 = vrot.slane %v6973_v42, 1 }
 0x13c   : > { %v896_v34 = vsel %vm846_vm9, %v894_v8, %v7183_v48  ;;  %v892_v7 = vrot.slane %v810_v58, 7  ;;  %v1661_v58 = vrot.slane %v6889_v31, 1  ;;  %v1663_v31 = vrot.slane %v6917_v13, 1 }
 0x13d   : > { %v7190_v4 = vpack.c.bf16 %v896_v34, %v963_v32  ;;  %v1660_v32 = vrot.slane %v6887_v28, 1  ;;  %v2166_v34 = vsel %vm1260_vm8, %v6931_v26, 0  ;;  %v1667_v26 = vrot.slane %v6933_v27, 1 }
 0x13e   : > { %v893_v29 = vsel %vm846_vm9, %v891_v57, %v892_v7  ;;  %v979_v49 = vsel %vm846_vm9, %v892_v7, 0.0  ;;  %v1657_v57 = vrot.slane %v6891_v33, 1  ;;  %v1670_v27 = vrot.slane %v6975_v43, 1 }
 0x13f   : > { %v7195_v62 = vpack.c.bf16 %v893_v29, %v962_v47  ;;  %v7197_v46 = vpack.c.bf16 %v979_v49, %v979_v49  ;;  %v7243_v47 = vld [vmem:[%s9094_s2 + $0xc] sm:$0x3]  ;;  %v1666_v29 = vrot.slane %v6915_v12, 1  ;;  %v7263_v49 = vsel %vm1653_vm12, %v1663_v31, %v1664_v35 }
 0x140   : > { %v7238_v7 = vsel %vm1653_vm12, %v1657_v57, %v1658_v56  ;;  %v7281_v2 = vsel %vm1653_vm12, %v1669_v14, %v1670_v27  ;;  %v1676_v43 = vrot.slane %v7035_v59, 1  ;;  %v1682_v59 = vrot.slane %v7061_v9, 1 }
 0x141   : > { %6198 = vmatmul.mubr.msk.bf16.gmra.mxu0 %vm1211_vm10, %v7195_v62  ;;  %v1200_v54 = vshll.u32 %v7195_v62, 16  ;;  %v1205_v8 = vshll.u32 %v7197_v46, 16  ;;  %v1198_v52 = vshrl.u32 %v7195_v62, 16  ;;  %v1685_v56 = vrot.slane %v7057_v63, 1 }
 0x142   : > { %6237 = vmatprep.mubr.msk.bf16.mxu0 %vm1211_vm10, %v6891_v33  ;;  %v7248_v33 = vsel %vm1653_vm12, %v1660_v32, %v1661_v58  ;;  %v1684_v57 = vrot.slane %v7055_v6, 1  ;;  %v1687_v63 = vrot.slane %v7115_v24, 1  ;;  %v1688_v9 = vrot.slane %v7117_v3, 1 }
 0x143   : > { %v1202_v40 = vrot.slane %v1200_v54, 1  ;;  %v1207_v39 = vrot.slane %v1205_v8, 1  ;;  %v7268_v54 = vsel %vm1653_vm12, %v1666_v29, %v1667_v26  ;;  %v1673_v8 = vrot.slane %v6967_v38, 1 }
 0x144   : > { %v1675_v38 = vrot.slane %v7033_v1, 1  ;;  %v7322_v32 = vsel %vm1653_vm12, %v1684_v57, %v1685_v56  ;;  %v1690_v31 = vrot.slane %v7111_v18, 1  ;;  %v7335_v35 = vsel %vm1653_vm12, %v1687_v63, %v1688_v9  ;;  %v9111_v57 = vld [vmem:[#allocation25_spill] sm:$0xff] }
 0x145   : > { %v1203_v41 = vor.u32 %v1202_v40, %v1198_v52  ;;  %v7286_v52 = vsel %vm1653_vm12, %v1672_v37, %v1673_v8  ;;  %v1679_v40 = vrot.slane %v7031_v0, 1  ;;  %v1681_v0 = vrot.slane %v7059_v10, 1  ;;  %9103 = vst [vmem:[#allocation30_spill] sm:$0xff] %v7322_v32  ;;  %9104 = vst [vmem:[#allocation31_spill] sm:$0xff] %v7335_v35 }
 0x146   : > { %v1694_v3 = vrot.slane %v7150_v5, 1  ;;  %v1697_v29 = vrot.slane %v7142_v60, 1  ;;  %v1696_v14 = vrot.slane %v7136_v30, 1  ;;  %v1699_v60 = vrot.slane %v7195_v62, 1 }
 0x147   : > { %v7212_v15 = vsel %vm1016_vm11, %v1203_v41, %v1207_v39  ;;  %v1678_v41 = vrot.slane %v7029_v61, 1  ;;  %v7299_v39 = vsel %vm1653_vm12, %v1675_v38, %v1676_v43  ;;  %v7317_v58 = vsel %vm1653_vm12, %v1681_v0, %v1682_v59  ;;  %v9110_v43 = vld [vmem:[#allocation24_spill] sm:$0xff] }
 0x148   : > { %6164 = vmatmul.mubr.msk.bf16.gmra.mxu1 %vm1211_vm10, %v7212_v15  ;;  %9102 = vst [vmem:[#allocation29_spill] sm:$0xff] %v7317_v58  ;;  %v7358_v8 = vsel %vm1653_vm12, %v1696_v14, %v1697_v29  ;;  %v1700_v5 = vrot.slane %v7197_v46, 1  ;;  %v2768_v38 = vsel %vm1260_vm8, %v7221_v23, 0  ;;  %v2570_v46 = vsel %vm1260_vm8, %v7243_v47, 0 }
 0x149   : > { %6238 = vmatmul.mubr.msk.bf16.vlgmr.msra.gmra.mxu0 %vm1211_vm10, %v6887_v28  ;;  %6203 = vmatprep.mubr.msk.bf16.mxu1 %vm1211_vm10, %v7209_v16  ;;  %9107 = vst [vmem:[#allocation34_spill] sm:$0xff] %v7358_v8 }
 0x14a   : > { %6241 = vmatprep.mubr.msk.bf16.mxu0 %vm1211_vm10, %v6917_v13  ;;  %6304 = vmatpush3.bf16.msra.mxu0 %v2372_v53  ;;  %v7304_v53 = vsel %vm1653_vm12, %v1678_v41, %v1679_v40  ;;  %v7369_v37 = vsel %vm1653_vm12, %v1699_v60, %v1700_v5  ;;  %v980_v5 = vsel %vm846_vm9, %v7183_v48, 0.0  ;;  %v2151_v48 = vshll.u32 %v7190_v4, 16 }
 0x14b   : > { %6467 = vmatprep.subr.msk.bf16.mxu0 %vm1260_vm8, %v7221_v23  ;;  %9108 = vst [vmem:[#allocation35_spill] sm:$0xff] %v7369_v37  ;;  %v9109_v23 = vld [vmem:[#allocation23_spill] sm:$0xff] }
 0x150   : > { %6204 = vmatmul.mubr.msk.bf16.vlgmr.msra.gmra.mxu1 %vm1211_vm10, %v7238_v7 }
 0x151   : > { %6270 = vmatpush3.bf16.msra.mxu1 %v2166_v34  ;;  %6207 = vmatprep.mubr.msk.bf16.mxu1 %vm1211_vm10, %v7248_v33  ;;  %v1691_v34 = vrot.slane %v7113_v45, 1  ;;  %v1693_v45 = vrot.slane %v7148_v51, 1 }
 0x152   : > { %6242 = vmatmul.mubr.msk.bf16.gmra.mxu0 %vm1211_vm10, %v6915_v12  ;;  %6466 = vmatprep.subr.msk.bf16.mxu1 %vm1260_vm8, %v7243_v47 }
 0x153   : > { %6245 = vmatprep.mubr.msk.bf16.mxu0 %vm1211_vm10, %v6973_v42  ;;  %v7340_v26 = vsel %vm1653_vm12, %v1690_v31, %v1691_v34  ;;  %v7353_v27 = vsel %vm1653_vm12, %v1693_v45, %v1694_v3  ;;  %v9112_v34 = vld [vmem:[#allocation26_spill] sm:$0xff] }
 0x154   : > { %9105 = vst [vmem:[#allocation32_spill] sm:$0xff] %v7340_v26  ;;  %9106 = vst [vmem:[#allocation33_spill] sm:$0xff] %v7353_v27 }
 0x158   : > { %6208 = vmatmul.mubr.msk.bf16.gmra.mxu1 %vm1211_vm10, %v7263_v49 }
 0x159   : > { %6211 = vmatprep.mubr.msk.bf16.mxu1 %vm1211_vm10, %v7268_v54 }
 0x15a   : > { %6246 = vmatmul.mubr.msk.bf16.gmra.mxu0 %vm1211_vm10, %v6961_v20 }
 0x15b   : > { %6249 = vmatprep.mubr.msk.bf16.mxu0 %vm1211_vm10, %v7033_v1 }
 0x160   : > { %6212 = vmatmul.mubr.msk.bf16.gmra.mxu1 %vm1211_vm10, %v7281_v2 }
 0x161   : > { %6215 = vmatprep.mubr.msk.bf16.mxu1 %vm1211_vm10, %v7286_v52 }
 0x162   : > { %6250 = vmatmul.mubr.msk.bf16.gmra.mxu0 %vm1211_vm10, %v7029_v61 }
 0x163   : > { %6253 = vmatprep.mubr.msk.bf16.mxu0 %vm1211_vm10, %v7059_v10 }
 0x168   : > { %6216 = vmatmul.mubr.msk.bf16.gmra.mxu1 %vm1211_vm10, %v7299_v39 }
 0x169   : > { %6219 = vmatprep.mubr.msk.bf16.mxu1 %vm1211_vm10, %v7304_v53 }
 0x16a   : > { %6254 = vmatmul.mubr.msk.bf16.gmra.mxu0 %vm1211_vm10, %v7055_v6 }
 0x16b   : > { %6257 = vmatprep.mubr.msk.bf16.mxu0 %vm1211_vm10, %v7115_v24 }
 0x170   : > { %6220 = vmatmul.mubr.msk.bf16.gmra.mxu1 %vm1211_vm10, %v7317_v58 }
 0x171   : > { %6223 = vmatprep.mubr.msk.bf16.mxu1 %vm1211_vm10, %v7322_v32 }
 0x172   : > { %6258 = vmatmul.mubr.msk.bf16.gmra.mxu0 %vm1211_vm10, %v7111_v18 }
 0x173   : > { %6261 = vmatprep.mubr.msk.bf16.mxu0 %vm1211_vm10, %v7148_v51 }
 0x178   : > { %6224 = vmatmul.mubr.msk.bf16.gmra.mxu1 %vm1211_vm10, %v7335_v35 }
 0x179   : > { %6227 = vmatprep.mubr.msk.bf16.mxu1 %vm1211_vm10, %v7340_v26 }
 0x17a   : > { %6262 = vmatmul.mubr.msk.bf16.gmra.mxu0 %vm1211_vm10, %v7136_v30 }
 0x17b   : > { %6265 = vmatprep.mubr.msk.bf16.mxu0 %vm1211_vm10, %v7195_v62 }
 0x180   : > { %6228 = vmatmul.mubr.msk.bf16.gmra.mxu1 %vm1211_vm10, %v7353_v27 }
 0x181   : > { %6231 = vmatprep.mubr.msk.bf16.mxu1 %vm1211_vm10, %v7358_v8 }
 0x182   : > { %6266 = vmatmul.mubr.msk.bf16.gmra.mxu0 %vm1211_vm10, %v7190_v4 }
 0x183   : > { %6305 = vmatprep.mubr.msk.bf16.mxu0 %vm1211_vm10, %v7238_v7  ;;  %v7386_v7 = vld [vmem:[%s9094_s2 + $0x10] sm:$0x3] }
 0x188   : > { %6232 = vmatmul.mubr.msk.bf16.gmra.mxu1 %vm1211_vm10, %v7369_v37 }
 0x189   : > { %6271 = vmatprep.mubr.msk.bf16.mxu1 %vm1211_vm10, %v6926_v25 }
 0x18a   : > { %6306 = vmatmul.mubr.msk.bf16.vlgmr.msra.gmra.mxu0 %vm1211_vm10, %v7248_v33 }
 0x18b   : > { %6309 = vmatprep.mubr.msk.bf16.mxu0 %vm1211_vm10, %v7263_v49  ;;  %6372 = vmatpush3.bf16.msra.mxu0 %v2768_v38 }
 0x190   : > { %6272 = vmatmul.mubr.msk.bf16.vlgmr.msra.gmra.mxu1 %vm1211_vm10, %v6945_v44 }
 0x191   : > { %6338 = vmatpush3.bf16.msra.mxu1 %v2570_v46  ;;  %6275 = vmatprep.mubr.msk.bf16.mxu1 %vm1211_vm10, %v6964_v21 }
 0x192   : > { %6310 = vmatmul.mubr.msk.bf16.gmra.mxu0 %vm1211_vm10, %v7268_v54  ;;  %6468 = vmatprep.subr.msk.bf16.mxu1 %vm1260_vm8, %v7386_v7 }
 0x193   : > { %6313 = vmatprep.mubr.msk.bf16.mxu0 %vm1211_vm10, %v7281_v2 }
 0x198   : > { %6276 = vmatmul.mubr.msk.bf16.gmra.mxu1 %vm1211_vm10, %v6978_v50 }
 0x199   : > { %6279 = vmatprep.mubr.msk.bf16.mxu1 %vm1211_vm10, %v6996_v17 }
 0x19a   : > { %6314 = vmatmul.mubr.msk.bf16.gmra.mxu0 %vm1211_vm10, %v7286_v52 }
 0x19b   : > { %6317 = vmatprep.mubr.msk.bf16.mxu0 %vm1211_vm10, %v7299_v39 }
 0x1a0   : > { %6280 = vmatmul.mubr.msk.bf16.gmra.mxu1 %vm1211_vm10, %v7003_v36 }
 0x1a1   : > { %6283 = vmatprep.mubr.msk.bf16.mxu1 %vm1211_vm10, %v7064_v22 }
 0x1a2   : > { %6318 = vmatmul.mubr.msk.bf16.gmra.mxu0 %vm1211_vm10, %v7304_v53 }
 0x1a3   : > { %6321 = vmatprep.mubr.msk.bf16.mxu0 %vm1211_vm10, %v7317_v58 }
 0x1a8   : > { %6284 = vmatmul.mubr.msk.bf16.gmra.mxu1 %vm1211_vm10, %v9109_v23 }
 0x1a9   : > { %6287 = vmatprep.mubr.msk.bf16.mxu1 %vm1211_vm10, %v9110_v43 }
 0x1aa   : > { %6322 = vmatmul.mubr.msk.bf16.gmra.mxu0 %vm1211_vm10, %v7322_v32 }
 0x1ab   : > { %6325 = vmatprep.mubr.msk.bf16.mxu0 %vm1211_vm10, %v7335_v35 }
 0x1b0   : > { %6288 = vmatmul.mubr.msk.bf16.gmra.mxu1 %vm1211_vm10, %v9111_v57 }
 0x1b1   : > { %6291 = vmatprep.mubr.msk.bf16.mxu1 %vm1211_vm10, %v9112_v34 }
 0x1b2   : > { %6326 = vmatmul.mubr.msk.bf16.gmra.mxu0 %vm1211_vm10, %v7340_v26 }
 0x1b3   : > { %6329 = vmatprep.mubr.msk.bf16.mxu0 %vm1211_vm10, %v7353_v27  ;;  %v2153_v27 = vrot.slane %v2151_v48, 1 }
 0x1b5   : > { %v6171_v25 = vpop.f32.mrf.mxu0 }
 0x1b7   : > { %v1494_v47 = vpop.f32.mrf.mxu0 }
 0x1b9   : > { %v6172_v40 = vpop.f32.mrf.mxu0 }
 0x1ba   : > { %6330 = vmatmul.mubr.msk.bf16.gmra.mxu0 %vm1211_vm10, %v7358_v8 }
 0x1bb   : > { %v1497_v41 = vpop.f32.mrf.mxu0  ;;  %6333 = vmatprep.mubr.msk.bf16.mxu0 %vm1211_vm10, %v7369_v37 }
 0x1bc   : > { %v6137_v0 = vpop.f32.mrf.mxu1 }
 0x1bd   : > { %v6175_v59 = vpop.f32.mrf.mxu0  ;;  %v7422_v56 = vadd.f32 %v6171_v25, %v6137_v0  ;;  %v9113_v25 = vld [vmem:[#allocation27_spill] sm:$0xff]  ;;  %v1014_v0 = vpack.c.bf16 %v980_v5, %v980_v5  ;;  %v2363_v5 = vrot.slane %v7190_v4, 1 }
 0x1be   : > { %v1298_v63 = vpop.f32.mrf.mxu1  ;;  %6292 = vmatmul.mubr.msk.bf16.gmra.mxu1 %vm1211_vm10, %v9113_v25 }
 0x1bf   : > { %v1510_v9 = vpop.f32.mrf.mxu0  ;;  %v7428_v31 = vadd.f32 %v1494_v47, %v1298_v63  ;;  %6295 = vmatprep.mubr.msk.bf16.mxu1 %vm1211_vm10, %v7176_v55 }
 0x1c0   : > { %v6138_v45 = vpop.f32.mrf.mxu1 }
 0x1c1   : > { %v7434_v3 = vadd.f32 %v6172_v40, %v6138_v45  ;;  %v6176_v29 = vpop.f32.mrf.mxu0 }
 0x1c2   : > { %v1301_v14 = vpop.f32.mrf.mxu1 }
 0x1c3   : > { %v7436_v60 = vadd.f32 %v1497_v41, %v1301_v14  ;;  %v1513_v38 = vpop.f32.mrf.mxu0 }
 0x1c4   : > { %v6141_v46 = vpop.f32.mrf.mxu1 }
 0x1c5   : > { %v7442_v47 = vadd.f32 %v6175_v59, %v6141_v46  ;;  %v2364_v59 = vrot.slane %v1014_v0, 1 }
 0x1c6   : > { %v1314_v40 = vpop.f32.mrf.mxu1  ;;  %6296 = vmatmul.mubr.msk.bf16.gmra.mxu1 %vm1211_vm10, %v7181_v11 }
 0x1c7   : > { %v7448_v41 = vadd.f32 %v1510_v9, %v1314_v40  ;;  %v2156_v9 = vshll.u32 %v1014_v0, 16  ;;  %6299 = vmatprep.mubr.msk.bf16.mxu1 %vm1211_vm10, %v7212_v15  ;;  %v7463_v40 = vsel %vm1653_vm12, %v2363_v5, %v2364_v59 }
 0x1c8   : > { %v6179_v63 = vpop.f32.mrf.mxu0  ;;  %v6142_v45 = vpop.f32.mrf.mxu1  ;;  %6334 = vmatmul.mubr.msk.bf16.gmra.mxu0 %vm1211_vm10, %v7463_v40 }
 0x1c9   : > { %v7453_v14 = vadd.f32 %v6176_v29, %v6142_v45  ;;  %v2149_v29 = vshrl.u32 %v7190_v4, 16  ;;  %6373 = vmatprep.mubr.msk.bf16.mxu0 %vm1211_vm10, %v6945_v44  ;;  %v2158_v8 = vrot.slane %v2156_v9, 1  ;;  %v2966_v44 = vsel %vm1260_vm8, %v7386_v7, 0 }
 0x1ca   : > { %v1317_v46 = vpop.f32.mrf.mxu1  ;;  %v1526_v26 = vpop.f32.mrf.mxu0 }
 0x1cb   : > { %v7456_v16 = vadd.f32 %v1513_v38, %v1317_v46  ;;  %v2154_v48 = vor.u32 %v2153_v27, %v2149_v29 }
 0x1cc   : > { %v6180_v46 = vpop.f32.mrf.mxu0 }
 0x1cd   : > { %v7477_v5 = vsel %vm1016_vm11, %v2154_v48, %v2158_v8 }
 0x1ce   : > { %v1529_v32 = vpop.f32.mrf.mxu0  ;;  %6300 = vmatmul.mubr.msk.bf16.gmra.mxu1 %vm1211_vm10, %v7477_v5 }
 0x1cf   : > { %v6145_v45 = vpop.f32.mrf.mxu1  ;;  %6339 = vmatprep.mubr.msk.bf16.mxu1 %vm1211_vm10, %v6887_v28 }
 0x1d0   : > { %v7468_v38 = vadd.f32 %v6179_v63, %v6145_v45  ;;  %6374 = vmatmul.mubr.msk.bf16.vlgmr.msra.gmra.mxu0 %vm1211_vm10, %v6964_v21 }
 0x1d1   : > { %v1330_v0 = vpop.f32.mrf.mxu1  ;;  %6377 = vmatprep.mubr.msk.bf16.mxu0 %vm1211_vm10, %v6978_v50 }
 0x1d2   : > { %v7472_v37 = vadd.f32 %v1526_v26, %v1330_v0 }
 0x1d3   : > { %v6146_v35 = vpop.f32.mrf.mxu1 }
 0x1d4   : > { %v7474_v59 = vadd.f32 %v6180_v46, %v6146_v35 }
 0x1d5   : > { %v1333_v58 = vpop.f32.mrf.mxu1  ;;  %v6183_v35 = vpop.f32.mrf.mxu0 }
 0x1d6   : > { %v7481_v63 = vadd.f32 %v1529_v32, %v1333_v58  ;;  %6340 = vmatmul.mubr.msk.bf16.vlgmr.msra.gmra.mxu1 %vm1211_vm10, %v6917_v13 }
 0x1d7   : > { %v1542_v26 = vpop.f32.mrf.mxu0  ;;  %6406 = vmatpush3.bf16.msra.mxu1 %v2966_v44  ;;  %6343 = vmatprep.mubr.msk.bf16.mxu1 %vm1211_vm10, %v6915_v12 }
 0x1d8   : > { %6378 = vmatmul.mubr.msk.bf16.gmra.mxu0 %vm1211_vm10, %v6996_v17 }
 0x1d9   : > { %v6184_v28 = vpop.f32.mrf.mxu0  ;;  %6381 = vmatprep.mubr.msk.bf16.mxu0 %vm1211_vm10, %v7003_v36 }
 0x1db   : > { %v1545_v21 = vpop.f32.mrf.mxu0 }
 0x1dc   : > { %v6149_v50 = vpop.f32.mrf.mxu1 }
 0x1dd   : > { %v7499_v58 = vadd.f32 %v6183_v35, %v6149_v50  ;;  %v6187_v13 = vpop.f32.mrf.mxu0 }
 0x1de   : > { %6344 = vmatmul.mubr.msk.bf16.gmra.mxu1 %vm1211_vm10, %v6973_v42  ;;  %v1346_v32 = vpop.f32.mrf.mxu1 }
 0x1df   : > { %6347 = vmatprep.mubr.msk.bf16.mxu1 %vm1211_vm10, %v6961_v20  ;;  %v7505_v12 = vadd.f32 %v1542_v26, %v1346_v32  ;;  %v1558_v27 = vpop.f32.mrf.mxu0 }
 0x1e0   : > { %6382 = vmatmul.mubr.msk.bf16.gmra.mxu0 %vm1211_vm10, %v7064_v22  ;;  %v6150_v17 = vpop.f32.mrf.mxu1 }
 0x1e1   : > { %6385 = vmatprep.mubr.msk.bf16.mxu0 %vm1211_vm10, %v9109_v23  ;;  %v7511_v36 = vadd.f32 %v6184_v28, %v6150_v17  ;;  %v6188_v20 = vpop.f32.mrf.mxu0 }
 0x1e2   : > { %v1349_v8 = vpop.f32.mrf.mxu1 }
 0x1e3   : > { %v7513_v7 = vadd.f32 %v1545_v21, %v1349_v8  ;;  %v7529_v48 = vpop.f32.mrf.mxu0 }
 0x1e4   : > { %v6153_v42 = vpop.f32.mrf.mxu1 }
 0x1e5   : > { %v7515_v9 = vadd.f32 %v6187_v13, %v6153_v42 }
 0x1e6   : > { %6348 = vmatmul.mubr.msk.bf16.gmra.mxu1 %vm1211_vm10, %v7033_v1  ;;  %v1362_v29 = vpop.f32.mrf.mxu1 }
 0x1e7   : > { %6351 = vmatprep.mubr.msk.bf16.mxu1 %vm1211_vm10, %v7029_v61  ;;  %v7521_v22 = vadd.f32 %v1558_v27, %v1362_v29 }
 0x1e8   : > { %6386 = vmatmul.mubr.msk.bf16.gmra.mxu0 %vm1211_vm10, %v9110_v43  ;;  %v6154_v23 = vpop.f32.mrf.mxu1 }
 0x1e9   : > { %6389 = vmatprep.mubr.msk.bf16.mxu0 %vm1211_vm10, %v9111_v57  ;;  %v7527_v45 = vadd.f32 %v6188_v20, %v6154_v23 }
 0x1ea   : > { %v7539_v43 = vpop.f32.mrf.mxu1 }
 0x1eb   : > { %v6191_v1 = vpop.f32.mrf.mxu0 }
 0x1ed   : > { %v1574_v61 = vpop.f32.mrf.mxu0 }
 0x1ee   : > { %6352 = vmatmul.mubr.msk.bf16.gmra.mxu1 %vm1211_vm10, %v7059_v10 }
 0x1ef   : > { %6355 = vmatprep.mubr.msk.bf16.mxu1 %vm1211_vm10, %v7055_v6  ;;  %v6192_v57 = vpop.f32.mrf.mxu0 }
 0x1f0   : > { %6390 = vmatmul.mubr.msk.bf16.gmra.mxu0 %vm1211_vm10, %v9112_v34 }
 0x1f1   : > { %6393 = vmatprep.mubr.msk.bf16.mxu0 %vm1211_vm10, %v9113_v25  ;;  %v7541_v46 = vpop.f32.mrf.mxu0 }
 0x1f2   : > { %v6157_v0 = vpop.f32.mrf.mxu1 }
 0x1f3   : > { %v7545_v10 = vadd.f32 %v6191_v1, %v6157_v0  ;;  %v6195_v34 = vpop.f32.mrf.mxu0 }
 0x1f4   : > { %v1378_v6 = vpop.f32.mrf.mxu1 }
 0x1f5   : > { %v7551_v25 = vadd.f32 %v1574_v61, %v1378_v6  ;;  %v1590_v26 = vpop.f32.mrf.mxu0 }
 0x1f6   : > { %6356 = vmatmul.mubr.msk.bf16.gmra.mxu1 %vm1211_vm10, %v7115_v24  ;;  %v6158_v44 = vpop.f32.mrf.mxu1 }
 0x1f7   : > { %6359 = vmatprep.mubr.msk.bf16.mxu1 %vm1211_vm10, %v7111_v18  ;;  %v7555_v35 = vadd.f32 %v6192_v57, %v6158_v44  ;;  %v6196_v18 = vpop.f32.mrf.mxu0 }
 0x1f8   : > { %6394 = vmatmul.mubr.msk.bf16.gmra.mxu0 %vm1211_vm10, %v7176_v55  ;;  %v7557_v24 = vpop.f32.mrf.mxu1 }
 0x1f9   : > { %6397 = vmatprep.mubr.msk.bf16.mxu0 %vm1211_vm10, %v7181_v11  ;;  %v1593_v50 = vpop.f32.mrf.mxu0 }
 0x1fa   : > { %v6161_v55 = vpop.f32.mrf.mxu1 }
 0x1fb   : > { %v7565_v28 = vadd.f32 %v6195_v34, %v6161_v55 }
 0x1fc   : > { %v1394_v11 = vpop.f32.mrf.mxu1 }
 0x1fd   : > { %v7569_v21 = vadd.f32 %v1590_v26, %v1394_v11 }
 0x1fe   : > { %6360 = vmatmul.mubr.msk.bf16.gmra.mxu1 %vm1211_vm10, %v7148_v51  ;;  %v6162_v13 = vpop.f32.mrf.mxu1 }
 0x1ff   : > { %6363 = vmatprep.mubr.msk.bf16.mxu1 %vm1211_vm10, %v7136_v30  ;;  %v7571_v32 = vadd.f32 %v6196_v18, %v6162_v13 }
 0x200   : > { %6398 = vmatmul.mubr.msk.bf16.gmra.mxu0 %vm1211_vm10, %v7212_v15  ;;  %v1397_v51 = vpop.f32.mrf.mxu1  ;;  %v9114_v15 = vld [vmem:[#allocation22_spill] sm:$0xff] }
 0x201   : > { %6401 = vmatprep.mubr.msk.bf16.mxu0 %vm1211_vm10, %v7477_v5  ;;  %v7575_v30 = vadd.f32 %v1593_v50, %v1397_v51  ;;  %v6199_v17 = vpop.f32.mrf.mxu0 }
 0x203   : > { %v1606_v5 = vpop.f32.mrf.mxu0 }
 0x205   : > { %v6200_v27 = vpop.f32.mrf.mxu0 }
 0x206   : > { %6364 = vmatmul.mubr.msk.bf16.gmra.mxu1 %vm1211_vm10, %v7195_v62 }
 0x207   : > { %6367 = vmatprep.mubr.msk.bf16.mxu1 %vm1211_vm10, %v7190_v4  ;;  %v1609_v8 = vpop.f32.mrf.mxu0 }
 0x208   : > { %6402 = vmatmul.mubr.msk.bf16.gmra.mxu0 %vm1211_vm10, %v9114_v15  ;;  %v6165_v42 = vpop.f32.mrf.mxu1 }
 0x209   : > { %v7583_v20 = vadd.f32 %v6199_v17, %v6165_v42  ;;  %v6239_v29 = vpop.f32.mrf.mxu0 }
 0x20a   : > { %v1410_v62 = vpop.f32.mrf.mxu1 }
 0x20b   : > { %v7587_v23 = vadd.f32 %v1606_v5, %v1410_v62  ;;  %v1990_v4 = vpop.f32.mrf.mxu0 }
 0x20c   : > { %v6166_v1 = vpop.f32.mrf.mxu1 }
 0x20d   : > { %v7589_v61 = vadd.f32 %v6200_v27, %v6166_v1  ;;  %v6240_v57 = vpop.f32.mrf.mxu0 }
 0x20e   : > { %6368 = vmatmul.mubr.msk.bf16.gmra.mxu1 %vm1211_vm10, %v6830_v19  ;;  %v1413_v0 = vpop.f32.mrf.mxu1 }
 0x20f   : > { %6407 = vmatprep.mubr.msk.bf16.mxu1 %vm1211_vm10, %v7248_v33  ;;  %v7591_v6 = vadd.f32 %v1609_v8, %v1413_v0  ;;  %v1993_v34 = vpop.f32.mrf.mxu0 }
 0x210   : > { %v6205_v44 = vpop.f32.mrf.mxu1 }
 0x211   : > { %v1918_v19 = vadd.f32 %v6205_v44, %v7422_v56 }
 0x212   : > { %v6243_v33 = vpop.f32.mrf.mxu0  ;;  %v1789_v26 = vpop.f32.mrf.mxu1 }
 0x213   : > { %v1916_v18 = vadd.f32 %v1789_v26, %v7428_v31  ;;  %v7599_v55 = vadd.f32 %v6239_v29, %v1918_v19 }
 0x214   : > { %v2006_v11 = vpop.f32.mrf.mxu0  ;;  %v6206_v50 = vpop.f32.mrf.mxu1 }
 0x215   : > { %v1919_v13 = vadd.f32 %v6206_v50, %v7434_v3  ;;  %v7602_v51 = vadd.f32 %v1990_v4, %v1916_v18 }
 0x216   : > { %6408 = vmatmul.mubr.msk.bf16.vlgmr.msra.gmra.mxu1 %vm1211_vm10, %v7263_v49  ;;  %v6244_v17 = vpop.f32.mrf.mxu0  ;;  %v1792_v15 = vpop.f32.mrf.mxu1 }
 0x217   : > { %6411 = vmatprep.mubr.msk.bf16.mxu1 %vm1211_vm10, %v7268_v54  ;;  %v1917_v49 = vadd.f32 %v1792_v15, %v7436_v60  ;;  %v7605_v56 = vadd.f32 %v6240_v57, %v1919_v13 }
 0x218   : > { %v2009_v5 = vpop.f32.mrf.mxu0  ;;  %v6209_v54 = vpop.f32.mrf.mxu1 }
 0x219   : > { %v1922_v31 = vadd.f32 %v6209_v54, %v7442_v47  ;;  %v7612_v27 = vadd.f32 %v1993_v34, %v1917_v49  ;;  %v9115_v49 = vld [vmem:[#allocation29_spill] sm:$0xff] }
 0x21a   : > { %v6247_v3 = vpop.f32.mrf.mxu0  ;;  %v1805_v8 = vpop.f32.mrf.mxu1 }
 0x21b   : > { %v1920_v42 = vadd.f32 %v1805_v8, %v7448_v41  ;;  %v7615_v29 = vadd.f32 %v6243_v33, %v1922_v31 }
 0x21c   : > { %v2022_v60 = vpop.f32.mrf.mxu0  ;;  %v6210_v62 = vpop.f32.mrf.mxu1 }
 0x21d   : > { %v1923_v4 = vadd.f32 %v6210_v62, %v7453_v14  ;;  %v7618_v1 = vadd.f32 %v2006_v11, %v1920_v42 }
 0x21e   : > { %6412 = vmatmul.mubr.msk.bf16.gmra.mxu1 %vm1211_vm10, %v7281_v2  ;;  %v6248_v2 = vpop.f32.mrf.mxu0  ;;  %v1808_v57 = vpop.f32.mrf.mxu1 }
 0x21f   : > { %6415 = vmatprep.mubr.msk.bf16.mxu1 %vm1211_vm10, %v7286_v52  ;;  %v1921_v47 = vadd.f32 %v1808_v57, %v7456_v16  ;;  %v7621_v0 = vadd.f32 %v6244_v17, %v1923_v4 }
 0x220   : > { %v2025_v52 = vpop.f32.mrf.mxu0  ;;  %v6213_v34 = vpop.f32.mrf.mxu1 }
 0x221   : > { %v1926_v41 = vadd.f32 %v6213_v34, %v7468_v38  ;;  %v7628_v44 = vadd.f32 %v2009_v5, %v1921_v47  ;;  %v9116_v5 = vld [vmem:[#allocation30_spill] sm:$0xff]  ;;  %v9117_v34 = vld [vmem:[#allocation31_spill] sm:$0xff] }
 0x222   : > { %v6251_v14 = vpop.f32.mrf.mxu0  ;;  %v1821_v19 = vpop.f32.mrf.mxu1 }
 0x223   : > { %v1924_v33 = vadd.f32 %v1821_v19, %v7472_v37  ;;  %v7631_v26 = vadd.f32 %v6247_v3, %v1926_v41  ;;  %v9118_v41 = vld [vmem:[#allocation32_spill] sm:$0xff] }
 0x224   : > { %v2038_v16 = vpop.f32.mrf.mxu0  ;;  %v6214_v18 = vpop.f32.mrf.mxu1 }
 0x225   : > { %v1927_v11 = vadd.f32 %v6214_v18, %v7474_v59  ;;  %v7634_v50 = vadd.f32 %v2022_v60, %v1924_v33 }
 0x226   : > { %6416 = vmatmul.mubr.msk.bf16.gmra.mxu1 %vm1211_vm10, %v7299_v39  ;;  %v6252_v39 = vpop.f32.mrf.mxu0  ;;  %v1824_v13 = vpop.f32.mrf.mxu1 }
 0x227   : > { %6419 = vmatprep.mubr.msk.bf16.mxu1 %vm1211_vm10, %v7304_v53  ;;  %v1925_v38 = vadd.f32 %v1824_v13, %v7481_v63  ;;  %v7637_v17 = vadd.f32 %v6248_v2, %v1927_v11  ;;  %v1562_v11 = vadd.f32 %v7529_v48, %v7539_v43 }
 0x228   : > { %v2041_v53 = vpop.f32.mrf.mxu0  ;;  %v6217_v15 = vpop.f32.mrf.mxu1 }
 0x229   : > { %v1930_v37 = vadd.f32 %v6217_v15, %v7499_v58  ;;  %v7644_v54 = vadd.f32 %v2025_v52, %v1925_v38 }
 0x22a   : > { %v6255_v59 = vpop.f32.mrf.mxu0  ;;  %v1837_v31 = vpop.f32.mrf.mxu1 }
 0x22b   : > { %v1928_v3 = vadd.f32 %v1837_v31, %v7505_v12  ;;  %v7647_v8 = vadd.f32 %v6251_v14, %v1930_v37 }
 0x22c   : > { %v2054_v63 = vpop.f32.mrf.mxu0  ;;  %v6218_v42 = vpop.f32.mrf.mxu1 }
 0x22d   : > { %v1931_v60 = vadd.f32 %v6218_v42, %v7511_v36  ;;  %v7650_v62 = vadd.f32 %v2038_v16, %v1928_v3 }
 0x22e   : > { %6420 = vmatmul.mubr.msk.bf16.gmra.mxu1 %vm1211_vm10, %v9115_v49  ;;  %v6256_v4 = vpop.f32.mrf.mxu0  ;;  %v1840_v2 = vpop.f32.mrf.mxu1 }
 0x22f   : > { %6423 = vmatprep.mubr.msk.bf16.mxu1 %vm1211_vm10, %v9116_v5  ;;  %v1929_v58 = vadd.f32 %v1840_v2, %v7513_v7  ;;  %v7653_v57 = vadd.f32 %v6252_v39, %v1931_v60  ;;  %v9119_v5 = vld [vmem:[#allocation33_spill] sm:$0xff]  ;;  %v1578_v60 = vadd.f32 %v7541_v46, %v7557_v24 }
 0x230   : > { %v2057_v47 = vpop.f32.mrf.mxu0  ;;  %v6221_v52 = vpop.f32.mrf.mxu1 }
 0x231   : > { %v1934_v12 = vadd.f32 %v6221_v52, %v7515_v9  ;;  %v7660_v14 = vadd.f32 %v2041_v53, %v1929_v58 }
 0x232   : > { %v6259_v36 = vpop.f32.mrf.mxu0  ;;  %v1853_v19 = vpop.f32.mrf.mxu1 }
 0x233   : > { %v1932_v33 = vadd.f32 %v1853_v19, %v7521_v22  ;;  %v7663_v16 = vadd.f32 %v6255_v59, %v1934_v12  ;;  %v9120_v59 = vld [vmem:[#allocation34_spill] sm:$0xff] }
 0x234   : > { %v2070_v7 = vpop.f32.mrf.mxu0  ;;  %v6222_v18 = vpop.f32.mrf.mxu1 }
 0x235   : > { %v1935_v39 = vadd.f32 %v6222_v18, %v7527_v45  ;;  %v7668_v13 = vadd.f32 %v2054_v63, %v1932_v33 }
 0x236   : > { %6424 = vmatmul.mubr.msk.bf16.gmra.mxu1 %vm1211_vm10, %v9117_v34  ;;  %v6260_v9 = vpop.f32.mrf.mxu0  ;;  %v1856_v38 = vpop.f32.mrf.mxu1 }
 0x237   : > { %6427 = vmatprep.mubr.msk.bf16.mxu1 %vm1211_vm10, %v9118_v41  ;;  %v1933_v15 = vadd.f32 %v1856_v38, %v1562_v11  ;;  %v7670_v53 = vadd.f32 %v6256_v4, %v1935_v39  ;;  %v9121_v41 = vld [vmem:[#allocation35_spill] sm:$0xff] }
 0x238   : > { %v2073_v49 = vpop.f32.mrf.mxu0  ;;  %v6225_v37 = vpop.f32.mrf.mxu1 }
 0x239   : > { %v1938_v22 = vadd.f32 %v6225_v37, %v7545_v10  ;;  %v7677_v48 = vadd.f32 %v2057_v47, %v1933_v15 }
 0x23a   : > { %v6263_v45 = vpop.f32.mrf.mxu0  ;;  %v1869_v43 = vpop.f32.mrf.mxu1 }
 0x23b   : > { %v1936_v31 = vadd.f32 %v1869_v43, %v7551_v25  ;;  %v7680_v3 = vadd.f32 %v6259_v36, %v1938_v22 }
 0x23c   : > { %v2086_v63 = vpop.f32.mrf.mxu0  ;;  %v6226_v42 = vpop.f32.mrf.mxu1 }
 0x23d   : > { %v1939_v4 = vadd.f32 %v6226_v42, %v7555_v35  ;;  %v7685_v2 = vadd.f32 %v2070_v7, %v1936_v31 }
 0x23e   : > { %6428 = vmatmul.mubr.msk.bf16.gmra.mxu1 %vm1211_vm10, %v9119_v5  ;;  %v6264_v10 = vpop.f32.mrf.mxu0  ;;  %v1872_v58 = vpop.f32.mrf.mxu1 }
 0x23f   : > { %6431 = vmatprep.mubr.msk.bf16.mxu1 %vm1211_vm10, %v9120_v59  ;;  %v1937_v52 = vadd.f32 %v1872_v58, %v1578_v60  ;;  %v7687_v47 = vadd.f32 %v6260_v9, %v1939_v4 }
 0x240   : > { %v2089_v34 = vpop.f32.mrf.mxu0  ;;  %v6229_v12 = vpop.f32.mrf.mxu1 }
 0x241   : > { %v1942_v25 = vadd.f32 %v6229_v12, %v7565_v28  ;;  %v7694_v46 = vadd.f32 %v2073_v49, %v1937_v52  ;;  %v9122_v49 = vld [vmem:[#allocation28_spill] sm:$0xff] }
 0x242   : > { %v6267_v35 = vpop.f32.mrf.mxu0  ;;  %v1885_v24 = vpop.f32.mrf.mxu1 }
 0x243   : > { %v1940_v36 = vadd.f32 %v1885_v24, %v7569_v21  ;;  %v7697_v19 = vadd.f32 %v6263_v45, %v1942_v25 }
 0x244   : > { %v2102_v33 = vpop.f32.mrf.mxu0  ;;  %v6230_v7 = vpop.f32.mrf.mxu1 }
 0x245   : > { %v1943_v18 = vadd.f32 %v6230_v7, %v7571_v32  ;;  %v7700_v11 = vadd.f32 %v2086_v63, %v1940_v36 }
 0x246   : > { %6432 = vmatmul.mubr.msk.bf16.gmra.mxu1 %vm1211_vm10, %v9121_v41  ;;  %v6268_v39 = vpop.f32.mrf.mxu0  ;;  %v1888_v9 = vpop.f32.mrf.mxu1 }
 0x247   : > { %6435 = vmatprep.mubr.msk.bf16.mxu1 %vm1211_vm10, %v7463_v40  ;;  %v1941_v28 = vadd.f32 %v1888_v9, %v7575_v30  ;;  %v7703_v38 = vadd.f32 %v6264_v10, %v1943_v18 }
 0x248   : > { %v2105_v40 = vpop.f32.mrf.mxu0  ;;  %v6233_v15 = vpop.f32.mrf.mxu1 }
 0x249   : > { %v1946_v21 = vadd.f32 %v6233_v15, %v7583_v20  ;;  %v7708_v37 = vadd.f32 %v2089_v34, %v1941_v28 }
 0x24a   : > { %v6307_v5 = vpop.f32.mrf.mxu0  ;;  %v1901_v22 = vpop.f32.mrf.mxu1 }
 0x24b   : > { %v1944_v32 = vadd.f32 %v1901_v22, %v7587_v23  ;;  %v7711_v59 = vadd.f32 %v6267_v35, %v1946_v21 }
 0x24c   : > { %v2408_v45 = vpop.f32.mrf.mxu0  ;;  %v6234_v43 = vpop.f32.mrf.mxu1 }
 0x24d   : > { %v1947_v30 = vadd.f32 %v6234_v43, %v7589_v61  ;;  %v7714_v31 = vadd.f32 %v2102_v33, %v1944_v32 }
 0x24e   : > { %6436 = vmatmul.mubr.msk.bf16.gmra.mxu1 %vm1211_vm10, %v9122_v49  ;;  %v6308_v63 = vpop.f32.mrf.mxu0  ;;  %v1904_v42 = vpop.f32.mrf.mxu1 }
 0x24f   : > { %v1945_v60 = vadd.f32 %v1904_v42, %v7591_v6  ;;  %v7717_v4 = vadd.f32 %v6268_v39, %v1947_v30 }
 0x250   : > { %v2411_v20 = vpop.f32.mrf.mxu0  ;;  %v6273_v10 = vpop.f32.mrf.mxu1 }
 0x251   : > { %v2331_v58 = vadd.f32 %v6273_v10, %v7599_v55  ;;  %v7720_v52 = vadd.f32 %v2105_v40, %v1945_v60 }
 0x252   : > { %v7722_v23 = vpop.f32.mrf.mxu0  ;;  %v2202_v34 = vpop.f32.mrf.mxu1 }
 0x253   : > { %9123 = vst [vmem:[#allocation23_spill] sm:$0xff] %v7722_v23  ;;  %v2329_v12 = vadd.f32 %v2202_v34, %v7602_v51  ;;  %v7725_v61 = vadd.f32 %v6307_v5, %v2331_v58  ;;  %v9131_v34 = vld [vmem:[#allocation5_spill] sm:$0xff] }
 0x254   : > { %v7727_v41 = vpop.f32.mrf.mxu0  ;;  %v6274_v25 = vpop.f32.mrf.mxu1 }
 0x255   : > { %9124 = vst [vmem:[#allocation24_spill] sm:$0xff] %v7727_v41  ;;  %v2332_v6 = vadd.f32 %v6274_v25, %v7605_v56  ;;  %v7730_v35 = vadd.f32 %v2408_v45, %v2329_v12  ;;  %v9132_v12 = vld [vmem:[#allocation9_spill] sm:$0xff] }
 0x256   : > { %v7732_v24 = vpop.f32.mrf.mxu0  ;;  %v2205_v36 = vpop.f32.mrf.mxu1 }
 0x257   : > { %9125 = vst [vmem:[#allocation25_spill] sm:$0xff] %v7732_v24  ;;  %v2330_v55 = vadd.f32 %v2205_v36, %v7612_v27  ;;  %v7735_v33 = vadd.f32 %v6308_v63, %v2332_v6 }
 0x258   : > { %v7737_v7 = vpop.f32.mrf.mxu0  ;;  %v6277_v18 = vpop.f32.mrf.mxu1 }
 0x259   : > { %9126 = vst [vmem:[#allocation26_spill] sm:$0xff] %v7737_v7  ;;  %v7740_v51 = vadd.f32 %v6277_v18, %v7615_v29  ;;  %v7742_v39 = vadd.f32 %v2411_v20, %v2330_v55 }
 0x25a   : > { %v6315_v9 = vpop.f32.mrf.mxu0  ;;  %v2218_v28 = vpop.f32.mrf.mxu1 }
 0x25b   : > { %9127 = vst [vmem:[#allocation27_spill] sm:$0xff] %v7740_v51  ;;  %v7745_v56 = vadd.f32 %v2218_v28, %v7618_v1 }
 0x25c   : > { %v2440_v40 = vpop.f32.mrf.mxu0  ;;  %v6278_v15 = vpop.f32.mrf.mxu1 }
 0x25d   : > { %9128 = vst [vmem:[#allocation22_spill] sm:$0xff] %v7745_v56  ;;  %v7748_v49 = vadd.f32 %v6278_v15, %v7621_v0 }
 0x25e   : > { %v6316_v27 = vpop.f32.mrf.mxu0  ;;  %v2221_v21 = vpop.f32.mrf.mxu1 }
 0x25f   : > { %9129 = vst [vmem:[#allocation29_spill] sm:$0xff] %v7748_v49  ;;  %v7751_v5 = vadd.f32 %v2221_v21, %v7628_v44 }
 0x260   : > { %v2443_v22 = vpop.f32.mrf.mxu0  ;;  %v6281_v29 = vpop.f32.mrf.mxu1 }
 0x261   : > { %9130 = vst [vmem:[#allocation30_spill] sm:$0xff] %v7751_v5  ;;  %v2339_v32 = vadd.f32 %v6281_v29, %v7631_v26  ;;  %v4417_v26 = vcombine.high %v9131_v34, %v9131_v34 }
 0x262   : > { %v6319_v45 = vpop.f32.mrf.mxu0  ;;  %v2234_v43 = vpop.f32.mrf.mxu1 }
 0x263   : > { %v2337_v30 = vadd.f32 %v2234_v43, %v7634_v50  ;;  %v7755_v1 = vadd.f32 %v6315_v9, %v2339_v32  ;;  %v4424_v50 = vrot.slane %v9131_v34, %v9132_v12 }
 0x264   : > { %v2456_v63 = vpop.f32.mrf.mxu0  ;;  %v6282_v42 = vpop.f32.mrf.mxu1 }
 0x265   : > { %v2340_v0 = vadd.f32 %v6282_v42, %v7637_v17  ;;  %v7758_v60 = vadd.f32 %v2440_v40, %v2337_v30  ;;  %v9133_v17 = vld [vmem:[#allocation6_spill] sm:$0xff]  ;;  %v4432_v21 = vcombine.high %v4424_v50, %v4424_v50 }
 0x266   : > { %v6320_v20 = vpop.f32.mrf.mxu0  ;;  %v2237_v10 = vpop.f32.mrf.mxu1  ;;  %v4434_v18 = vcombine.high %v9133_v17, %v9133_v17 }
 0x267   : > { %v2338_v44 = vadd.f32 %v2237_v10, %v7644_v54  ;;  %v7761_v58 = vadd.f32 %v6316_v27, %v2340_v0  ;;  %v4441_v54 = vrot.slane %v9133_v17, %v9132_v12  ;;  %v4431_v27 = vrot.slane %v4417_v26, %v9132_v12 }
 0x268   : > { %v2459_v25 = vpop.f32.mrf.mxu0  ;;  %v6285_v6 = vpop.f32.mrf.mxu1  ;;  %v4448_v43 = vrot.slane %v4434_v18, %v9132_v12  ;;  %v5843_v34 = vrot.slane %v4432_v21, 9 }
 0x269   : > { %v2343_v36 = vadd.f32 %v6285_v6, %v7647_v8  ;;  %v7768_v55 = vadd.f32 %v2443_v22, %v2338_v44  ;;  %v4449_v30 = vcombine.high %v4441_v54, %v4441_v54  ;;  %v5846_v10 = vrot.slane %v4441_v54, 9 }
 0x26a   : > { %v6323_v9 = vpop.f32.mrf.mxu0  ;;  %v2250_v28 = vpop.f32.mrf.mxu1  ;;  %v5844_v26 = vrot.slane %v4431_v27, 9  ;;  %v5848_v18 = vrot.slane %v4448_v43, 9 }
 0x26b   : > { %v2341_v40 = vadd.f32 %v2250_v28, %v7650_v62  ;;  %v7775_v15 = vadd.f32 %v6319_v45, %v2343_v36  ;;  %v4433_v45 = vcombine.high %v4431_v27, %v4431_v27  ;;  %v5847_v28 = vrot.slane %v4449_v30, 9 }
 0x26c   : > { %v2472_v29 = vpop.f32.mrf.mxu0  ;;  %v6286_v32 = vpop.f32.mrf.mxu1  ;;  %v4949_v7 = vadd.f32 %v5846_v10, %v4441_v54 }
 0x26d   : > { %v2344_v8 = vadd.f32 %v6286_v32, %v7653_v57  ;;  %v7779_v22 = vadd.f32 %v2456_v63, %v2341_v40  ;;  %v5842_v63 = vrot.slane %v4424_v50, 9 }
 0x26e   : > { %v6324_v42 = vpop.f32.mrf.mxu0  ;;  %v2253_v0 = vpop.f32.mrf.mxu1  ;;  %v5013_v51 = vmul.f32 0.25, %v4949_v7 }
 0x26f   : > { %v2342_v44 = vadd.f32 %v2253_v0, %v7660_v14  ;;  %v7783_v62 = vadd.f32 %v6320_v20, %v2344_v8  ;;  %v5845_v20 = vrot.slane %v4433_v45, 9  ;;  %v4946_v8 = vadd.f32 %v5843_v34, %v4432_v21 }
 0x270   : > { %v2475_v6 = vpop.f32.mrf.mxu0  ;;  %v6289_v36 = vpop.f32.mrf.mxu1  ;;  %v4947_v0 = vadd.f32 %v5844_v26, %v4431_v27  ;;  %v5077_v7 = vpack.c.bf16 %v5013_v51, %v5013_v51 }
 0x271   : > { %v2347_v17 = vadd.f32 %v6289_v36, %v7663_v16  ;;  %v7786_v57 = vadd.f32 %v2459_v25, %v2342_v44  ;;  %v4945_v25 = vadd.f32 %v5842_v63, %v4424_v50  ;;  %v4950_v44 = vadd.f32 %v5847_v28, %v4449_v30  ;;  %v9134_v63 = vld [vmem:[#allocation7_spill] sm:$0xff] }
 0x272   : > { %v6327_v40 = vpop.f32.mrf.mxu0  ;;  %v2266_v32 = vpop.f32.mrf.mxu1  ;;  %v4951_v36 = vadd.f32 %v5848_v18, %v4448_v43  ;;  %v5010_v10 = vmul.f32 0.25, %v4946_v8  ;;  %v5011_v21 = vmul.f32 0.25, %v4947_v0 }
 0x273   : > { %v2345_v5 = vadd.f32 %v2266_v32, %v7668_v13  ;;  %v7789_v14 = vadd.f32 %v6323_v9, %v2347_v17  ;;  %v4948_v9 = vadd.f32 %v5845_v20, %v4433_v45  ;;  %v5014_v50 = vmul.f32 0.25, %v4950_v44 }
 0x274   : > { %v2488_v24 = vpop.f32.mrf.mxu0  ;;  %v6290_v49 = vpop.f32.mrf.mxu1  ;;  %v5074_v45 = vpack.c.bf16 %v5010_v10, %v5010_v10  ;;  %v5075_v28 = vpack.c.bf16 %v5011_v21, %v5011_v21 }
 0x275   : > { %v2348_v41 = vadd.f32 %v6290_v49, %v7670_v53  ;;  %v7792_v16 = vadd.f32 %v2472_v29, %v2345_v5  ;;  %v4450_v49 = vcombine.high %v4448_v43, %v4448_v43  ;;  %v5009_v5 = vmul.f32 0.25, %v4945_v25 }
 0x276   : > { %v6328_v56 = vpop.f32.mrf.mxu0  ;;  %v2269_v23 = vpop.f32.mrf.mxu1  ;;  %v5015_v29 = vmul.f32 0.25, %v4951_v36  ;;  %v4458_v43 = vrot.slane %v9134_v63, %v9132_v12  ;;  %v5078_v8 = vpack.c.bf16 %v5014_v50, %v5014_v50  ;;  %v5203_v10 = vunpack.c.l.b16 %v5074_v45 }
 0x277   : > { %v2346_v54 = vadd.f32 %v2269_v23, %v7677_v48  ;;  %v7795_v13 = vadd.f32 %v6324_v42, %v2348_v41  ;;  %v4451_v48 = vcombine.high %v9134_v63, %v9134_v63  ;;  %v5012_v42 = vmul.f32 0.25, %v4948_v9 }
 0x278   : > { %v2491_v27 = vpop.f32.mrf.mxu0  ;;  %v5849_v51 = vrot.slane %v4450_v49, 9  ;;  %v5073_v20 = vpack.c.bf16 %v5009_v5, %v5009_v5  ;;  %v5079_v0 = vpack.c.bf16 %v5015_v29, %v5015_v29  ;;  %v7816_v21 = vunpack.c.l.b16 %v5075_v28 }
 0x279   : > { %v7798_v53 = vadd.f32 %v2475_v6, %v2346_v54  ;;  %v4465_v44 = vrot.slane %v4451_v48, %v9132_v12  ;;  %v5076_v9 = vpack.c.bf16 %v5012_v42, %v5012_v42 }
 0x27a   : > { %v6331_v30 = vpop.f32.mrf.mxu0 }
 0x27b   : > { %v4467_v42 = vcombine.high %v4465_v44, %v4465_v44 }
 0x27e   : > { %v6293_v34 = vpop.f32.mrf.mxu1 }
 0x27f   : > { %v2351_v26 = vadd.f32 %v6293_v34, %v7680_v3  ;;  %v2504_v3 = vpop.f32.mrf.mxu0  ;;  %v4466_v34 = vcombine.high %v4458_v43, %v4458_v43 }
 0x280   : > { %v2282_v17 = vpop.f32.mrf.mxu1 }
 0x281   : > { %v2349_v23 = vadd.f32 %v2282_v17, %v7685_v2  ;;  %v7803_v41 = vadd.f32 %v6327_v40, %v2351_v26  ;;  %v6332_v25 = vpop.f32.mrf.mxu0  ;;  %v7810_v40 = vunpack.c.l.b16 %v5077_v7  ;;  %v9136_v26 = vld [vmem:[#allocation8_spill] sm:$0xff]  ;;  %v7823_v17 = vadd.f32 %v5849_v51, %v4450_v49 }
 0x282   : > { %v6294_v6 = vpop.f32.mrf.mxu1  ;;  %v4475_v5 = vrot.slane %v9136_v26, %v9132_v12  ;;  %v5202_v7 = vunpack.c.l.b16 %v5073_v20  ;;  %v5850_v49 = vrot.slane %v4458_v43, 9 }
 0x283   : > { %v2352_v18 = vadd.f32 %v6294_v6, %v7687_v47  ;;  %v7808_v32 = vadd.f32 %v2488_v24, %v2349_v23  ;;  %9135 = vst [vmem:[#allocation31_spill] sm:$0xff] %v7810_v40  ;;  %v2507_v47 = vpop.f32.mrf.mxu0  ;;  %9138 = vst [vmem:[#allocation33_spill] sm:$0xff] %v7823_v17  ;;  %v7833_v6 = vunpack.c.l.b16 %v5076_v9 }
 0x284   : > { %v2285_v2 = vpop.f32.mrf.mxu1  ;;  %v4483_v20 = vcombine.high %v4475_v5, %v4475_v5  ;;  %v4953_v40 = vadd.f32 %v5850_v49, %v4458_v43  ;;  %v9147_v43 = vld [vmem:[#allocation11_spill] sm:$0xff] }
 0x285   : > { %v2350_v36 = vadd.f32 %v2285_v2, %v7694_v46  ;;  %v7814_v54 = vadd.f32 %v6328_v56, %v2352_v18  ;;  %v7825_v46 = vunpack.c.l.b16 %v5078_v8  ;;  %v7827_v56 = vunpack.c.l.b16 %v5079_v0  ;;  %9142 = vst [vmem:[#allocation5_spill] sm:$0xff] %v7833_v6 }
 0x286   : > { %v6297_v24 = vpop.f32.mrf.mxu1  ;;  %v5851_v8 = vrot.slane %v4466_v34, 9 }
 0x287   : > { %v2355_v50 = vadd.f32 %v6297_v24, %v7697_v19  ;;  %v7821_v29 = vadd.f32 %v2491_v27, %v2350_v36  ;;  %9139 = vst [vmem:[#allocation34_spill] sm:$0xff] %v7825_v46  ;;  %9140 = vst [vmem:[#allocation35_spill] sm:$0xff] %v7827_v56  ;;  %v5266_v19 = vrot.slane %v5203_v10, 7  ;;  %v5268_v27 = vrot.slane %v7816_v21, 6  ;;  %v9145_v24 = vld [vmem:[#allocation13_spill] sm:$0xff] }
 0x288   : > { %v6335_v63 = vpop.f32.mrf.mxu0  ;;  %v2298_v48 = vpop.f32.mrf.mxu1  ;;  %v4468_v36 = vcombine.high %v9136_v26, %v9136_v26  ;;  %v4552_v10 = vcombine.high %v9145_v24, %v9145_v24  ;;  %v5853_v26 = vrot.slane %v4467_v42, 9 }
 0x289   : > { %9137 = vst [vmem:[#allocation32_spill] sm:$0xff] %v7821_v29  ;;  %v2353_v45 = vadd.f32 %v2298_v48, %v7700_v11  ;;  %v7831_v28 = vadd.f32 %v6331_v30, %v2355_v50  ;;  %v5852_v11 = vrot.slane %v4465_v44, 9  ;;  %v9144_v30 = vld [vmem:[#allocation10_spill] sm:$0xff] }
 0x28a   : > { %v2520_v18 = vpop.f32.mrf.mxu0  ;;  %v6298_v51 = vpop.f32.mrf.mxu1  ;;  %v4518_v9 = vcombine.high %v9144_v30, %v9144_v30 }
 0x28b   : > { %9141 = vst [vmem:[#allocation28_spill] sm:$0xff] %v7831_v28  ;;  %v2356_v0 = vadd.f32 %v6298_v51, %v7703_v38  ;;  %v7837_v2 = vadd.f32 %v2504_v3, %v2353_v45  ;;  %v5267_v45 = vsel %vm4153_vm2, %v5266_v19, %v5202_v7  ;;  %v5854_v51 = vrot.slane %v4475_v5, 9 }
 0x28c   : > { %v6336_v21 = vpop.f32.mrf.mxu0  ;;  %v2301_v50 = vpop.f32.mrf.mxu1  ;;  %v4954_v28 = vadd.f32 %v5851_v8, %v4466_v34  ;;  %v4955_v23 = vadd.f32 %v5852_v11, %v4465_v44  ;;  %v5865_v56 = vrot.slane %v4518_v9, 9  ;;  %v7858_v7 = vrot.slane %v4468_v36, %v9132_v12  ;;  %v5137_v44 = vld [vmem:[%s8986_s4] sm:$0xf] }
 0x28d   : > { %9143 = vst [vmem:[#allocation6_spill] sm:$0xff] %v7837_v2  ;;  %v2354_v38 = vadd.f32 %v2301_v50, %v7708_v37  ;;  %v7848_v3 = vadd.f32 %v6332_v25, %v2356_v0  ;;  %v5855_v2 = vrot.slane %v4483_v20, 9  ;;  %v5873_v37 = vrot.slane %v4552_v10, 9  ;;  %6470 = vmatprep.subr.msk.bf16.mxu1 %vm538_vm0, %v5137_v44 }
 0x28e   : > { %v2523_v17 = vpop.f32.mrf.mxu0  ;;  %v6301_v30 = vpop.f32.mrf.mxu1  ;;  %9146 = vst [vmem:[#allocation7_spill] sm:$0xff] %v7858_v7  ;;  %v4553_v19 = vcombine.high %v9147_v43, %v9147_v43  ;;  %v4957_v8 = vadd.f32 %v5854_v51, %v4475_v5  ;;  %v5017_v11 = vmul.f32 0.25, %v4953_v40  ;;  %v7873_v36 = vrot.slane %v9147_v43, %v9132_v12 }
 0x28f   : > { %v2359_v24 = vadd.f32 %v6301_v30, %v7711_v59  ;;  %v7852_v29 = vadd.f32 %v2507_v47, %v2354_v38  ;;  %v4023_v59 = vld [vmem:[%s8985_s3] sm:$0x3]  ;;  %v4956_v47 = vadd.f32 %v5853_v26, %v4467_v42  ;;  %v5018_v38 = vmul.f32 0.25, %v4954_v28 }
 0x290   : > { %v7855_v25 = vpop.f32.mrf.mxu0  ;;  %v2314_v0 = vpop.f32.mrf.mxu1  ;;  %6469 = vmatprep.subr.msk.bf16.mxu0 %vm1260_vm8, %v4023_v59  ;;  %v7883_v5 = vsel %vm4156_vm3, %v5268_v27, %v5267_v45  ;;  %v5019_v40 = vmul.f32 0.25, %v4955_v23  ;;  %v4968_v42 = vadd.f32 %v5865_v56, %v4518_v9  ;;  %v4976_v26 = vadd.f32 %v5873_v37, %v4552_v10 }
 0x291   : > { %v2357_v34 = vadd.f32 %v2314_v0, %v7714_v31  ;;  %v7863_v49 = vadd.f32 %v6335_v63, %v2359_v24  ;;  %v4958_v63 = vadd.f32 %v5855_v2, %v4483_v20  ;;  %9148 = vst [vmem:[#allocation8_spill] sm:$0xff] %v7883_v5  ;;  %v4567_v48 = vrot.slane %v4553_v19, %v9132_v12 }
 0x292   : > { %v7875_v50 = vpop.f32.mrf.mxu0  ;;  %v6302_v31 = vpop.f32.mrf.mxu1  ;;  %v5081_v2 = vpack.c.bf16 %v5017_v11, %v5017_v11  ;;  %v4568_v27 = vcombine.high %v7873_v36, %v7873_v36  ;;  %v5082_v10 = vpack.c.bf16 %v5018_v38, %v5018_v38  ;;  %v5040_v19 = vmul.f32 0.25, %v4976_v26 }
 0x293   : > { %v2360_v30 = vadd.f32 %v6302_v31, %v7717_v4  ;;  %v7880_v24 = vadd.f32 %v2520_v18, %v2357_v34  ;;  %v5020_v4 = vmul.f32 0.25, %v4956_v47  ;;  %v5021_v18 = vmul.f32 0.25, %v4957_v8  ;;  %v9153_v34 = vld [vmem:[#allocation16_spill] sm:$0xff] }
 0x294   : > { %v7885_v51 = vpop.f32.mrf.mxu0  ;;  %v2317_v0 = vpop.f32.mrf.mxu1  ;;  %v7896_v9 = vmul.f32 0.25, %v4958_v63  ;;  %v4587_v47 = vcombine.high %v9153_v34, %v9153_v34  ;;  %v4569_v31 = vcombine.high %v4567_v48, %v4567_v48  ;;  %v7911_v38 = vrot.slane %v9153_v34, %v9132_v12 }
 0x295   : > { %9149 = vst [vmem:[#allocation10_spill] sm:$0xff] %v7885_v51  ;;  %v2358_v20 = vadd.f32 %v2317_v0, %v7720_v52  ;;  %v7890_v28 = vadd.f32 %v6336_v21, %v2360_v30  ;;  %v5083_v52 = vpack.c.bf16 %v5019_v40, %v5019_v40  ;;  %v5032_v21 = vmul.f32 0.25, %v4968_v42  ;;  %v9155_v30 = vld [vmem:[#allocation12_spill] sm:$0xff] }
 0x296   : > { %v7894_v23 = vpop.f32.mrf.mxu0  ;;  %v6341_v56 = vpop.f32.mrf.mxu1  ;;  %9151 = vst [vmem:[#allocation11_spill] sm:$0xff] %v7896_v9  ;;  %v4577_v63 = vrot.slane %v9155_v30, %v9132_v12  ;;  %v5876_v40 = vrot.slane %v4567_v48, 9  ;;  %v4288_v0 = vsel %vm1260_vm8, %v4023_v59, 0  ;;  %v5085_v43 = vpack.c.bf16 %v5021_v18, %v5021_v18 }
 0x297   : > { %9150 = vst [vmem:[#allocation13_spill] sm:$0xff] %v7894_v23  ;;  %v7899_v45 = vadd.f32 %v6341_v56, %v7725_v61  ;;  %v7901_v37 = vadd.f32 %v2523_v17, %v2358_v20  ;;  %v5875_v17 = vrot.slane %v4568_v27, 9  ;;  %v5395_v20 = vsel %vm538_vm0, %v5137_v44, 0  ;;  %6440 = vmatpush3.bf16.msra.mxu0 %v4288_v0 }
 0x298   : > { %v7905_v8 = vpop.f32.mrf.mxu0  ;;  %v2606_v11 = vpop.f32.mrf.mxu1  ;;  %v5084_v56 = vpack.c.bf16 %v5020_v4, %v5020_v4  ;;  %v7920_v46 = vunpack.c.l.b16 %v5081_v2  ;;  %6450 = vmatpush3.bf16.msra.mxu1 %v5395_v20  ;;  %v5096_v34 = vpack.c.bf16 %v5032_v21, %v5032_v21  ;;  %v4601_v5 = vrot.slane %v4587_v47, %v9132_v12 }
 0x299   : > { %9152 = vst [vmem:[#allocation36_spill] sm:$0xff] %v7901_v37  ;;  %9154 = vst [vmem:[#allocation16_spill] sm:$0xff] %v7905_v8  ;;  %v7914_v61 = vadd.f32 %v2606_v11, %v7730_v35  ;;  %v7925_v35 = vunpack.c.l.b16 %v5082_v10  ;;  %v5874_v11 = vrot.slane %v7873_v36, 9  ;;  %v5877_v44 = vrot.slane %v4569_v31, 9 }
 0x29a   : > { %v7916_v42 = vpop.f32.mrf.mxu0  ;;  %v6342_v26 = vpop.f32.mrf.mxu1  ;;  %9157 = vst [vmem:[#allocation37_spill] sm:$0xff] %v7920_v46  ;;  %v5878_v4 = vrot.slane %v4577_v63, 9  ;;  %v4602_v18 = vcombine.high %v7911_v38, %v7911_v38  ;;  %v5104_v2 = vpack.c.bf16 %v5040_v19, %v5040_v19  ;;  %v4978_v10 = vadd.f32 %v5875_v17, %v4568_v27 }
 0x29b   : > { %9156 = vst [vmem:[#allocation12_spill] sm:$0xff] %v7916_v42  ;;  %v7923_v6 = vadd.f32 %v6342_v26, %v7735_v33  ;;  %9159 = vst [vmem:[#allocation39_spill] sm:$0xff] %v7925_v35  ;;  %v4585_v26 = vcombine.high %v4577_v63, %v4577_v63  ;;  %v4979_v0 = vadd.f32 %v5876_v40, %v4567_v48  ;;  %v7940_v47 = vunpack.c.l.b16 %v5083_v52  ;;  %v9166_v48 = vld [vmem:[#allocation17_spill] sm:$0xff] }
 0x29c   : > { %v7929_v9 = vpop.f32.mrf.mxu0  ;;  %v2609_v59 = vpop.f32.mrf.mxu1  ;;  %v7942_v46 = vunpack.c.l.b16 %v5084_v56  ;;  %v7944_v7 = vunpack.c.l.b16 %v5085_v43  ;;  %v4570_v37 = vcombine.high %v9155_v30, %v9155_v30  ;;  %v4977_v19 = vadd.f32 %v5874_v11, %v7873_v36 }
 0x29d   : > { %9158 = vst [vmem:[#allocation38_spill] sm:$0xff] %v7923_v6  ;;  %9160 = vst [vmem:[#allocation40_spill] sm:$0xff] %v7929_v9  ;;  %v7934_v33 = vadd.f32 %v2609_v59, %v7742_v39  ;;  %v4603_v59 = vcombine.high %v4601_v5, %v4601_v5  ;;  %v4611_v27 = vrot.slane %v9166_v48, %v9132_v12  ;;  %v7956_v52 = vunpack.c.l.b16 %v5096_v34 }
 0x29e   : > { %v7936_v21 = vpop.f32.mrf.mxu0  ;;  %v7938_v20 = vpop.f32.mrf.mxu1  ;;  %9163 = vst [vmem:[#allocation43_spill] sm:$0xff] %v7940_v47  ;;  %9164 = vst [vmem:[#allocation44_spill] sm:$0xff] %v7942_v46  ;;  %v4980_v56 = vadd.f32 %v5877_v44, %v4569_v31  ;;  %v4981_v43 = vadd.f32 %v5878_v4, %v4577_v63  ;;  %v5883_v46 = vrot.slane %v4602_v18, 9  ;;  %v5879_v30 = vrot.slane %v4585_v26, 9 }
 0x29f   : > { %9161 = vst [vmem:[#allocation41_spill] sm:$0xff] %v7934_v33  ;;  %9162 = vst [vmem:[#allocation42_spill] sm:$0xff] %v7936_v21  ;;  %v7958_v21 = vunpack.c.l.b16 %v5104_v2  ;;  %v5042_v9 = vmul.f32 0.25, %v4978_v10  ;;  %v5043_v39 = vmul.f32 0.25, %v4979_v0  ;;  %v7967_v42 = vrot.slane %v4570_v37, %v9132_v12 }
 0x2a0   : > { %9165 = vst [vmem:[#allocation45_spill] sm:$0xff] %v7944_v7  ;;  %v7952_v17 = vpop.f32.mrf.mxu0  ;;  %v7954_v40 = vpop.f32.mrf.mxu1  ;;  %9168 = vst [vmem:[#allocation46_spill] sm:$0xff] %v7956_v52  ;;  %v5882_v31 = vrot.slane %v7911_v38, 9  ;;  %v5041_v63 = vmul.f32 0.25, %v4977_v19  ;;  %v5884_v34 = vrot.slane %v4601_v5, 9  ;;  %v5885_v44 = vrot.slane %v4603_v59, 9 }
 0x2a1   : > { %9167 = vst [vmem:[#allocation17_spill] sm:$0xff] %v7952_v17  ;;  %9169 = vst [vmem:[#allocation47_spill] sm:$0xff] %v7958_v21  ;;  %v5886_v4 = vrot.slane %v4611_v27, 9  ;;  %v5045_v8 = vmul.f32 0.25, %v4981_v43  ;;  %v4986_v11 = vadd.f32 %v5883_v46, %v4602_v18  ;;  %v4982_v7 = vadd.f32 %v5879_v30, %v4585_v26 }
 0x2a2   : > { %v7960_v35 = vpop.f32.mrf.mxu0  ;;  %v7962_v36 = vpop.f32.mrf.mxu1  ;;  %9171 = vst [vmem:[#allocation49_spill] sm:$0xff] %v7967_v42  ;;  %v5106_v37 = vpack.c.bf16 %v5042_v9, %v5042_v9  ;;  %v5107_v47 = vpack.c.bf16 %v5043_v39, %v5043_v39  ;;  %v4619_v51 = vcombine.high %v4611_v27, %v4611_v27  ;;  %v5105_v0 = vpack.c.bf16 %v5041_v63, %v5041_v63 }
 0x2a3   : > { %9170 = vst [vmem:[#allocation48_spill] sm:$0xff] %v7960_v35  ;;  %v5044_v35 = vmul.f32 0.25, %v4980_v56  ;;  %v4987_v56 = vadd.f32 %v5884_v34, %v4601_v5  ;;  %v4988_v43 = vadd.f32 %v5885_v44, %v4603_v59  ;;  %v4989_v46 = vadd.f32 %v5886_v4, %v4611_v27 }
 0x2a4   : > { %v7970_v2 = vpop.f32.mrf.mxu0  ;;  %v7972_v10 = vpop.f32.mrf.mxu1  ;;  %v5109_v39 = vpack.c.bf16 %v5045_v8, %v5045_v8  ;;  %v5050_v30 = vmul.f32 0.25, %v4986_v11  ;;  %v7988_v33 = vmul.f32 0.25, %v4982_v7  ;;  %v7990_v42 = vunpack.c.l.b16 %v5106_v37 }
 0x2a5   : > { %9172 = vst [vmem:[#allocation50_spill] sm:$0xff] %v7970_v2  ;;  %v4985_v2 = vadd.f32 %v5882_v31, %v7911_v38  ;;  %v5108_v9 = vpack.c.bf16 %v5044_v35, %v5044_v35  ;;  %v7992_v38 = vunpack.c.l.b16 %v5107_v47  ;;  %v5887_v27 = vrot.slane %v4619_v51, 9  ;;  %v9176_v35 = vld [vmem:[#allocation18_spill] sm:$0xff] }
 0x2a6   : > { %v7976_v23 = vpop.f32.mrf.mxu0  ;;  %v6349_v19 = vpop.f32.mrf.mxu1  ;;  %9173 = vst [vmem:[#allocation51_spill] sm:$0xff] %v7988_v33  ;;  %9174 = vst [vmem:[#allocation52_spill] sm:$0xff] %v7990_v42  ;;  %v4621_v8 = vcombine.high %v9176_v35, %v9176_v35  ;;  %v8003_v7 = vunpack.c.l.b16 %v5105_v0  ;;  %v5051_v11 = vmul.f32 0.25, %v4987_v56  ;;  %v5052_v63 = vmul.f32 0.25, %v4988_v43 }
 0x2a7   : > { %v7981_v6 = vadd.f32 %v6349_v19, %v7755_v1  ;;  %9175 = vst [vmem:[#allocation53_spill] sm:$0xff] %v7992_v38  ;;  %v4604_v1 = vcombine.high %v9166_v48, %v9166_v48  ;;  %v5049_v31 = vmul.f32 0.25, %v4985_v2  ;;  %v5053_v47 = vmul.f32 0.25, %v4989_v46 }
 0x2a8   : > { %v7983_v18 = vpop.f32.mrf.mxu0  ;;  %v2638_v26 = vpop.f32.mrf.mxu1  ;;  %9177 = vst [vmem:[#allocation18_spill] sm:$0xff] %v8003_v7  ;;  %v8007_v48 = vunpack.c.l.b16 %v5108_v9  ;;  %v8009_v4 = vunpack.c.l.b16 %v5109_v39  ;;  %v5114_v37 = vpack.c.bf16 %v5050_v30, %v5050_v30  ;;  %v4628_v56 = vrot.slane %v9176_v35, %v9132_v12 }
 0x2a9   : > { %v7986_v17 = vadd.f32 %v2638_v26, %v7758_v60  ;;  %v8017_v0 = vrot.slane %v4604_v1, %v9132_v12  ;;  %v4990_v26 = vadd.f32 %v5887_v27, %v4619_v51  ;;  %v5113_v9 = vpack.c.bf16 %v5049_v31, %v5049_v31  ;;  %v9186_v51 = vld [vmem:[#allocation20_spill] sm:$0xff] }
 0x2aa   : > { %v7996_v5 = vpop.f32.mrf.mxu0  ;;  %v6350_v59 = vpop.f32.mrf.mxu1  ;;  %9179 = vst [vmem:[#allocation55_spill] sm:$0xff] %v8007_v48  ;;  %9180 = vst [vmem:[#allocation56_spill] sm:$0xff] %v8009_v4  ;;  %v4635_v39 = vrot.slane %v4621_v8, %v9132_v12  ;;  %v5115_v30 = vpack.c.bf16 %v5051_v11, %v5051_v11  ;;  %v8032_v48 = vunpack.c.l.b16 %v5114_v37  ;;  %v4655_v27 = vcombine.high %v9186_v51, %v9186_v51 }
 0x2ab   : > { %v8001_v60 = vadd.f32 %v6350_v59, %v7761_v58  ;;  %9181 = vst [vmem:[#allocation57_spill] sm:$0xff] %v8017_v0  ;;  %v5116_v59 = vpack.c.bf16 %v5052_v63, %v5052_v63  ;;  %v9183_v58 = vld [vmem:[#allocation19_spill] sm:$0xff]  ;;  %v4636_v8 = vcombine.high %v4628_v56, %v4628_v56  ;;  %v8044_v63 = vrot.slane %v9186_v51, %v9132_v12 }
 0x2ac   : > { %v8005_v34 = vpop.f32.mrf.mxu0  ;;  %v2641_v44 = vpop.f32.mrf.mxu1  ;;  %v4638_v1 = vcombine.high %v9183_v58, %v9183_v58  ;;  %9185 = vst [vmem:[#allocation59_spill] sm:$0xff] %v8032_v48  ;;  %v4645_v11 = vrot.slane %v9183_v58, %v9132_v12  ;;  %v8050_v35 = vunpack.c.l.b16 %v5113_v9  ;;  %v4637_v4 = vcombine.high %v4635_v39, %v4635_v39 }
 0x2ad   : > { %9178 = vst [vmem:[#allocation54_spill] sm:$0xff] %v8005_v34  ;;  %v8012_v2 = vadd.f32 %v2641_v44, %v7768_v55  ;;  %v5117_v44 = vpack.c.bf16 %v5053_v47, %v5053_v47  ;;  %v4669_v9 = vrot.slane %v4655_v27, %v9132_v12  ;;  %v5892_v33 = vrot.slane %v4635_v39, 9 }
 0x2ae   : > { %v8021_v43 = vpop.f32.mrf.mxu0  ;;  %v6353_v46 = vpop.f32.mrf.mxu1  ;;  %9189 = vst [vmem:[#allocation61_spill] sm:$0xff] %v8050_v35  ;;  %v4652_v51 = vrot.slane %v4638_v1, %v9132_v12  ;;  %v9195_v35 = vld [vmem:[#allocation21_spill] sm:$0xff]  ;;  %v5893_v0 = vrot.slane %v4637_v4, 9 }
 0x2af   : > { %9182 = vst [vmem:[#allocation58_spill] sm:$0xff] %v8021_v43  ;;  %v8025_v55 = vadd.f32 %v6353_v46, %v7775_v15  ;;  %v8048_v46 = vmul.f32 0.25, %v4990_v26  ;;  %v8057_v15 = vunpack.c.l.b16 %v5116_v59  ;;  %v8059_v58 = vunpack.c.l.b16 %v5117_v44 }
 0x2b0   : > { %v8029_v19 = vpop.f32.mrf.mxu0  ;;  %v2654_v38 = vpop.f32.mrf.mxu1  ;;  %v5890_v59 = vrot.slane %v4628_v56, 9  ;;  %v4670_v44 = vcombine.high %v8044_v63, %v8044_v63  ;;  %v5894_v26 = vrot.slane %v4645_v11, 9  ;;  %v4672_v21 = vcombine.high %v9195_v35, %v9195_v35 }
 0x2b1   : > { %9184 = vst [vmem:[#allocation19_spill] sm:$0xff] %v8029_v19  ;;  %v8037_v31 = vadd.f32 %v2654_v38, %v7779_v22  ;;  %9188 = vst [vmem:[#allocation60_spill] sm:$0xff] %v8048_v46  ;;  %v8055_v38 = vunpack.c.l.b16 %v5115_v30  ;;  %v4679_v46 = vrot.slane %v9195_v35, %v9132_v12  ;;  %v4653_v30 = vcombine.high %v4645_v11, %v4645_v11 }
 0x2b2   : > { %v8046_v47 = vpop.f32.mrf.mxu0  ;;  %v6354_v37 = vpop.f32.mrf.mxu1  ;;  %9192 = vst [vmem:[#allocation64_spill] sm:$0xff] %v8057_v15  ;;  %9193 = vst [vmem:[#allocation65_spill] sm:$0xff] %v8059_v58  ;;  %v5899_v48 = vrot.slane %v4670_v44, 9  ;;  %v4995_v58 = vadd.f32 %v5892_v33, %v4635_v39  ;;  %v4997_v34 = vadd.f32 %v5894_v26, %v4645_v11 }
 0x2b3   : > { %9187 = vst [vmem:[#allocation20_spill] sm:$0xff] %v8046_v47  ;;  %v8053_v22 = vadd.f32 %v6354_v37, %v7783_v62  ;;  %9191 = vst [vmem:[#allocation63_spill] sm:$0xff] %v8055_v38  ;;  %v5891_v37 = vrot.slane %v4636_v8, 9  ;;  %v4671_v47 = vcombine.high %v4669_v9, %v4669_v9  ;;  %v4687_v19 = vcombine.high %v4679_v46, %v4679_v46 }
 0x2b4   : > { %v8062_v42 = vpop.f32.mrf.mxu0  ;;  %v2657_v7 = vpop.f32.mrf.mxu1  ;;  %v5002_v39 = vadd.f32 %v5899_v48, %v4670_v44  ;;  %v5059_v26 = vmul.f32 0.25, %v4995_v58 }
 0x2b5   : > { %9190 = vst [vmem:[#allocation62_spill] sm:$0xff] %v8053_v22  ;;  %9194 = vst [vmem:[#allocation66_spill] sm:$0xff] %v8062_v42  ;;  %v8069_v62 = vadd.f32 %v2657_v7, %v7786_v57  ;;  %v8080_v7 = vcombine.high %v4652_v51, %v4652_v51  ;;  %v8096_v22 = vrot.slane %v4672_v21, %v9132_v12 }
 0x2b6   : > { %v8073_v1 = vpop.f32.mrf.mxu0  ;;  %v6357_v15 = vpop.f32.mrf.mxu1 }
 0x2b7   : > { %9196 = vst [vmem:[#allocation21_spill] sm:$0xff] %v8069_v62  ;;  %9197 = vst [vmem:[#allocation67_spill] sm:$0xff] %v8073_v1  ;;  %v8076_v27 = vadd.f32 %v6357_v15, %v7789_v14  ;;  %v5896_v1 = vrot.slane %v4652_v51, 9  ;;  %v5895_v14 = vrot.slane %v4653_v30, 9  ;;  %v4993_v15 = vadd.f32 %v5890_v59, %v4628_v56 }
 0x2b8   : > { %9199 = vst [vmem:[#allocation69_spill] sm:$0xff] %v8080_v7  ;;  %v8084_v52 = vpop.f32.mrf.mxu0  ;;  %v2670_v42 = vpop.f32.mrf.mxu1  ;;  %v4996_v62 = vadd.f32 %v5893_v0, %v4637_v4  ;;  %v5901_v59 = vrot.slane %v4671_v47, 9 }
 0x2b9   : > { %9198 = vst [vmem:[#allocation68_spill] sm:$0xff] %v8076_v27  ;;  %9200 = vst [vmem:[#allocation70_spill] sm:$0xff] %v8084_v52  ;;  %v8087_v43 = vadd.f32 %v2670_v42, %v7792_v16  ;;  %v4994_v27 = vadd.f32 %v5891_v37, %v4636_v8  ;;  %v5898_v16 = vrot.slane %v8044_v63, 9  ;;  %v5900_v42 = vrot.slane %v4669_v9, 9 }
 0x2ba   : > { %v8089_v38 = vpop.f32.mrf.mxu0  ;;  %v6358_v57 = vpop.f32.mrf.mxu1  ;;  %v5902_v37 = vrot.slane %v4679_v46, 9  ;;  %v4998_v4 = vadd.f32 %v5895_v14, %v4653_v30  ;;  %v5061_v52 = vmul.f32 0.25, %v4997_v34  ;;  %v5057_v12 = vmul.f32 0.25, %v4993_v15 }
 0x2bb   : > { %9201 = vst [vmem:[#allocation71_spill] sm:$0xff] %v8089_v38  ;;  %v8092_v35 = vadd.f32 %v6358_v57, %v7795_v13  ;;  %v5903_v38 = vrot.slane %v4687_v19, 9  ;;  %v4999_v13 = vadd.f32 %v5896_v1, %v4652_v51  ;;  %v5058_v0 = vmul.f32 0.25, %v4994_v27 }
 0x2bc   : > { %v8099_v56 = vpop.f32.mrf.mxu0  ;;  %v2673_v8 = vpop.f32.mrf.mxu1  ;;  %v5060_v57 = vmul.f32 0.25, %v4996_v62  ;;  %v5004_v30 = vadd.f32 %v5901_v59, %v4671_v47  ;;  %v5005_v51 = vadd.f32 %v5902_v37, %v4679_v46  ;;  %v5062_v58 = vmul.f32 0.25, %v4998_v4  ;;  %v9204_v37 = vld [vmem:[#allocation32_spill] sm:$0xff] }
 0x2bd   : > { %9202 = vst [vmem:[#allocation72_spill] sm:$0xff] %v8092_v35  ;;  %9203 = vst [vmem:[#allocation73_spill] sm:$0xff] %v8099_v56  ;;  %v8102_v33 = vadd.f32 %v2673_v8, %v7798_v53  ;;  %v5904_v56 = vrot.slane %v8096_v22, 9  ;;  %v5001_v35 = vadd.f32 %v5898_v16, %v8044_v63  ;;  %v5003_v53 = vadd.f32 %v5900_v42, %v4669_v9 }
 0x2be   : > { %v8104_v11 = vpop.f32.mrf.mxu0  ;;  %v6361_v21 = vpop.f32.mrf.mxu1  ;;  %v5006_v1 = vadd.f32 %v5903_v38, %v4687_v19  ;;  %v5063_v34 = vmul.f32 0.25, %v4999_v13  ;;  %v5122_v62 = vpack.c.bf16 %v5058_v0, %v5058_v0  ;;  %v5123_v14 = vpack.c.bf16 %v5059_v26, %v5059_v26 }
 0x2bf   : > { %v8107_v7 = vadd.f32 %v6361_v21, %v7803_v41  ;;  %v5066_v41 = vmul.f32 0.25, %v5002_v39  ;;  %v5124_v15 = vpack.c.bf16 %v5060_v57, %v5060_v57  ;;  %v5125_v21 = vpack.c.bf16 %v5061_v52, %v5061_v52 }
 0x2c0   : > { %v2686_v8 = vpop.f32.mrf.mxu1  ;;  %v8111_v48 = vpop.f32.mrf.mxu0  ;;  %v5121_v9 = vpack.c.bf16 %v5057_v12, %v5057_v12  ;;  %v5007_v47 = vadd.f32 %v5904_v56, %v8096_v22  ;;  %v5065_v19 = vmul.f32 0.25, %v5001_v35  ;;  %v5067_v46 = vmul.f32 0.25, %v5003_v53  ;;  %v9208_v56 = vld [vmem:[#allocation28_spill] sm:$0xff] }
 0x2c1   : > { %v8114_v44 = vadd.f32 %v2686_v8, %v7808_v32  ;;  %v5068_v16 = vmul.f32 0.25, %v5004_v30  ;;  %v5069_v32 = vmul.f32 0.25, %v5005_v51  ;;  %v5070_v42 = vmul.f32 0.25, %v5006_v1 }
 0x2c2   : > { %v6362_v27 = vpop.f32.mrf.mxu1  ;;  %v8120_v59 = vpop.f32.mrf.mxu0  ;;  %v5126_v13 = vpack.c.bf16 %v5062_v58, %v5062_v58  ;;  %v5127_v0 = vpack.c.bf16 %v5063_v34, %v5063_v34  ;;  %v5251_v52 = vunpack.c.l.b16 %v5122_v62  ;;  %v5130_v39 = vpack.c.bf16 %v5066_v41, %v5066_v41  ;;  %v9209_v41 = vld [vmem:[#allocation6_spill] sm:$0xff] }
 0x2c3   : > { %v8117_v63 = vadd.f32 %v6362_v27, %v7814_v54  ;;  %v8125_v26 = vunpack.c.l.b16 %v5123_v14  ;;  %v8127_v12 = vunpack.c.l.b16 %v5124_v15  ;;  %v8129_v35 = vunpack.c.l.b16 %v5125_v21 }
 0x2c4   : > { %v2689_v38 = vpop.f32.mrf.mxu1  ;;  %v5250_v53 = vunpack.c.l.b16 %v5121_v9  ;;  %v5071_v8 = vmul.f32 0.25, %v5007_v47  ;;  %v5129_v30 = vpack.c.bf16 %v5065_v19, %v5065_v19  ;;  %v5131_v51 = vpack.c.bf16 %v5067_v46, %v5067_v46  ;;  %v8134_v62 = vpop.f32.mrf.mxu0  ;;  %v9221_v47 = vld [vmem:[#allocation29_spill] sm:$0xff] }
 0x2c5   : > { %v8123_v4 = vadd.f32 %v2689_v38, %v9204_v37  ;;  %9205 = vst [vmem:[#allocation32_spill] sm:$0xff] %v8125_v26  ;;  %9206 = vst [vmem:[#allocation74_spill] sm:$0xff] %v8127_v12  ;;  %v5132_v27 = vpack.c.bf16 %v5068_v16, %v5068_v16  ;;  %v5133_v58 = vpack.c.bf16 %v5069_v32, %v5069_v32  ;;  %v8139_v15 = vunpack.c.l.b16 %v5126_v13  ;;  %v9222_v9 = vld [vmem:[#allocation25_spill] sm:$0xff]  ;;  %v9224_v12 = vld [vmem:[#allocation30_spill] sm:$0xff] }
 0x2c6   : > { %v6365_v54 = vpop.f32.mrf.mxu1  ;;  %9207 = vst [vmem:[#allocation75_spill] sm:$0xff] %v8129_v35  ;;  %v5134_v34 = vpack.c.bf16 %v5070_v42, %v5070_v42  ;;  %v8141_v21 = vunpack.c.l.b16 %v5127_v0  ;;  %v5350_v38 = vrot.slane %v5251_v52, 7  ;;  %v5259_v37 = vunpack.c.l.b16 %v5130_v39 }
 0x2c7   : > { %v8132_v57 = vadd.f32 %v6365_v54, %v9208_v56  ;;  %9210 = vst [vmem:[#allocation28_spill] sm:$0xff] %v8139_v15  ;;  %v8151_v16 = vcombine.high %v8096_v22, %v8096_v22  ;;  %v5135_v32 = vpack.c.bf16 %v5071_v8, %v5071_v8  ;;  %v5258_v42 = vunpack.c.l.b16 %v5129_v30  ;;  %v9218_v22 = vld [vmem:[#allocation23_spill] sm:$0xff]  ;;  %v9219_v8 = vld [vmem:[#allocation22_spill] sm:$0xff]  ;;  %v9220_v30 = vld [vmem:[#allocation24_spill] sm:$0xff] }
 0x2c8   : > { %v2702_v1 = vpop.f32.mrf.mxu1  ;;  %9211 = vst [vmem:[#allocation6_spill] sm:$0xff] %v8141_v21  ;;  %v8153_v13 = vunpack.c.l.b16 %v5131_v51  ;;  %v8155_v52 = vunpack.c.l.b16 %v5132_v27  ;;  %v8157_v39 = vunpack.c.l.b16 %v5133_v58  ;;  %v8159_v56 = vunpack.c.l.b16 %v5134_v34  ;;  %v9225_v21 = vld [vmem:[#allocation26_spill] sm:$0xff] }
 0x2c9   : > { %v8137_v14 = vadd.f32 %v2702_v1, %v9209_v41  ;;  %9212 = vst [vmem:[#allocation76_spill] sm:$0xff] %v8151_v16  ;;  %v8161_v1 = vpop.f32.mrf.mxu0  ;;  %v5364_v41 = vrot.slane %v5259_v37, 7  ;;  %v2539_v51 = vadd.f32 %v9220_v30, %v9219_v8  ;;  %v2542_v27 = vadd.f32 %v9222_v9, %v9221_v47 }
 0x2ca   : > { %v6366_v54 = vpop.f32.mrf.mxu1  ;;  %9213 = vst [vmem:[#allocation77_spill] sm:$0xff] %v8153_v13  ;;  %9214 = vst [vmem:[#allocation78_spill] sm:$0xff] %v8155_v52  ;;  %v8173_v58 = vsel %vm4153_vm2, %v5350_v38, %v5250_v53  ;;  %v8183_v30 = vunpack.c.l.b16 %v5135_v32  ;;  %v2933_v32 = vadd.f32 %v7855_v25, %v7899_v45  ;;  %v9235_v53 = vld [vmem:[#allocation36_spill] sm:$0xff]  ;;  %v9236_v45 = vld [vmem:[#allocation42_spill] sm:$0xff] }
 0x2cb   : > { %v8147_v46 = vadd.f32 %v6366_v54, %v7848_v3  ;;  %9215 = vst [vmem:[#allocation79_spill] sm:$0xff] %v8157_v39  ;;  %9216 = vst [vmem:[#allocation80_spill] sm:$0xff] %v8159_v56  ;;  %v9217_v54 = vld [vmem:[#allocation27_spill] sm:$0xff]  ;;  %v2737_v8 = vadd.f32 %v7954_v40, %v2539_v51  ;;  %v2740_v9 = vadd.f32 %v7962_v36, %v2542_v27  ;;  %v9229_v51 = vld [vmem:[#allocation10_spill] sm:$0xff] }
 0x2cc   : > { %v2705_v0 = vpop.f32.mrf.mxu1  ;;  %v2541_v19 = vadd.f32 %v9218_v22, %v9217_v54  ;;  %9223 = vst [vmem:[#allocation27_spill] sm:$0xff] %v8173_v58  ;;  %9226 = vst [vmem:[#allocation23_spill] sm:$0xff] %v8183_v30  ;;  %v9230_v27 = vld [vmem:[#allocation41_spill] sm:$0xff]  ;;  %v9233_v40 = vld [vmem:[#allocation12_spill] sm:$0xff] }
 0x2cd   : > { %v8164_v3 = vadd.f32 %v2705_v0, %v7852_v29  ;;  %v2540_v29 = vadd.f32 %v9225_v21, %v9224_v12  ;;  %v6403_v0 = vpop.f32.mrf.mxu0  ;;  %v8205_v34 = vadd.f32 %v9233_v40, %v2737_v8  ;;  %v8225_v8 = vld [vmem:[%s8989_s7] ss:$0 sm:$0xff] }
 0x2ce   : > { %v6369_v35 = vpop.f32.mrf.mxu1  ;;  %v2739_v22 = vadd.f32 %v7938_v20, %v2541_v19  ;;  %v9232_v20 = vld [vmem:[#allocation16_spill] sm:$0xff] }
 0x2cf   : > { %v2763_v37 = vadd.f32 %v6369_v35, %v7863_v49  ;;  %v2738_v38 = vadd.f32 %v7972_v10, %v2540_v29  ;;  %v8189_v49 = vsel %vm4153_vm2, %v5364_v41, %v5258_v42  ;;  %v2916_v19 = vpop.f32.mrf.mxu0  ;;  %v2931_v10 = vadd.f32 %v7875_v50, %v7914_v61  ;;  %v9231_v29 = vld [vmem:[#allocation13_spill] sm:$0xff] }
 0x2d0   : > { %v2718_v47 = vpop.f32.mrf.mxu1  ;;  %9227 = vst [vmem:[#allocation22_spill] sm:$0xff] %v8189_v49  ;;  %v2937_v35 = vadd.f32 %v9232_v20, %v2739_v22  ;;  %v9237_v50 = vld [vmem:[#allocation17_spill] sm:$0xff] }
 0x2d1   : > { %v2761_v12 = vadd.f32 %v2718_v47, %v7880_v24  ;;  %v9228_v24 = vld [vmem:[#allocation38_spill] sm:$0xff]  ;;  %v2932_v47 = vadd.f32 %v9231_v29, %v9230_v27  ;;  %v8212_v54 = vadd.f32 %v9236_v45, %v2738_v38  ;;  %v8216_v61 = vadd.f32 %v9237_v50, %v7981_v6  ;;  %v6404_v20 = vpop.f32.mrf.mxu0 }
 0x2d2   : > { %v6370_v21 = vpop.f32.mrf.mxu1  ;;  %v2934_v42 = vadd.f32 %v9229_v51, %v9228_v24  ;;  %v9238_v24 = vld [vmem:[#allocation48_spill] sm:$0xff]  ;;  %v8233_v38 = vadd.f32 %v7976_v23, %v8012_v2  ;;  %v8237_v6 = vadd.f32 %v7983_v18, %v8025_v55  ;;  %v9241_v27 = vld [vmem:[#allocation54_spill] sm:$0xff]  ;;  %v9245_v2 = vld [vmem:[#allocation19_spill] sm:$0xff] }
 0x2d3   : > { %v2764_v36 = vadd.f32 %v6370_v21, %v7890_v28  ;;  %v9234_v28 = vld [vmem:[#allocation40_spill] sm:$0xff]  ;;  %v8220_v51 = vadd.f32 %v9238_v24, %v7986_v17  ;;  %v8241_v17 = vadd.f32 %v7996_v5, %v8037_v31  ;;  %v8258_v18 = vld [vmem:[%s8990_s8] ss:$0 sm:$0xff]  ;;  %v9248_v24 = vld [vmem:[#allocation66_spill] sm:$0xff] }
 0x2d4   : > { %v2721_v41 = vpop.f32.mrf.mxu1  ;;  %v8208_v21 = vadd.f32 %v9234_v28, %v2740_v9  ;;  %v9239_v9 = vld [vmem:[#allocation50_spill] sm:$0xff]  ;;  %v9244_v23 = vld [vmem:[#allocation68_spill] sm:$0xff] }
 0x2d5   : > { %v2762_v25 = vadd.f32 %v2721_v41, %v9235_v53  ;;  %v8229_v53 = vadd.f32 %v9239_v9, %v8001_v60  ;;  %v9240_v41 = vld [vmem:[#allocation62_spill] sm:$0xff]  ;;  %v9242_v60 = vld [vmem:[#allocation21_spill] sm:$0xff]  ;;  %v8253_v50 = vadd.f32 %v9245_v2, %v9244_v23  ;;  %v9246_v55 = vld [vmem:[#allocation20_spill] sm:$0xff] }
 0x2d6   : > { %v6409_v22 = vpop.f32.mrf.mxu1  ;;  %v8245_v29 = vadd.f32 %v9241_v27, %v9240_v41  ;;  %v9243_v28 = vld [vmem:[#allocation58_spill] sm:$0xff]  ;;  %v8262_v31 = vadd.f32 %v9246_v55, %v8087_v43  ;;  %v9249_v9 = vld [vmem:[#allocation67_spill] sm:$0xff]  ;;  %v9252_v43 = vld [vmem:[#allocation73_spill] sm:$0xff] }
 0x2d7   : > { %v3131_v40 = vadd.f32 %v6409_v22, %v2933_v32  ;;  %v8249_v45 = vadd.f32 %v9243_v28, %v9242_v60  ;;  %v9247_v32 = vld [vmem:[#allocation72_spill] sm:$0xff]  ;;  %v8270_v41 = vadd.f32 %v9249_v9, %v8102_v33  ;;  %v9250_v27 = vld [vmem:[#allocation70_spill] sm:$0xff]  ;;  %v9251_v2 = vld [vmem:[#allocation71_spill] sm:$0xff]  ;;  %v8283_v55 = vadd.f32 %v9252_v43, %v8117_v63 }
 0x2d8   : > { %v3002_v5 = vpop.f32.mrf.mxu1  ;;  %v8266_v22 = vadd.f32 %v9248_v24, %v9247_v32  ;;  %v8274_v60 = vadd.f32 %v9250_v27, %v8107_v7  ;;  %v8279_v56 = vadd.f32 %v9251_v2, %v8114_v44  ;;  %v8287_v33 = vadd.f32 %v8104_v11, %v8123_v4  ;;  %v9261_v43 = vld [vmem:[#allocation33_spill] sm:$0xff] }
 0x2d9   : > { %v3170_v28 = vmul.f32 %v8225_v8, %v3131_v40  ;;  %v3129_v23 = vadd.f32 %v3002_v5, %v2931_v10  ;;  %v8291_v7 = vadd.f32 %v8111_v48, %v8132_v57  ;;  %v8295_v10 = vadd.f32 %v8120_v59, %v8137_v14  ;;  %v9253_v40 = vld [vmem:[#allocation7_spill] sm:$0xff]  ;;  %v2919_v5 = vpop.f32.mrf.mxu0 }
 0x2da   : > { %v6410_v32 = vpop.f32.mrf.mxu1  ;;  %v4484_v44 = vcombine.high %v9253_v40, %v9253_v40  ;;  %v8303_v11 = vadd.f32 %v8134_v62, %v8147_v46  ;;  %v8305_v4 = vadd.f32 %v6403_v0, %v2763_v37  ;;  %v8307_v48 = vadd.f32 %v2916_v19, %v2761_v12 }
 0x2db   : > { %v3209_v63 = vadd.f32 %v8258_v18, %v3170_v28  ;;  %v3168_v24 = vmul.f32 %v8225_v8, %v3129_v23  ;;  %v3132_v9 = vadd.f32 %v6410_v32, %v2934_v42  ;;  %v8311_v59 = vadd.f32 %v8161_v1, %v8164_v3 }
 0x2dc   : > { %9254 = vst [vmem:[#allocation24_spill] sm:$0xff] %v8303_v11  ;;  %9255 = vst [vmem:[#allocation29_spill] sm:$0xff] %v8305_v4  ;;  %v3005_v57 = vpop.f32.mrf.mxu1  ;;  %v5857_v14 = vrot.slane %v4484_v44, 9  ;;  %v8313_v27 = vadd.f32 %v6404_v20, %v2764_v36  ;;  %v8317_v2 = vadd.f32 %v2919_v5, %v2762_v25  ;;  %v9260_v37 = vrot.slane %v9253_v40, 9  ;;  %v9264_v25 = vld [vmem:[#allocation11_spill] sm:$0xff] }
 0x2dd   : > { %9256 = vst [vmem:[#allocation25_spill] sm:$0xff] %v8307_v48  ;;  %9257 = vst [vmem:[#allocation30_spill] sm:$0xff] %v8311_v59  ;;  %v3207_v28 = vadd.f32 %v8258_v18, %v3168_v24  ;;  %v3171_v42 = vmul.f32 %v8225_v8, %v3132_v9  ;;  %v3130_v23 = vadd.f32 %v3005_v57, %v2932_v47  ;;  %v3241_v62 = vmax.f32 %v3209_v63, 0.0 }
 0x2de   : > { %9258 = vst [vmem:[#allocation26_spill] sm:$0xff] %v8313_v27  ;;  %9259 = vst [vmem:[#allocation38_spill] sm:$0xff] %v8317_v2  ;;  %v6413_v46 = vpop.f32.mrf.mxu1  ;;  %v4959_v0 = vadd.f32 %v9260_v37, %v9253_v40  ;;  %v4960_v12 = vadd.f32 %v5857_v14, %v4484_v44  ;;  %v5016_v32 = vmul.f32 0.25, %v9261_v43  ;;  %v5086_v5 = vpack.c.bf16 %v9264_v25, %v9264_v25 }
 0x2df   : > { %v3239_v19 = vmax.f32 %v3207_v28, 0.0  ;;  %v3210_v1 = vadd.f32 %v8258_v18, %v3171_v42  ;;  %v3169_v3 = vmul.f32 %v8225_v8, %v3130_v23  ;;  %v3135_v36 = vadd.f32 %v6413_v46, %v2937_v35  ;;  %v9265_v46 = vld [vmem:[#allocation9_spill] sm:$0xff] }
 0x2e0   : > { %v3018_v20 = vpop.f32.mrf.mxu1  ;;  %v8325_v24 = vmul.f32 0.25, %v4959_v0  ;;  %v8327_v47 = vmul.f32 0.25, %v4960_v12  ;;  %v5080_v35 = vpack.c.bf16 %v5016_v32, %v5016_v32 }
 0x2e1   : > { %v3271_v63 = vadd.f32 %v3241_v62, %v3239_v19  ;;  %v3242_v9 = vmax.f32 %v3210_v1, 0.0  ;;  %v3208_v40 = vadd.f32 %v8258_v18, %v3169_v3  ;;  %v3174_v44 = vmul.f32 %v8225_v8, %v3135_v36 }
 0x2e2   : > { %9262 = vst [vmem:[#allocation10_spill] sm:$0xff] %v8325_v24  ;;  %9263 = vst [vmem:[#allocation41_spill] sm:$0xff] %v8327_v47  ;;  %v3133_v57 = vadd.f32 %v3018_v20, %v8205_v34  ;;  %v6414_v14 = vpop.f32.mrf.mxu1  ;;  %v8342_v34 = vunpack.c.l.b16 %v5080_v35  ;;  %v8344_v3 = vunpack.c.l.b16 %v5086_v5 }
 0x2e3   : > { %v3303_v23 = vcombine.high %v3271_v63, %v3271_v63  ;;  %v3310_v37 = vrot.slane %v3271_v63, %v9265_v46  ;;  %v3240_v0 = vmax.f32 %v3208_v40, 0.0  ;;  %v3213_v62 = vadd.f32 %v8258_v18, %v3174_v44 }
 0x2e4   : > { %v3172_v12 = vmul.f32 %v8225_v8, %v3133_v57  ;;  %v3136_v19 = vadd.f32 %v6414_v14, %v8208_v21  ;;  %v3021_v1 = vpop.f32.mrf.mxu1  ;;  %9266 = vst [vmem:[#allocation13_spill] sm:$0xff] %v8342_v34  ;;  %9267 = vst [vmem:[#allocation16_spill] sm:$0xff] %v8344_v3 }
 0x2e5   : > { %v3317_v36 = vrot.slane %v3303_v23, %v9265_v46  ;;  %v3318_v20 = vcombine.high %v3310_v37, %v3310_v37  ;;  %v5772_v43 = vrot.slane %v3310_v37, 9  ;;  %v3272_v32 = vadd.f32 %v3242_v9, %v3240_v0 }
 0x2e6   : > { %v3245_v25 = vmax.f32 %v3213_v62, 0.0  ;;  %v3211_v63 = vadd.f32 %v8258_v18, %v3172_v12  ;;  %v3175_v40 = vmul.f32 %v8225_v8, %v3136_v19  ;;  %v8350_v44 = vadd.f32 %v3021_v1, %v8212_v54  ;;  %v6417_v39 = vpop.f32.mrf.mxu1 }
 0x2e7   : > { %v3319_v57 = vcombine.high %v3317_v36, %v3317_v36  ;;  %v5773_v21 = vrot.slane %v3318_v20, 9  ;;  %v5774_v14 = vrot.slane %v3317_v36, 9  ;;  %v3831_v35 = vadd.f32 %v5772_v43, %v3310_v37 }
 0x2e8   : > { %v3320_v42 = vcombine.high %v3272_v32, %v3272_v32  ;;  %v3327_v5 = vrot.slane %v3272_v32, %v9265_v46  ;;  %v3243_v28 = vmax.f32 %v3211_v63, 0.0  ;;  %v8354_v23 = vadd.f32 %v8258_v18, %v3175_v40 }
 0x2e9   : > { %v5775_v9 = vrot.slane %v3319_v57, 9  ;;  %v3832_v0 = vadd.f32 %v5773_v21, %v3318_v20  ;;  %v3833_v62 = vadd.f32 %v5774_v14, %v3317_v36  ;;  %v3895_v12 = vmul.f32 0.25, %v3831_v35  ;;  %v3034_v21 = vpop.f32.mrf.mxu1 }
 0x2ea   : > { %v3334_v19 = vrot.slane %v3320_v42, %v9265_v46  ;;  %v3335_v54 = vcombine.high %v3327_v5, %v3327_v5  ;;  %v5776_v1 = vrot.slane %v3327_v5, 9  ;;  %v3273_v52 = vadd.f32 %v3245_v25, %v3243_v28 }
 0x2eb   : > { %v3834_v15 = vadd.f32 %v5775_v9, %v3319_v57  ;;  %v3896_v30 = vmul.f32 0.25, %v3832_v0  ;;  %v3897_v37 = vmul.f32 0.25, %v3833_v62  ;;  %v3959_v43 = vpack.c.bf16 %v3895_v12, %v3895_v12 }
 0x2ec   : > { %v8357_v13 = vcombine.high %v3334_v19, %v3334_v19  ;;  %v5777_v32 = vrot.slane %v3335_v54, 9  ;;  %v5778_v63 = vrot.slane %v3334_v19, 9  ;;  %v3835_v40 = vadd.f32 %v5776_v1, %v3327_v5 }
 0x2ed   : > { %v3898_v49 = vmul.f32 0.25, %v3834_v15  ;;  %v3960_v26 = vpack.c.bf16 %v3896_v30, %v3896_v30  ;;  %v3961_v20 = vpack.c.bf16 %v3897_v37, %v3897_v37  ;;  %v4088_v36 = vunpack.c.l.b16 %v3959_v43 }
 0x2ee   : > { %v3836_v14 = vadd.f32 %v5777_v32, %v3335_v54  ;;  %v3837_v35 = vadd.f32 %v5778_v63, %v3334_v19  ;;  %v3899_v42 = vmul.f32 0.25, %v3835_v40  ;;  %v3337_v58 = vcombine.high %v3273_v52, %v3273_v52  ;;  %v6418_v54 = vpop.f32.mrf.mxu1 }
 0x2ef   : > { %v3962_v16 = vpack.c.bf16 %v3898_v49, %v3898_v49  ;;  %v4089_v28 = vunpack.c.l.b16 %v3960_v26  ;;  %v8359_v25 = vunpack.c.l.b16 %v3961_v20  ;;  %v3344_v57 = vrot.slane %v3273_v52, %v9265_v46 }
 0x2f0   : > { %v3900_v9 = vmul.f32 0.25, %v3836_v14  ;;  %v8362_v0 = vmul.f32 0.25, %v3837_v35  ;;  %v3963_v62 = vpack.c.bf16 %v3899_v42, %v3899_v42  ;;  %v3351_v15 = vrot.slane %v3337_v58, %v9265_v46 }
 0x2f1   : > { %v8365_v30 = vunpack.c.l.b16 %v3962_v16  ;;  %v4152_v5 = vrot.slane %v4089_v28, 7  ;;  %v3352_v19 = vcombine.high %v3344_v57, %v3344_v57  ;;  %v5780_v37 = vrot.slane %v3344_v57, 9 }
 0x2f2   : > { %v3964_v1 = vpack.c.bf16 %v3900_v9, %v3900_v9  ;;  %v8368_v49 = vunpack.c.l.b16 %v3963_v62  ;;  %v3353_v26 = vcombine.high %v3351_v15, %v3351_v15  ;;  %v5782_v63 = vrot.slane %v3351_v15, 9  ;;  %v3037_v9 = vpop.f32.mrf.mxu1 }
 0x2f3   : > { %v8371_v52 = vsel %vm4153_vm2, %v4152_v5, %v4088_v36  ;;  %v5781_v32 = vrot.slane %v3352_v19, 9  ;;  %v3839_v20 = vadd.f32 %v5780_v37, %v3344_v57  ;;  %v3246_v42 = vmax.f32 %v8354_v23, 0.0 }
 0x2f4   : > { %v8374_v58 = vunpack.c.l.b16 %v3964_v1  ;;  %v5783_v40 = vrot.slane %v3353_v26, 9  ;;  %v3841_v35 = vadd.f32 %v5782_v63, %v3351_v15  ;;  %v3173_v28 = vmul.f32 %v8225_v8, %v8350_v44 }
 0x2f5   : > { %v3840_v14 = vadd.f32 %v5781_v32, %v3352_v19  ;;  %v3903_v62 = vmul.f32 0.25, %v3839_v20  ;;  %v3139_v5 = vadd.f32 %v6417_v39, %v8216_v61  ;;  %v3137_v43 = vadd.f32 %v3034_v21, %v8220_v51  ;;  %v6421_v39 = vpop.f32.mrf.mxu1 }
 0x2f6   : > { %v3842_v36 = vadd.f32 %v5783_v40, %v3353_v26  ;;  %v3905_v12 = vmul.f32 0.25, %v3841_v35  ;;  %v3212_v16 = vadd.f32 %v8258_v18, %v3173_v28  ;;  %v3140_v57 = vadd.f32 %v6418_v54, %v8229_v53 }
 0x2f7   : > { %v3904_v1 = vmul.f32 0.25, %v3840_v14  ;;  %v3967_v15 = vpack.c.bf16 %v3903_v62, %v3903_v62  ;;  %v3178_v23 = vmul.f32 %v8225_v8, %v3139_v5  ;;  %v3176_v37 = vmul.f32 %v8225_v8, %v3137_v43 }
 0x2f8   : > { %v3906_v19 = vmul.f32 0.25, %v3842_v36  ;;  %v3969_v32 = vpack.c.bf16 %v3905_v12, %v3905_v12  ;;  %v3244_v26 = vmax.f32 %v3212_v16, 0.0  ;;  %v3179_v63 = vmul.f32 %v8225_v8, %v3140_v57 }
 0x2f9   : > { %v3968_v44 = vpack.c.bf16 %v3904_v1, %v3904_v1  ;;  %v4096_v51 = vunpack.c.l.b16 %v3967_v15  ;;  %v3217_v21 = vadd.f32 %v8258_v18, %v3178_v23  ;;  %v3215_v40 = vadd.f32 %v8258_v18, %v3176_v37  ;;  %v8397_v1 = vpop.f32.mrf.mxu1 }
 0x2fa   : > { %v3970_v61 = vpack.c.bf16 %v3906_v19, %v3906_v19  ;;  %v8389_v53 = vunpack.c.l.b16 %v3969_v32  ;;  %v3274_v54 = vadd.f32 %v3246_v42, %v3244_v26  ;;  %v3218_v14 = vadd.f32 %v8258_v18, %v3179_v63 }
 0x2fb   : > { %v4097_v20 = vunpack.c.l.b16 %v3968_v44  ;;  %v3249_v43 = vmax.f32 %v3217_v21, 0.0  ;;  %v3247_v12 = vmax.f32 %v3215_v40, 0.0  ;;  %v3138_v16 = vadd.f32 %v3037_v9, %v8233_v38 }
 0x2fc   : > { %v8392_v35 = vunpack.c.l.b16 %v3970_v61  ;;  %v3354_v62 = vcombine.high %v3274_v54, %v3274_v54  ;;  %v3361_v5 = vrot.slane %v3274_v54, %v9265_v46  ;;  %v3250_v42 = vmax.f32 %v3218_v14, 0.0  ;;  %v8410_v54 = vpop.f32.mrf.mxu1 }
 0x2fd   : > { %v4173_v28 = vrot.slane %v4097_v20, 7  ;;  %v3275_v19 = vadd.f32 %v3249_v43, %v3247_v12  ;;  %v3177_v15 = vmul.f32 %v8225_v8, %v3138_v16  ;;  %v3143_v63 = vadd.f32 %v6421_v39, %v8237_v6 }
 0x2fe   : > { %v3368_v37 = vrot.slane %v3354_v62, %v9265_v46  ;;  %v3369_v38 = vcombine.high %v3361_v5, %v3361_v5  ;;  %v5784_v9 = vrot.slane %v3361_v5, 9  ;;  %v3053_v3 = vpop.f32.mrf.mxu1 }
 0x2ff   : > { %v8402_v23 = vsel %vm4153_vm2, %v4173_v28, %v4096_v51  ;;  %v3371_v44 = vcombine.high %v3275_v19, %v3275_v19  ;;  %v3378_v32 = vrot.slane %v3275_v19, %v9265_v46  ;;  %v3216_v26 = vadd.f32 %v8258_v18, %v3177_v15 }
 0x300   : > { %v8408_v61 = vcombine.high %v3368_v37, %v3368_v37  ;;  %v5785_v21 = vrot.slane %v3369_v38, 9  ;;  %v5786_v40 = vrot.slane %v3368_v37, 9  ;;  %v3843_v20 = vadd.f32 %v5784_v9, %v3361_v5 }
 0x301   : > { %v3385_v51 = vrot.slane %v3371_v44, %v9265_v46  ;;  %v3386_v14 = vcombine.high %v3378_v32, %v3378_v32  ;;  %v5788_v43 = vrot.slane %v3378_v32, 9  ;;  %v3248_v12 = vmax.f32 %v3216_v26, 0.0 }
 0x302   : > { %v3844_v16 = vadd.f32 %v5785_v21, %v3369_v38  ;;  %v3845_v28 = vadd.f32 %v5786_v40, %v3368_v37  ;;  %v3907_v62 = vmul.f32 0.25, %v3843_v20  ;;  %v3182_v19 = vmul.f32 %v8225_v8, %v3143_v63 }
 0x303   : > { %v3387_v15 = vcombine.high %v3385_v51, %v3385_v51  ;;  %v5789_v57 = vrot.slane %v3386_v14, 9  ;;  %v5790_v6 = vrot.slane %v3385_v51, 9  ;;  %v3847_v39 = vadd.f32 %v5788_v43, %v3378_v32 }
 0x304   : > { %v3908_v36 = vmul.f32 0.25, %v3844_v16  ;;  %v8414_v2 = vmul.f32 0.25, %v3845_v28  ;;  %v3971_v5 = vpack.c.bf16 %v3907_v62, %v3907_v62  ;;  %v3276_v9 = vadd.f32 %v3250_v42, %v3248_v12 }
 0x305   : > { %v5791_v34 = vrot.slane %v3387_v15, 9  ;;  %v3848_v44 = vadd.f32 %v5789_v57, %v3386_v14  ;;  %v3849_v47 = vadd.f32 %v5790_v6, %v3385_v51  ;;  %v3911_v24 = vmul.f32 0.25, %v3847_v39  ;;  %v6425_v57 = vpop.f32.mrf.mxu1 }
 0x306   : > { %v3972_v26 = vpack.c.bf16 %v3908_v36, %v3908_v36  ;;  %v8416_v38 = vunpack.c.l.b16 %v3971_v5  ;;  %v3388_v37 = vcombine.high %v3276_v9, %v3276_v9  ;;  %v3395_v63 = vrot.slane %v3276_v9, %v9265_v46 }
 0x307   : > { %v3850_v21 = vadd.f32 %v5791_v34, %v3387_v15  ;;  %v3912_v40 = vmul.f32 0.25, %v3848_v44  ;;  %v3913_v20 = vmul.f32 0.25, %v3849_v47  ;;  %v3975_v32 = vpack.c.bf16 %v3911_v24, %v3911_v24 }
 0x308   : > { %v8419_v43 = vunpack.c.l.b16 %v3972_v26  ;;  %v3402_v42 = vrot.slane %v3388_v37, %v9265_v46  ;;  %v3403_v12 = vcombine.high %v3395_v63, %v3395_v63  ;;  %v5792_v6 = vrot.slane %v3395_v63, 9  ;;  %v3066_v37 = vpop.f32.mrf.mxu1 }
 0x309   : > { %v3914_v51 = vmul.f32 0.25, %v3850_v21  ;;  %v3976_v14 = vpack.c.bf16 %v3912_v40, %v3912_v40  ;;  %v3977_v36 = vpack.c.bf16 %v3913_v20, %v3913_v20  ;;  %v4104_v28 = vunpack.c.l.b16 %v3975_v32 }
 0x30a   : > { %v3404_v62 = vcombine.high %v3402_v42, %v3402_v42  ;;  %v5793_v39 = vrot.slane %v3403_v12, 9  ;;  %v5794_v5 = vrot.slane %v3402_v42, 9  ;;  %v3221_v24 = vadd.f32 %v8258_v18, %v3182_v19 }
 0x30b   : > { %v3978_v34 = vpack.c.bf16 %v3914_v51, %v3914_v51  ;;  %v4105_v15 = vunpack.c.l.b16 %v3976_v14  ;;  %v4106_v47 = vunpack.c.l.b16 %v3977_v36  ;;  %v3851_v44 = vadd.f32 %v5792_v6, %v3395_v63  ;;  %v6426_v6 = vpop.f32.mrf.mxu1 }
 0x30c   : > { %v5795_v9 = vrot.slane %v3404_v62, 9  ;;  %v3852_v26 = vadd.f32 %v5793_v39, %v3403_v12  ;;  %v3853_v16 = vadd.f32 %v5794_v5, %v3402_v42  ;;  %v3253_v40 = vmax.f32 %v3221_v24, 0.0 }
 0x30d   : > { %v4107_v27 = vunpack.c.l.b16 %v3978_v34  ;;  %v4187_v48 = vrot.slane %v4105_v15, 7  ;;  %v4189_v21 = vrot.slane %v4106_v47, 6  ;;  %v3915_v32 = vmul.f32 0.25, %v3851_v44  ;;  %v3069_v47 = vpop.f32.mrf.mxu1 }
 0x30e   : > { %v3854_v20 = vadd.f32 %v5795_v9, %v3404_v62  ;;  %v3916_v4 = vmul.f32 0.25, %v3852_v26  ;;  %v3917_v59 = vmul.f32 0.25, %v3853_v16  ;;  %v3141_v14 = vadd.f32 %v8397_v1, %v8241_v17 }
 0x30f   : > { %v4188_v11 = vsel %vm4153_vm2, %v4187_v48, %v4104_v28  ;;  %v4191_v51 = vrot.slane %v4107_v27, 5  ;;  %v3144_v19 = vadd.f32 %v8410_v54, %v8245_v29  ;;  %v3979_v12 = vpack.c.bf16 %v3915_v32, %v3915_v32 }
 0x310   : > { %v4190_v63 = vsel %vm4156_vm3, %v4189_v21, %v4188_v11  ;;  %v3918_v42 = vmul.f32 0.25, %v3854_v20  ;;  %v3980_v36 = vpack.c.bf16 %v3916_v4, %v3916_v4  ;;  %v3981_v62 = vpack.c.bf16 %v3917_v59, %v3917_v59 }
 0x311   : > { %v4192_v39 = vsel %vm4159_vm4, %v4191_v51, %v4190_v63  ;;  %v3180_v16 = vmul.f32 %v8225_v8, %v3141_v14  ;;  %v3183_v48 = vmul.f32 %v8225_v8, %v3144_v19  ;;  %v4108_v28 = vunpack.c.l.b16 %v3979_v12  ;;  %v6429_v12 = vpop.f32.mrf.mxu1 }
 0x312   : > { %v3982_v27 = vpack.c.bf16 %v3918_v42, %v3918_v42  ;;  %v4109_v17 = vunpack.c.l.b16 %v3980_v36  ;;  %v3142_v1 = vadd.f32 %v3053_v3, %v8249_v45  ;;  %v4110_v29 = vunpack.c.l.b16 %v3981_v62 }
 0x313   : > { %v3219_v11 = vadd.f32 %v8258_v18, %v3180_v16  ;;  %v3222_v54 = vadd.f32 %v8258_v18, %v3183_v48  ;;  %v3147_v4 = vadd.f32 %v6425_v57, %v8253_v50  ;;  %v4193_v59 = vrot.slane %v4108_v28, 4 }
 0x314   : > { %v4111_v5 = vunpack.c.l.b16 %v3982_v27  ;;  %v4195_v34 = vrot.slane %v4109_v17, 3  ;;  %v3181_v15 = vmul.f32 %v8225_v8, %v3142_v1  ;;  %v4197_v24 = vrot.slane %v4110_v29, 2 }
 0x315   : > { %v3251_v9 = vmax.f32 %v3219_v11, 0.0  ;;  %v3254_v44 = vmax.f32 %v3222_v54, 0.0  ;;  %v3186_v26 = vmul.f32 %v8225_v8, %v3147_v4  ;;  %v4194_v45 = vsel %vm4162_vm5, %v4193_v59, %v4192_v39 }
 0x316   : > { %v4199_v3 = vrot.slane %v4111_v5, 1  ;;  %v3220_v21 = vadd.f32 %v8258_v18, %v3181_v15  ;;  %v3145_v20 = vadd.f32 %v3066_v37, %v8262_v31  ;;  %v4196_v50 = vsel %vm4165_vm6, %v4195_v34, %v4194_v45 }
 0x317   : > { %v3277_v57 = vadd.f32 %v3253_v40, %v3251_v9  ;;  %v3225_v32 = vadd.f32 %v8258_v18, %v3186_v26  ;;  %v3148_v51 = vadd.f32 %v6426_v6, %v8266_v22  ;;  %v4198_v14 = vsel %vm4168_vm7, %v4197_v24, %v4196_v50 }
 0x318   : > { %v3252_v19 = vmax.f32 %v3220_v21, 0.0  ;;  %v3184_v63 = vmul.f32 %v8225_v8, %v3145_v20  ;;  %v3146_v42 = vadd.f32 %v3069_v47, %v8270_v41  ;;  %v8449_v36 = vsel %vm4171_vm13, %v4199_v3, %v4198_v14 }
 0x319   : > { %v3405_v62 = vcombine.high %v3277_v57, %v3277_v57  ;;  %v3412_v31 = vrot.slane %v3277_v57, %v9265_v46  ;;  %v3257_v37 = vmax.f32 %v3225_v32, 0.0  ;;  %v3187_v22 = vmul.f32 %v8225_v8, %v3148_v51 }
 0x31a   : > { %v3278_v40 = vadd.f32 %v3254_v44, %v3252_v19  ;;  %v3223_v39 = vadd.f32 %v8258_v18, %v3184_v63  ;;  %v8455_v6 = vmul.f32 %v8225_v8, %v3146_v42  ;;  %v8459_v27 = vadd.f32 %v6429_v12, %v8274_v60 }
 0x31b   : > { %v3419_v16 = vrot.slane %v3405_v62, %v9265_v46  ;;  %v3420_v48 = vcombine.high %v3412_v31, %v3412_v31  ;;  %v5796_v41 = vrot.slane %v3412_v31, 9  ;;  %v8463_v29 = vadd.f32 %v8258_v18, %v3187_v22 }
 0x31c   : > { %v3422_v28 = vcombine.high %v3278_v40, %v3278_v40  ;;  %v3429_v17 = vrot.slane %v3278_v40, %v9265_v46  ;;  %v3255_v1 = vmax.f32 %v3223_v39, 0.0 }
 0x31d   : > { %v3421_v11 = vcombine.high %v3419_v16, %v3419_v16  ;;  %v5797_v54 = vrot.slane %v3420_v48, 9  ;;  %v5798_v4 = vrot.slane %v3419_v16, 9  ;;  %v3855_v5 = vadd.f32 %v5796_v41, %v3412_v31 }
 0x31e   : > { %v3436_v59 = vrot.slane %v3422_v28, %v9265_v46  ;;  %v3437_v34 = vcombine.high %v3429_v17, %v3429_v17  ;;  %v5800_v15 = vrot.slane %v3429_v17, 9  ;;  %v3279_v47 = vadd.f32 %v3257_v37, %v3255_v1 }
 0x31f   : > { %v5799_v24 = vrot.slane %v3421_v11, 9  ;;  %v3856_v9 = vadd.f32 %v5797_v54, %v3420_v48  ;;  %v3857_v60 = vadd.f32 %v5798_v4, %v3419_v16  ;;  %v3919_v44 = vmul.f32 0.25, %v3855_v5 }
 0x320   : > { %v3438_v26 = vcombine.high %v3436_v59, %v3436_v59  ;;  %v5801_v45 = vrot.slane %v3437_v34, 9  ;;  %v5802_v3 = vrot.slane %v3436_v59, 9  ;;  %v3859_v21 = vadd.f32 %v5800_v15, %v3429_v17 }
 0x321   : > { %v3858_v20 = vadd.f32 %v5799_v24, %v3421_v11  ;;  %v3920_v50 = vmul.f32 0.25, %v3856_v9  ;;  %v3921_v57 = vmul.f32 0.25, %v3857_v60  ;;  %v3983_v32 = vpack.c.bf16 %v3919_v44, %v3919_v44 }
 0x322   : > { %v5803_v51 = vrot.slane %v3438_v26, 9  ;;  %v3860_v14 = vadd.f32 %v5801_v45, %v3437_v34  ;;  %v3861_v19 = vadd.f32 %v5802_v3, %v3436_v59  ;;  %v3923_v63 = vmul.f32 0.25, %v3859_v21 }
 0x323   : > { %v3922_v42 = vmul.f32 0.25, %v3858_v20  ;;  %v3984_v12 = vpack.c.bf16 %v3920_v50, %v3920_v50  ;;  %v3985_v62 = vpack.c.bf16 %v3921_v57, %v3921_v57  ;;  %v4112_v31 = vunpack.c.l.b16 %v3983_v32  ;;  %v3082_v32 = vpop.f32.mrf.mxu1 }
 0x324   : > { %v3862_v37 = vadd.f32 %v5803_v51, %v3438_v26  ;;  %v3924_v40 = vmul.f32 0.25, %v3860_v14  ;;  %v3925_v39 = vmul.f32 0.25, %v3861_v19  ;;  %v3987_v22 = vpack.c.bf16 %v3923_v63, %v3923_v63 }
 0x325   : > { %v3986_v16 = vpack.c.bf16 %v3922_v42, %v3922_v42  ;;  %v4113_v48 = vunpack.c.l.b16 %v3984_v12  ;;  %v4114_v41 = vunpack.c.l.b16 %v3985_v62  ;;  %v3439_v28 = vcombine.high %v3279_v47, %v3279_v47 }
 0x326   : > { %v3926_v17 = vmul.f32 0.25, %v3862_v37  ;;  %v3988_v1 = vpack.c.bf16 %v3924_v40, %v3924_v40  ;;  %v3989_v11 = vpack.c.bf16 %v3925_v39, %v3925_v39  ;;  %v4116_v54 = vunpack.c.l.b16 %v3987_v22 }
 0x327   : > { %v4115_v4 = vunpack.c.l.b16 %v3986_v16  ;;  %v4201_v5 = vrot.slane %v4113_v48, 7  ;;  %v4203_v59 = vrot.slane %v4114_v41, 6  ;;  %v3446_v34 = vrot.slane %v3279_v47, %v9265_v46 }
 0x328   : > { %v3990_v15 = vpack.c.bf16 %v3926_v17, %v3926_v17  ;;  %v4117_v24 = vunpack.c.l.b16 %v3988_v1  ;;  %v4118_v9 = vunpack.c.l.b16 %v3989_v11  ;;  %v4207_v60 = vrot.slane %v4116_v54, 4 }
 0x329   : > { %v4202_v44 = vsel %vm4153_vm2, %v4201_v5, %v4112_v31  ;;  %v4205_v26 = vrot.slane %v4115_v4, 5  ;;  %v3453_v45 = vrot.slane %v3439_v28, %v9265_v46  ;;  %v3454_v3 = vcombine.high %v3446_v34, %v3446_v34  ;;  %v6430_v28 = vpop.f32.mrf.mxu1 }
 0x32a   : > { %v4204_v21 = vsel %vm4156_vm3, %v4203_v59, %v4202_v44  ;;  %v4119_v20 = vunpack.c.l.b16 %v3990_v15  ;;  %v4209_v50 = vrot.slane %v4117_v24, 3  ;;  %v4211_v57 = vrot.slane %v4118_v9, 2 }
 0x32b   : > { %v4206_v51 = vsel %vm4159_vm4, %v4205_v26, %v4204_v21  ;;  %v3455_v14 = vcombine.high %v3453_v45, %v3453_v45  ;;  %v5804_v47 = vrot.slane %v3446_v34, 9  ;;  %v5805_v19 = vrot.slane %v3454_v3, 9  ;;  %v3085_v26 = vpop.f32.mrf.mxu1 }
 0x32c   : > { %v4208_v63 = vsel %vm4162_vm5, %v4207_v60, %v4206_v51  ;;  %v4213_v42 = vrot.slane %v4119_v20, 1  ;;  %v5806_v12 = vrot.slane %v3453_v45, 9  ;;  %v3258_v62 = vmax.f32 %v8463_v29, 0.0 }
 0x32d   : > { %v4210_v31 = vsel %vm4165_vm6, %v4209_v50, %v4208_v63  ;;  %v5807_v37 = vrot.slane %v3455_v14, 9  ;;  %v3863_v40 = vadd.f32 %v5804_v47, %v3446_v34  ;;  %v3864_v39 = vadd.f32 %v5805_v19, %v3454_v3 }
 0x32e   : > { %v4212_v22 = vsel %vm4168_vm7, %v4211_v57, %v4210_v31  ;;  %v3865_v16 = vadd.f32 %v5806_v12, %v3453_v45  ;;  %v3224_v48 = vadd.f32 %v8258_v18, %v8455_v6  ;;  %v3190_v41 = vmul.f32 %v8225_v8, %v8459_v27 }
 0x32f   : > { %v8480_v17 = vsel %vm4171_vm13, %v4213_v42, %v4212_v22  ;;  %v3866_v1 = vadd.f32 %v5807_v37, %v3455_v14  ;;  %v3927_v29 = vmul.f32 0.25, %v3863_v40  ;;  %v3928_v11 = vmul.f32 0.25, %v3864_v39 }
 0x330   : > { %v3929_v54 = vmul.f32 0.25, %v3865_v16  ;;  %v3256_v4 = vmax.f32 %v3224_v48, 0.0  ;;  %v3229_v5 = vadd.f32 %v8258_v18, %v3190_v41  ;;  %v3149_v59 = vadd.f32 %v3082_v32, %v8279_v56 }
 0x331   : > { %v3930_v34 = vmul.f32 0.25, %v3866_v1  ;;  %v3991_v15 = vpack.c.bf16 %v3927_v29, %v3927_v29  ;;  %v3992_v24 = vpack.c.bf16 %v3928_v11, %v3928_v11  ;;  %v3152_v6 = vadd.f32 %v6430_v28, %v8283_v55  ;;  %v8506_v29 = vpop.f32.mrf.mxu1 }
 0x332   : > { %v3993_v9 = vpack.c.bf16 %v3929_v54, %v3929_v54  ;;  %v3280_v27 = vadd.f32 %v3258_v62, %v3256_v4  ;;  %v3261_v60 = vmax.f32 %v3229_v5, 0.0  ;;  %v3188_v44 = vmul.f32 %v8225_v8, %v3149_v59 }
 0x333   : > { %v3994_v45 = vpack.c.bf16 %v3930_v34, %v3930_v34  ;;  %v4120_v3 = vunpack.c.l.b16 %v3991_v15  ;;  %v4121_v21 = vunpack.c.l.b16 %v3992_v24  ;;  %v3191_v20 = vmul.f32 %v8225_v8, %v3152_v6 }
 0x334   : > { %v8487_v50 = vunpack.c.l.b16 %v3993_v9  ;;  %v3456_v57 = vcombine.high %v3280_v27, %v3280_v27  ;;  %v3463_v56 = vrot.slane %v3280_v27, %v9265_v46  ;;  %v3227_v32 = vadd.f32 %v8258_v18, %v3188_v44 }
 0x335   : > { %v8491_v51 = vunpack.c.l.b16 %v3994_v45  ;;  %v4215_v55 = vrot.slane %v4121_v21, 7  ;;  %v3230_v14 = vadd.f32 %v8258_v18, %v3191_v20  ;;  %v3150_v47 = vadd.f32 %v3085_v26, %v8287_v33 }
 0x336   : > { %v4217_v19 = vrot.slane %v8487_v50, 6  ;;  %v3470_v63 = vrot.slane %v3456_v57, %v9265_v46  ;;  %v3471_v42 = vcombine.high %v3463_v56, %v3463_v56  ;;  %v5808_v12 = vrot.slane %v3463_v56, 9 }
 0x337   : > { %v8498_v62 = vsel %vm4153_vm2, %v4215_v55, %v4120_v3  ;;  %v4219_v31 = vrot.slane %v8491_v51, 5  ;;  %v3259_v37 = vmax.f32 %v3227_v32, 0.0  ;;  %v3262_v40 = vmax.f32 %v3230_v14, 0.0  ;;  %v8517_v3 = vpop.f32.mrf.mxu1 }
 0x338   : > { %v8501_v39 = vcombine.high %v3470_v63, %v3470_v63  ;;  %v5809_v22 = vrot.slane %v3471_v42, 9  ;;  %v5810_v16 = vrot.slane %v3470_v63, 9  ;;  %v3867_v48 = vadd.f32 %v5808_v12, %v3463_v56 }
 0x339   : > { %v3281_v41 = vadd.f32 %v3261_v60, %v3259_v37  ;;  %v3189_v33 = vmul.f32 %v8225_v8, %v3150_v47  ;;  %v5779_v28 = vrot.slane %v8357_v13, 9  ;;  %v5787_v1 = vrot.slane %v8408_v61, 9 }
 0x33a   : > { %v3868_v11 = vadd.f32 %v5809_v22, %v3471_v42  ;;  %v3869_v54 = vadd.f32 %v5810_v16, %v3470_v63  ;;  %v3931_v4 = vmul.f32 0.25, %v3867_v48  ;;  %v3965_v5 = vpack.c.bf16 %v8362_v0, %v8362_v0  ;;  %v8524_v22 = vpop.f32.mrf.mxu1 }
 0x33b   : > { %v3473_v59 = vcombine.high %v3281_v41, %v3281_v41  ;;  %v3480_v34 = vrot.slane %v3281_v41, %v9265_v46  ;;  %v3228_v15 = vadd.f32 %v8258_v18, %v3189_v33  ;;  %v3838_v24 = vadd.f32 %v5779_v28, %v8357_v13 }
 0x33c   : > { %v3932_v8 = vmul.f32 0.25, %v3868_v11  ;;  %v8513_v6 = vmul.f32 0.25, %v3869_v54  ;;  %v3995_v9 = vpack.c.bf16 %v3931_v4, %v3931_v4  ;;  %v3846_v27 = vadd.f32 %v5787_v1, %v8408_v61 }
 0x33d   : > { %v3487_v60 = vrot.slane %v3473_v59, %v9265_v46  ;;  %v3488_v44 = vcombine.high %v3480_v34, %v3480_v34  ;;  %v5812_v26 = vrot.slane %v3480_v34, 9  ;;  %v3260_v45 = vmax.f32 %v3228_v15, 0.0 }
 0x33e   : > { %v3996_v0 = vpack.c.bf16 %v3932_v8, %v3932_v8  ;;  %v8519_v21 = vunpack.c.l.b16 %v3995_v9  ;;  %v3902_v20 = vmul.f32 0.25, %v3838_v24  ;;  %v3910_v18 = vmul.f32 0.25, %v3846_v27  ;;  %v3101_v27 = vpop.f32.mrf.mxu1 }
 0x33f   : > { %v3489_v57 = vcombine.high %v3487_v60, %v3487_v60  ;;  %v5813_v13 = vrot.slane %v3488_v44, 9  ;;  %v5814_v56 = vrot.slane %v3487_v60, 9  ;;  %v3871_v32 = vadd.f32 %v5812_v26, %v3480_v34 }
 0x340   : > { %v8521_v55 = vunpack.c.l.b16 %v3996_v0  ;;  %v3282_v14 = vadd.f32 %v3262_v40, %v3260_v45  ;;  %v3966_v47 = vpack.c.bf16 %v3902_v20, %v3902_v20  ;;  %v3973_v41 = vpack.c.bf16 %v8414_v2, %v8414_v2 }
 0x341   : > { %v5815_v63 = vrot.slane %v3489_v57, 9  ;;  %v3872_v42 = vadd.f32 %v5813_v13, %v3488_v44  ;;  %v3873_v12 = vadd.f32 %v5814_v56, %v3487_v60  ;;  %v3935_v37 = vmul.f32 0.25, %v3871_v32 }
 0x342   : > { %v3490_v16 = vcombine.high %v3282_v14, %v3282_v14  ;;  %v3497_v48 = vrot.slane %v3282_v14, %v9265_v46  ;;  %v3974_v33 = vpack.c.bf16 %v3910_v18, %v3910_v18  ;;  %v4094_v34 = vunpack.c.l.b16 %v3965_v5 }
 0x343   : > { %v3874_v28 = vadd.f32 %v5815_v63, %v3489_v57  ;;  %v3936_v1 = vmul.f32 0.25, %v3872_v42  ;;  %v3937_v11 = vmul.f32 0.25, %v3873_v12  ;;  %v3999_v54 = vpack.c.bf16 %v3935_v37, %v3935_v37  ;;  %v6437_v12 = vpop.f32.mrf.mxu1 }
 0x344   : > { %v3504_v40 = vrot.slane %v3490_v16, %v9265_v46  ;;  %v3505_v4 = vcombine.high %v3497_v48, %v3497_v48  ;;  %v5816_v59 = vrot.slane %v3497_v48, 9  ;;  %v4095_v18 = vunpack.c.l.b16 %v3966_v47 }
 0x345   : > { %v3938_v15 = vmul.f32 0.25, %v3874_v28  ;;  %v4000_v24 = vpack.c.bf16 %v3936_v1, %v3936_v1  ;;  %v4001_v8 = vpack.c.bf16 %v3937_v11, %v3937_v11  ;;  %v4128_v9 = vunpack.c.l.b16 %v3999_v54 }
 0x346   : > { %v8530_v60 = vcombine.high %v3504_v40, %v3504_v40  ;;  %v5817_v44 = vrot.slane %v3505_v4, 9  ;;  %v5818_v26 = vrot.slane %v3504_v40, 9  ;;  %v3875_v2 = vadd.f32 %v5816_v59, %v3497_v48 }
 0x347   : > { %v4002_v45 = vpack.c.bf16 %v3938_v15, %v3938_v15  ;;  %v4129_v0 = vunpack.c.l.b16 %v4000_v24  ;;  %v8532_v20 = vunpack.c.l.b16 %v4001_v8  ;;  %v4102_v32 = vunpack.c.l.b16 %v3973_v41 }
 0x348   : > { %v3876_v57 = vadd.f32 %v5817_v44, %v3505_v4  ;;  %v3877_v13 = vadd.f32 %v5818_v26, %v3504_v40  ;;  %v3939_v56 = vmul.f32 0.25, %v3875_v2  ;;  %v4103_v42 = vunpack.c.l.b16 %v3974_v33  ;;  %v3114_v44 = vpop.f32.mrf.mxu1 }
 0x349   : > { %v8534_v5 = vunpack.c.l.b16 %v4002_v45  ;;  %v4229_v14 = vrot.slane %v4129_v0, 7  ;;  %v9268_v28 = vrot.slane %v8359_v25, 6  ;;  %v9269_v11 = vrot.slane %v8365_v30, 5 }
 0x34a   : > { %v3940_v37 = vmul.f32 0.25, %v3876_v57  ;;  %v8537_v16 = vmul.f32 0.25, %v3877_v13  ;;  %v4003_v48 = vpack.c.bf16 %v3939_v56, %v3939_v56  ;;  %v4164_v33 = vrot.slane %v8374_v58, 3  ;;  %v9274_v56 = vld [vmem:[#allocation24_spill] sm:$0xff] }
 0x34b   : > { %v4157_v47 = vsel %vm4156_vm3, %v9268_v28, %v8371_v52  ;;  %v8544_v1 = vsel %vm4153_vm2, %v4229_v14, %v4128_v9  ;;  %v9270_v59 = vrot.slane %v8368_v49, 4  ;;  %v4167_v15 = vrot.slane %v4094_v34, 2 }
 0x34c   : > { %v4160_v54 = vsel %vm4159_vm4, %v9269_v11, %v4157_v47  ;;  %v4004_v40 = vpack.c.bf16 %v3940_v37, %v3940_v37  ;;  %v8551_v4 = vunpack.c.l.b16 %v4003_v48  ;;  %v4170_v24 = vrot.slane %v4095_v18, 1  ;;  %v9275_v37 = vld [vmem:[#allocation30_spill] sm:$0xff]  ;;  %v9277_v47 = vld [vmem:[#allocation25_spill] sm:$0xff] }
 0x34d   : > { %v4163_v25 = vsel %vm4162_vm5, %v9270_v59, %v4160_v54  ;;  %v9271_v8 = vrot.slane %v8389_v53, 6  ;;  %v4181_v9 = vrot.slane %v8419_v43, 3  ;;  %v9272_v2 = vrot.slane %v8392_v35, 5 }
 0x34e   : > { %v4166_v52 = vsel %vm4165_vm6, %v4164_v33, %v4163_v25  ;;  %v8562_v58 = vunpack.c.l.b16 %v4004_v40  ;;  %v9273_v0 = vrot.slane %v8416_v38, 4  ;;  %v4185_v18 = vrot.slane %v4103_v42, 1  ;;  %v9276_v38 = vld [vmem:[#allocation29_spill] sm:$0xff]  ;;  %v6438_v42 = vpop.f32.mrf.mxu1 }
 0x34f   : > { %v4176_v30 = vsel %vm4156_vm3, %v9271_v8, %v8402_v23  ;;  %v4169_v49 = vsel %vm4168_vm7, %v4167_v15, %v4166_v52  ;;  %v4183_v23 = vrot.slane %v4102_v32, 2  ;;  %v3155_v57 = vadd.f32 %v8506_v29, %v8291_v7  ;;  %v8588_v7 = vld [vmem:[%s8989_s7] ss:$0 sm:$0xff]  ;;  %v9278_v15 = vld [vmem:[#allocation26_spill] sm:$0xff] }
 0x350   : > { %v4178_v34 = vsel %vm4159_vm4, %v9272_v2, %v4176_v30  ;;  %v4172_v45 = vsel %vm4171_vm13, %v4170_v24, %v4169_v49  ;;  %v3153_v13 = vadd.f32 %v8517_v3, %v8295_v10  ;;  %v3156_v35 = vadd.f32 %v8524_v22, %v9274_v56  ;;  %v8599_v33 = vld [vmem:[%s8990_s8] ss:$0 sm:$0xff] }
 0x351   : > { %v4180_v53 = vsel %vm4162_vm5, %v9273_v0, %v4178_v34  ;;  %v3154_v48 = vadd.f32 %v3101_v27, %v9275_v37  ;;  %v3159_v28 = vadd.f32 %v6437_v12, %v9276_v38  ;;  %v3157_v32 = vadd.f32 %v3114_v44, %v9277_v47  ;;  %v9284_v37 = vld [vmem:[#allocation5_spill] sm:$0xff] }
 0x352   : > { %v4182_v43 = vsel %vm4165_vm6, %v4181_v9, %v4180_v53  ;;  %v3194_v10 = vmul.f32 %v8588_v7, %v3155_v57  ;;  %v3192_v29 = vmul.f32 %v8588_v7, %v3153_v13  ;;  %v3195_v3 = vmul.f32 %v8588_v7, %v3156_v35  ;;  %v9279_v9 = vld [vmem:[#allocation10_spill] sm:$0xff] }
 0x353   : > { %v4184_v14 = vsel %vm4168_vm7, %v4183_v23, %v4182_v43  ;;  %v3193_v27 = vmul.f32 %v8588_v7, %v3154_v48  ;;  %v3198_v12 = vmul.f32 %v8588_v7, %v3159_v28  ;;  %v3196_v54 = vmul.f32 %v8588_v7, %v3157_v32  ;;  %v9281_v43 = vld [vmem:[#allocation41_spill] sm:$0xff] }
 0x354   : > { %v4186_v11 = vsel %vm4171_vm13, %v4185_v18, %v4184_v14  ;;  %v3233_v40 = vadd.f32 %v8599_v33, %v3194_v10  ;;  %v3231_v59 = vadd.f32 %v8599_v33, %v3192_v29  ;;  %v3234_v25 = vadd.f32 %v8599_v33, %v3195_v3  ;;  %v9283_v14 = vld [vmem:[#allocation8_spill] sm:$0xff]  ;;  %v9286_v28 = vld [vmem:[#allocation13_spill] sm:$0xff] }
 0x355   : > { %v4271_v22 = vpack.c.b16 %v4186_v11, %v4172_v45  ;;  %v3160_v52 = vadd.f32 %v6438_v42, %v9278_v15  ;;  %v3232_v24 = vadd.f32 %v8599_v33, %v3193_v27  ;;  %v3237_v8 = vadd.f32 %v8599_v33, %v3198_v12  ;;  %v9287_v11 = vld [vmem:[#allocation31_spill] sm:$0xff]  ;;  %v9289_v3 = vld [vmem:[#allocation37_spill] sm:$0xff] }
 0x356   : > { %v3235_v30 = vadd.f32 %v8599_v33, %v3196_v54  ;;  %v9280_v44 = vpack.c.bf16 %v9279_v9, %v9279_v9  ;;  %v3265_v2 = vmax.f32 %v3233_v40, 0.0  ;;  %v3263_v34 = vmax.f32 %v3231_v59, 0.0 }
 0x357   : > { %6441 = vmatprep.mubr.msk.bf16.mxu0 %vm1211_vm10, %v4271_v22  ;;  %v3266_v45 = vmax.f32 %v3234_v25, 0.0  ;;  %v3199_v0 = vmul.f32 %v8588_v7, %v3160_v52  ;;  %v3264_v53 = vmax.f32 %v3232_v24, 0.0  ;;  %v3269_v23 = vmax.f32 %v3237_v8, 0.0  ;;  %v9290_v22 = vld [vmem:[#allocation39_spill] sm:$0xff]  ;;  %v9292_v25 = vld [vmem:[#allocation34_spill] sm:$0xff] }
 0x358   : > { %v8612_v49 = vunpack.c.l.b16 %v9280_v44  ;;  %v3267_v18 = vmax.f32 %v3235_v30, 0.0  ;;  %v9282_v57 = vpack.c.bf16 %v9281_v43, %v9281_v43  ;;  %v3283_v56 = vadd.f32 %v3265_v2, %v3263_v34 }
 0x359   : > { %v8621_v35 = vadd.f32 %v8599_v33, %v3199_v0  ;;  %v9285_v48 = vrot.slane %v9284_v37, 5  ;;  %v5278_v47 = vrot.slane %v9286_v28, 1  ;;  %v3284_v32 = vadd.f32 %v3266_v45, %v3264_v53  ;;  %v9294_v45 = vld [vmem:[#allocation35_spill] sm:$0xff] }
 0x35a   : > { %v8618_v13 = vunpack.c.l.b16 %v9282_v57  ;;  %v3285_v42 = vadd.f32 %v3269_v23, %v3267_v18  ;;  %v9288_v10 = vrot.slane %v9287_v11, 4  ;;  %v9291_v27 = vrot.slane %v9290_v22, 7 }
 0x35b   : > { %v5271_v38 = vsel %vm4159_vm4, %v9285_v48, %v9283_v14  ;;  %v3507_v54 = vcombine.high %v3283_v56, %v3283_v56  ;;  %v3514_v40 = vrot.slane %v3283_v56, %v9265_v46  ;;  %v3270_v59 = vmax.f32 %v8621_v35, 0.0 }
 0x35c   : > { %v5273_v29 = vsel %vm4162_vm5, %v9288_v10, %v5271_v38  ;;  %v8635_v12 = vsel %vm4153_vm2, %v9291_v27, %v9289_v3  ;;  %v9293_v15 = vrot.slane %v9292_v25, 3  ;;  %v3524_v24 = vcombine.high %v3284_v32, %v3284_v32 }
 0x35d   : > { %v3531_v8 = vrot.slane %v3284_v32, %v9265_v46  ;;  %v3541_v30 = vcombine.high %v3285_v42, %v3285_v42  ;;  %v3548_v9 = vrot.slane %v3285_v42, %v9265_v46  ;;  %v3521_v44 = vrot.slane %v3507_v54, %v9265_v46 }
 0x35e   : > { %v5275_v52 = vsel %vm4165_vm6, %v9293_v15, %v5273_v29  ;;  %v3522_v2 = vcombine.high %v3514_v40, %v3514_v40  ;;  %v5820_v34 = vrot.slane %v3514_v40, 9  ;;  %v9295_v0 = vrot.slane %v9294_v45, 2 }
 0x35f   : > { %v3538_v23 = vrot.slane %v3524_v24, %v9265_v46  ;;  %v3539_v18 = vcombine.high %v3531_v8, %v3531_v8  ;;  %v5824_v43 = vrot.slane %v3531_v8, 9  ;;  %v3555_v57 = vrot.slane %v3541_v30, %v9265_v46 }
 0x360   : > { %v5277_v53 = vsel %vm4168_vm7, %v9295_v0, %v5275_v52  ;;  %v3523_v56 = vcombine.high %v3521_v44, %v3521_v44  ;;  %v5821_v14 = vrot.slane %v3522_v2, 9  ;;  %v5822_v37 = vrot.slane %v3521_v44, 9 }
 0x361   : > { %v3879_v48 = vadd.f32 %v5820_v34, %v3514_v40  ;;  %v3540_v38 = vcombine.high %v3538_v23, %v3538_v23  ;;  %v5825_v32 = vrot.slane %v3539_v18, 9  ;;  %v5826_v42 = vrot.slane %v3538_v23, 9 }
 0x362   : > { %v3883_v11 = vadd.f32 %v5824_v43, %v3531_v8  ;;  %v5823_v10 = vrot.slane %v3523_v56, 9  ;;  %v3880_v29 = vadd.f32 %v5821_v14, %v3522_v2  ;;  %v3881_v3 = vadd.f32 %v5822_v37, %v3521_v44 }
 0x363   : > { %v3943_v22 = vmul.f32 0.25, %v3879_v48  ;;  %v5827_v27 = vrot.slane %v3540_v38, 9  ;;  %v3884_v54 = vadd.f32 %v5825_v32, %v3539_v18  ;;  %v3885_v25 = vadd.f32 %v5826_v42, %v3538_v23 }
 0x364   : > { %v3947_v15 = vmul.f32 0.25, %v3883_v11  ;;  %v3882_v52 = vadd.f32 %v5823_v10, %v3523_v56  ;;  %v3944_v24 = vmul.f32 0.25, %v3880_v29  ;;  %v3945_v45 = vmul.f32 0.25, %v3881_v3 }
 0x365   : > { %v4007_v30 = vpack.c.bf16 %v3943_v22, %v3943_v22  ;;  %v3886_v0 = vadd.f32 %v5827_v27, %v3540_v38  ;;  %v3948_v26 = vmul.f32 0.25, %v3884_v54  ;;  %v3949_v41 = vmul.f32 0.25, %v3885_v25 }
 0x366   : > { %v4011_v40 = vpack.c.bf16 %v3947_v15, %v3947_v15  ;;  %v3946_v34 = vmul.f32 0.25, %v3882_v52  ;;  %v4008_v63 = vpack.c.bf16 %v3944_v24, %v3944_v24  ;;  %v4009_v61 = vpack.c.bf16 %v3945_v45, %v3945_v45 }
 0x367   : > { %v4136_v8 = vunpack.c.l.b16 %v4007_v30  ;;  %v8650_v43 = vmul.f32 0.25, %v3886_v0  ;;  %v4012_v44 = vpack.c.bf16 %v3948_v26, %v3948_v26  ;;  %v4013_v2 = vpack.c.bf16 %v3949_v41, %v3949_v41 }
 0x368   : > { %v8652_v14 = vunpack.c.l.b16 %v4011_v40  ;;  %v4010_v23 = vpack.c.bf16 %v3946_v34, %v3946_v34  ;;  %v4137_v18 = vunpack.c.l.b16 %v4008_v63  ;;  %v4138_v56 = vunpack.c.l.b16 %v4009_v61  ;;  %v9296_v40 = vld [vmem:[#allocation43_spill] sm:$0xff] }
 0x369   : > { %v3556_v37 = vcombine.high %v3548_v9, %v3548_v9  ;;  %v8654_v48 = vunpack.c.l.b16 %v4012_v44  ;;  %v8656_v38 = vunpack.c.l.b16 %v4013_v2  ;;  %v3557_v42 = vcombine.high %v3555_v57, %v3555_v57  ;;  %v9298_v44 = vld [vmem:[#allocation44_spill] sm:$0xff] }
 0x36a   : > { %v4249_v32 = vrot.slane %v8652_v14, 4  ;;  %v8659_v11 = vunpack.c.l.b16 %v4010_v23  ;;  %v4243_v10 = vrot.slane %v4137_v18, 7  ;;  %v4245_v29 = vrot.slane %v4138_v56, 6  ;;  %v3117_v23 = vpop.f32.mrf.mxu1  ;;  %v9299_v56 = vld [vmem:[#allocation16_spill] sm:$0xff] }
 0x36b   : > { %v5828_v3 = vrot.slane %v3548_v9, 9  ;;  %v4251_v41 = vrot.slane %v8654_v48, 3  ;;  %v4253_v26 = vrot.slane %v8656_v38, 2  ;;  %v5829_v22 = vrot.slane %v3556_v37, 9  ;;  %v8881_v38 = vld [vmem:[%s8991_s9] ss:$0 sm:$0xff] }
 0x36c   : > { %v5830_v63 = vrot.slane %v3555_v57, 9  ;;  %v4244_v61 = vsel %vm4153_vm2, %v4243_v10, %v4136_v8  ;;  %v4247_v27 = vrot.slane %v8659_v11, 5  ;;  %v5831_v54 = vrot.slane %v3557_v42, 9 }
 0x36d   : > { %v3887_v25 = vadd.f32 %v5828_v3, %v3548_v9  ;;  %v8666_v15 = vsel %vm4156_vm3, %v4245_v29, %v4244_v61  ;;  %v3888_v52 = vadd.f32 %v5829_v22, %v3556_v37  ;;  %v5279_v45 = vsel %vm4171_vm13, %v5278_v47, %v5277_v53  ;;  %v9300_v3 = vld [vmem:[#allocation45_spill] sm:$0xff] }
 0x36e   : > { %v3889_v24 = vadd.f32 %v5830_v63, %v3555_v57  ;;  %v3890_v30 = vadd.f32 %v5831_v54, %v3557_v42  ;;  %v9297_v34 = vrot.slane %v9296_v40, 6  ;;  %v5284_v2 = vrot.slane %v9298_v44, 5  ;;  %v9302_v63 = vld [vmem:[#allocation38_spill] sm:$0xff] }
 0x36f   : > { %v3951_v0 = vmul.f32 0.25, %v3887_v25  ;;  %v3952_v9 = vmul.f32 0.25, %v3888_v52  ;;  %v5288_v10 = vrot.slane %v9299_v56, 3  ;;  %v5290_v57 = vrot.slane %v8612_v49, 2  ;;  %v9304_v44 = vld [vmem:[#allocation46_spill] sm:$0xff] }
 0x370   : > { %v5283_v8 = vsel %vm4156_vm3, %v9297_v34, %v8635_v12  ;;  %v3953_v18 = vmul.f32 0.25, %v3889_v24  ;;  %v3954_v37 = vmul.f32 0.25, %v3890_v30  ;;  %v5292_v53 = vrot.slane %v8618_v13, 1 }
 0x371   : > { %v4015_v28 = vpack.c.bf16 %v3951_v0, %v3951_v0  ;;  %v5285_v47 = vsel %vm4159_vm4, %v5284_v2, %v5283_v8  ;;  %v4016_v42 = vpack.c.bf16 %v3952_v9, %v3952_v9  ;;  %v9301_v22 = vrot.slane %v9300_v3, 4  ;;  %v9303_v8 = vld [vmem:[#allocation14_spill] sm:$0xff]  ;;  %v9306_v9 = vld [vmem:[#allocation15_spill] sm:$0xff] }
 0x372   : > { %v4017_v29 = vpack.c.bf16 %v3953_v18, %v3953_v18  ;;  %v3158_v61 = vadd.f32 %v3117_v23, %v9302_v63  ;;  %v4018_v54 = vpack.c.bf16 %v3954_v37, %v3954_v37  ;;  %v4272_v49 = vpack.c.b16 %v8480_v17, %v8449_v36  ;;  %v9307_v18 = vld [vmem:[#allocation47_spill] sm:$0xff] }
 0x373   : > { %v5287_v12 = vsel %vm4162_vm5, %v9301_v22, %v5285_v47  ;;  %v4144_v25 = vunpack.c.l.b16 %v4015_v28  ;;  %v4145_v24 = vunpack.c.l.b16 %v4016_v42  ;;  %v9305_v2 = vrot.slane %v9304_v44, 1 }
 0x374   : > { %v5289_v52 = vsel %vm4165_vm6, %v5288_v10, %v5287_v12  ;;  %v4146_v30 = vunpack.c.l.b16 %v4017_v29  ;;  %v3197_v13 = vmul.f32 %v8588_v7, %v3158_v61  ;;  %v8689_v40 = vunpack.c.l.b16 %v4018_v54  ;;  %6442 = vmatmul.mubr.msk.bf16.vlgmr.msra.gmra.mxu0 %vm1211_vm10, %v4272_v49 }
 0x375   : > { %v5291_v0 = vsel %vm4168_vm7, %v5290_v57, %v5289_v52  ;;  %v5307_v23 = vsel %vm4171_vm13, %v9305_v2, %v9303_v8  ;;  %v9308_v36 = vrot.slane %v9307_v18, 1  ;;  %v4257_v56 = vrot.slane %v4145_v24, 7 }
 0x376   : > { %v5293_v34 = vsel %vm4171_vm13, %v5292_v53, %v5291_v0  ;;  %v4259_v10 = vrot.slane %v4146_v30, 6  ;;  %v3236_v7 = vadd.f32 %v8599_v33, %v3197_v13  ;;  %v4261_v37 = vrot.slane %v8689_v40, 5 }
 0x377   : > { %v5321_v17 = vsel %vm4171_vm13, %v9308_v36, %v9306_v9  ;;  %v5378_v57 = vpack.c.b16 %v5293_v34, %v5279_v45  ;;  %v5811_v47 = vrot.slane %v8501_v39, 9  ;;  %v5819_v53 = vrot.slane %v8530_v60, 9 }
 0x378   : > { %v5379_v28 = vpack.c.b16 %v5321_v17, %v5307_v23  ;;  %v4258_v42 = vsel %vm4153_vm2, %v4257_v56, %v4144_v25  ;;  %v3268_v29 = vmax.f32 %v3236_v7, 0.0  ;;  %v3997_v3 = vpack.c.bf16 %v8513_v6, %v8513_v6 }
 0x379   : > { %6451 = vmatprep.mubr.msk.bf16.mxu1 %vm489_vm1, %v5378_v57  ;;  %v4005_v45 = vpack.c.bf16 %v8537_v16, %v8537_v16  ;;  %v8712_v33 = vsel %vm4156_vm3, %v4259_v10, %v4258_v42  ;;  %v3870_v22 = vadd.f32 %v5811_v47, %v8501_v39  ;;  %v3878_v12 = vadd.f32 %v5819_v53, %v8530_v60  ;;  %v9313_v53 = vld [vmem:[#allocation49_spill] sm:$0xff] }
 0x37a   : > { %6452 = vmatmul.mubr.msk.bf16.vlgmr.msra.gmra.mxu1 %vm489_vm1, %v5379_v28  ;;  %v4218_v63 = vsel %vm4156_vm3, %v4217_v19, %v8498_v62  ;;  %v3286_v6 = vadd.f32 %v3270_v59, %v3268_v29  ;;  %v4126_v61 = vunpack.c.l.b16 %v3997_v3  ;;  %v9309_v39 = vrot.slane %v8519_v21, 4  ;;  %v9314_v42 = vld [vmem:[#allocation57_spill] sm:$0xff] }
 0x37b   : > { %v4134_v54 = vunpack.c.l.b16 %v4005_v45  ;;  %v4220_v16 = vsel %vm4159_vm4, %v4219_v31, %v4218_v63  ;;  %v3934_v25 = vmul.f32 0.25, %v3870_v22  ;;  %v3942_v52 = vmul.f32 0.25, %v3878_v12 }
 0x37c   : > { %v4222_v60 = vsel %vm4162_vm5, %v9309_v39, %v4220_v16  ;;  %v4223_v49 = vrot.slane %v8521_v55, 3  ;;  %v3558_v50 = vcombine.high %v3286_v6, %v3286_v6  ;;  %v3565_v19 = vrot.slane %v3286_v6, %v9265_v46 }
 0x37d   : > { %v4225_v62 = vrot.slane %v4126_v61, 2  ;;  %v9310_v35 = vrot.slane %v8532_v20, 6  ;;  %v3998_v51 = vpack.c.bf16 %v3934_v25, %v3934_v25  ;;  %v4006_v24 = vpack.c.bf16 %v3942_v52, %v3942_v52 }
 0x37e   : > { %v4224_v31 = vsel %vm4165_vm6, %v4223_v49, %v4222_v60  ;;  %v9311_v30 = vrot.slane %v8534_v5, 5  ;;  %v3572_v0 = vrot.slane %v3558_v50, %v9265_v46  ;;  %v3573_v55 = vcombine.high %v3565_v19, %v3565_v19 }
 0x37f   : > { %v4232_v59 = vsel %vm4156_vm3, %v9310_v35, %v8544_v1  ;;  %v5832_v13 = vrot.slane %v3565_v19, 9  ;;  %v4226_v34 = vsel %vm4168_vm7, %v4225_v62, %v4224_v31  ;;  %v4127_v8 = vunpack.c.l.b16 %v3998_v51 }
 0x380   : > { %v4234_v21 = vsel %vm4159_vm4, %v9311_v30, %v4232_v59  ;;  %v4135_v44 = vunpack.c.l.b16 %v4006_v24  ;;  %v9312_v20 = vrot.slane %v8551_v4, 4  ;;  %v4237_v2 = vrot.slane %v8562_v58, 3 }
 0x381   : > { %v3574_v23 = vcombine.high %v3572_v0, %v3572_v0  ;;  %v5833_v9 = vrot.slane %v3573_v55, 9  ;;  %v5834_v18 = vrot.slane %v3572_v0, 9  ;;  %v3891_v5 = vadd.f32 %v5832_v13, %v3565_v19 }
 0x382   : > { %v4236_v1 = vsel %vm4162_vm5, %v9312_v20, %v4234_v21  ;;  %v4227_v36 = vrot.slane %v4127_v8, 1  ;;  %v4239_v46 = vrot.slane %v4134_v54, 2  ;;  %v4241_v56 = vrot.slane %v4135_v44, 1  ;;  %v9318_v20 = vld [vmem:[#allocation60_spill] sm:$0xff] }
 0x383   : > { %v4238_v17 = vsel %vm4165_vm6, %v4237_v2, %v4236_v1  ;;  %v5835_v10 = vrot.slane %v3574_v23, 9  ;;  %v3892_v57 = vadd.f32 %v5833_v9, %v3573_v55  ;;  %v3893_v7 = vadd.f32 %v5834_v18, %v3572_v0  ;;  %v9317_v55 = vld [vmem:[#allocation51_spill] sm:$0xff] }
 0x384   : > { %v3955_v28 = vmul.f32 0.25, %v3891_v5  ;;  %v4228_v47 = vsel %vm4171_vm13, %v4227_v36, %v4226_v34  ;;  %v4240_v4 = vsel %vm4168_vm7, %v4239_v46, %v4238_v17  ;;  %v4586_v58 = vcombine.high %v9313_v53, %v9313_v53  ;;  %v9319_v17 = vld [vmem:[#allocation18_spill] sm:$0xff]  ;;  %v9320_v46 = vld [vmem:[#allocation52_spill] sm:$0xff] }
 0x385   : > { %v4620_v29 = vcombine.high %v9314_v42, %v9314_v42  ;;  %v3894_v3 = vadd.f32 %v5835_v10, %v3574_v23  ;;  %v3956_v45 = vmul.f32 0.25, %v3892_v57  ;;  %v3957_v22 = vmul.f32 0.25, %v3893_v7  ;;  %v9322_v57 = vld [vmem:[#allocation55_spill] sm:$0xff] }
 0x386   : > { %v4019_v12 = vpack.c.bf16 %v3955_v28, %v3955_v28  ;;  %v4242_v63 = vsel %vm4171_vm13, %v4241_v56, %v4240_v4  ;;  %v5881_v6 = vrot.slane %v4586_v58, 9  ;;  %v9315_v54 = vrot.slane %v9313_v53, 9 }
 0x387   : > { %v5889_v61 = vrot.slane %v4620_v29, 9  ;;  %v8756_v25 = vmul.f32 0.25, %v3894_v3  ;;  %v4020_v52 = vpack.c.bf16 %v3956_v45, %v3956_v45  ;;  %v4021_v39 = vpack.c.bf16 %v3957_v22, %v3957_v22  ;;  %v9325_v22 = vld [vmem:[#allocation61_spill] sm:$0xff] }
 0x388   : > { %v4983_v16 = vadd.f32 %v9315_v54, %v9313_v53  ;;  %v8758_v60 = vunpack.c.l.b16 %v4019_v12  ;;  %v4273_v49 = vpack.c.b16 %v4242_v63, %v4228_v47  ;;  %v4984_v50 = vadd.f32 %v5881_v6, %v4586_v58  ;;  %v9323_v53 = vld [vmem:[#allocation53_spill] sm:$0xff]  ;;  %v9326_v12 = vld [vmem:[#allocation59_spill] sm:$0xff] }
 0x389   : > { %v9316_v19 = vrot.slane %v9314_v42, 9  ;;  %v4992_v35 = vadd.f32 %v5889_v61, %v4620_v29  ;;  %v8763_v59 = vunpack.c.l.b16 %v4020_v52  ;;  %v8765_v51 = vunpack.c.l.b16 %v4021_v39  ;;  %v9328_v61 = vld [vmem:[#allocation56_spill] sm:$0xff]  ;;  %v9330_v39 = vld [vmem:[#allocation63_spill] sm:$0xff] }
 0x38a   : > { %v4263_v24 = vrot.slane %v8758_v60, 4  ;;  %v5047_v31 = vmul.f32 0.25, %v4983_v16  ;;  %6445 = vmatprep.mubr.msk.bf16.mxu0 %vm1211_vm10, %v4273_v49  ;;  %v5048_v30 = vmul.f32 0.25, %v4984_v50  ;;  %v5110_v13 = vpack.c.bf16 %v9317_v55, %v9317_v55 }
 0x38b   : > { %v4991_v62 = vadd.f32 %v9316_v19, %v9314_v42  ;;  %v5056_v0 = vmul.f32 0.25, %v4992_v35  ;;  %v4265_v34 = vrot.slane %v8763_v59, 3  ;;  %v4267_v8 = vrot.slane %v8765_v51, 2  ;;  %v9332_v19 = vld [vmem:[#allocation64_spill] sm:$0xff]  ;;  %v8887_v51 = vld [vmem:[%s8992_s10] ss:$0 sm:$0xff] }
 0x38c   : > { %v5111_v44 = vpack.c.bf16 %v5047_v31, %v5047_v31  ;;  %v5118_v1 = vpack.c.bf16 %v9318_v20, %v9318_v20  ;;  %v5112_v2 = vpack.c.bf16 %v5048_v30, %v5048_v30  ;;  %v5239_v18 = vunpack.c.l.b16 %v5110_v13  ;;  %v9333_v13 = vld [vmem:[#allocation69_spill] sm:$0xff] }
 0x38d   : > { %v5055_v21 = vmul.f32 0.25, %v4991_v62  ;;  %v5120_v9 = vpack.c.bf16 %v5056_v0, %v5056_v0  ;;  %v9321_v56 = vrot.slane %v9320_v46, 7  ;;  %v5326_v7 = vrot.slane %v9322_v57, 5  ;;  %v9340_v46 = vld [vmem:[#allocation32_spill] sm:$0xff]  ;;  %v9342_v57 = vld [vmem:[#allocation6_spill] sm:$0xff] }
 0x38e   : > { %v5240_v5 = vunpack.c.l.b16 %v5111_v44  ;;  %v5247_v36 = vunpack.c.l.b16 %v5118_v1  ;;  %v5241_v28 = vunpack.c.l.b16 %v5112_v2  ;;  %v9324_v58 = vrot.slane %v9323_v53, 6  ;;  %v9335_v1 = vld [vmem:[#allocation76_spill] sm:$0xff]  ;;  %v9343_v53 = vld [vmem:[#allocation74_spill] sm:$0xff] }
 0x38f   : > { %v5119_v23 = vpack.c.bf16 %v5055_v21, %v5055_v21  ;;  %v5323_v10 = vsel %vm4153_vm2, %v9321_v56, %v9319_v17  ;;  %v5249_v4 = vunpack.c.l.b16 %v5120_v9  ;;  %v5330_v3 = vrot.slane %v5239_v18, 3  ;;  %v9337_v18 = vld [vmem:[#allocation65_spill] sm:$0xff]  ;;  %v9339_v17 = vld [vmem:[#allocation27_spill] sm:$0xff] }
 0x390   : > { %v5325_v42 = vsel %vm4156_vm3, %v9324_v58, %v5323_v10  ;;  %v5332_v45 = vrot.slane %v5240_v5, 2  ;;  %v9327_v63 = vrot.slane %v9326_v12, 7  ;;  %v9329_v54 = vrot.slane %v9328_v61, 4  ;;  %v9347_v12 = vld [vmem:[#allocation22_spill] sm:$0xff] }
 0x391   : > { %v5248_v47 = vunpack.c.l.b16 %v5119_v23  ;;  %v5327_v29 = vsel %vm4159_vm4, %v5326_v7, %v5325_v42  ;;  %v5334_v52 = vrot.slane %v5241_v28, 1  ;;  %v9331_v49 = vrot.slane %v9330_v39, 6 }
 0x392   : > { %v5337_v6 = vsel %vm4153_vm2, %v9327_v63, %v9325_v22  ;;  %v5329_v16 = vsel %vm4162_vm5, %v9329_v54, %v5327_v29  ;;  %v5340_v62 = vrot.slane %v9332_v19, 5  ;;  %v5344_v31 = vrot.slane %v5247_v36, 3  ;;  %v9348_v63 = vld [vmem:[#allocation77_spill] sm:$0xff]  ;;  %v9350_v54 = vld [vmem:[#allocation23_spill] sm:$0xff] }
 0x393   : > { %v5339_v50 = vsel %vm4156_vm3, %v9331_v49, %v5337_v6  ;;  %v5331_v35 = vsel %vm4165_vm6, %v5330_v3, %v5329_v16  ;;  %v5346_v30 = vrot.slane %v5248_v47, 2  ;;  %v5348_v21 = vrot.slane %v5249_v4, 1  ;;  %v9345_v3 = vld [vmem:[#allocation75_spill] sm:$0xff] }
 0x394   : > { %v5333_v0 = vsel %vm4168_vm7, %v5332_v45, %v5331_v35  ;;  %v5341_v55 = vsel %vm4159_vm4, %v5340_v62, %v5339_v50  ;;  %v9334_v44 = vrot.slane %v9333_v13, 9  ;;  %v9336_v2 = vrot.slane %v9335_v1, 9  ;;  %v9351_v50 = vld [vmem:[#allocation28_spill] sm:$0xff] }
 0x395   : > { %v5335_v9 = vsel %vm4171_vm13, %v5334_v52, %v5333_v0  ;;  %v9338_v5 = vrot.slane %v9337_v18, 4  ;;  %v9341_v56 = vrot.slane %v9340_v46, 6  ;;  %v5360_v7 = vrot.slane %v9342_v57, 2 }
 0x396   : > { %v5000_v20 = vadd.f32 %v9334_v44, %v9333_v13  ;;  %v5008_v23 = vadd.f32 %v9336_v2, %v9335_v1  ;;  %v9344_v58 = vrot.slane %v9343_v53, 5  ;;  %v9346_v45 = vrot.slane %v9345_v3, 4  ;;  %v9355_v1 = vld [vmem:[#allocation79_spill] sm:$0xff] }
 0x397   : > { %v5343_v36 = vsel %vm4162_vm5, %v9338_v5, %v5341_v55  ;;  %v5353_v10 = vsel %vm4156_vm3, %v9341_v56, %v9339_v17  ;;  %v9349_v6 = vrot.slane %v9348_v63, 6  ;;  %v5374_v16 = vrot.slane %v9350_v54, 2 }
 0x398   : > { %v5345_v28 = vsel %vm4165_vm6, %v5344_v31, %v5343_v36  ;;  %v5064_v47 = vmul.f32 0.25, %v5000_v20  ;;  %v5072_v4 = vmul.f32 0.25, %v5008_v23  ;;  %v5355_v42 = vsel %vm4159_vm4, %v9344_v58, %v5353_v10 }
 0x399   : > { %v5347_v29 = vsel %vm4168_vm7, %v5346_v30, %v5345_v28  ;;  %v5357_v22 = vsel %vm4162_vm5, %v9346_v45, %v5355_v42  ;;  %v5367_v61 = vsel %vm4156_vm3, %v9349_v6, %v9347_v12  ;;  %v9352_v19 = vrot.slane %v9351_v50, 3  ;;  %v9353_v30 = vld [vmem:[#allocation78_spill] sm:$0xff] }
 0x39a   : > { %v5349_v52 = vsel %vm4171_vm13, %v5348_v21, %v5347_v29  ;;  %v5128_v39 = vpack.c.bf16 %v5064_v47, %v5064_v47  ;;  %v5136_v49 = vpack.c.bf16 %v5072_v4, %v5072_v4  ;;  %v9354_v0 = vrot.slane %v9353_v30, 5  ;;  %v5911_v4 = vld [vmem:[%s8994_s12] ss:$0 sm:$0xff] }
 0x39b   : > { %v5359_v62 = vsel %vm4165_vm6, %v9352_v19, %v5357_v22  ;;  %v5380_v35 = vpack.c.b16 %v5349_v52, %v5335_v9  ;;  %v4014_v13 = vpack.c.bf16 %v8650_v43, %v8650_v43  ;;  %v9356_v21 = vrot.slane %v9355_v1, 4  ;;  %v9357_v9 = vld [vmem:[#allocation80_spill] sm:$0xff] }
 0x39c   : > { %v5361_v31 = vsel %vm4168_vm7, %v5360_v7, %v5359_v62  ;;  %v5369_v55 = vsel %vm4159_vm4, %v9354_v0, %v5367_v61  ;;  %v5257_v44 = vunpack.c.l.b16 %v5128_v39  ;;  %v5265_v20 = vunpack.c.l.b16 %v5136_v49 }
 0x39d   : > { %v5371_v2 = vsel %vm4162_vm5, %v9356_v21, %v5369_v55  ;;  %v4022_v23 = vpack.c.bf16 %v8756_v25, %v8756_v25  ;;  %6455 = vmatprep.mubr.msk.bf16.mxu1 %vm489_vm1, %v5380_v35  ;;  %v9358_v18 = vrot.slane %v9357_v9, 3  ;;  %v4143_v36 = vunpack.c.l.b16 %v4014_v13 }
 0x39e   : > { %v4248_v43 = vsel %vm4159_vm4, %v4247_v27, %v8666_v15  ;;  %v4262_v17 = vsel %vm4159_vm4, %v4261_v37, %v8712_v33  ;;  %v5362_v46 = vrot.slane %v5257_v44, 1  ;;  %v5376_v56 = vrot.slane %v5265_v20, 1 }
 0x39f   : > { %v5373_v5 = vsel %vm4165_vm6, %v9358_v18, %v5371_v2  ;;  %v4151_v10 = vunpack.c.l.b16 %v4022_v23  ;;  %v4250_v57 = vsel %vm4162_vm5, %v4249_v32, %v4248_v43  ;;  %v4255_v7 = vrot.slane %v4143_v36, 1 }
 0x3a0   : > { %v5375_v25 = vsel %vm4168_vm7, %v5374_v16, %v5373_v5  ;;  %v4264_v11 = vsel %vm4162_vm5, %v4263_v24, %v4262_v17  ;;  %v5363_v27 = vsel %vm4171_vm13, %v5362_v46, %v5361_v31  ;;  %v4252_v40 = vsel %vm4165_vm6, %v4251_v41, %v4250_v57 }
 0x3a1   : > { %v5377_v15 = vsel %vm4171_vm13, %v5376_v56, %v5375_v25  ;;  %v4266_v37 = vsel %vm4165_vm6, %v4265_v34, %v4264_v11  ;;  %v4254_v32 = vsel %vm4168_vm7, %v4253_v26, %v4252_v40  ;;  %v4269_v60 = vrot.slane %v4151_v10, 1  ;;  %v5910_v34 = vld [vmem:[%s8993_s11] ss:$0 sm:$0xff] }
 0x3a2   : > { %v5381_v14 = vpack.c.b16 %v5377_v15, %v5363_v27  ;;  %v4268_v33 = vsel %vm4168_vm7, %v4267_v8, %v4266_v37  ;;  %v4256_v24 = vsel %vm4171_vm13, %v4255_v7, %v4254_v32 }
 0x3a3   : > { %v4270_v48 = vsel %vm4171_vm13, %v4269_v60, %v4268_v33 }
 0x3a4   : > { %6456 = vmatmul.mubr.msk.bf16.gmra.mxu1 %vm489_vm1, %v5381_v14  ;;  %v4274_v41 = vpack.c.b16 %v4270_v48, %v4256_v24 }
 0x3a6   : > { %6446 = vmatmul.mubr.msk.bf16.gmra.mxu0 %vm1211_vm10, %v4274_v41 }
 0x434   : > { %v6443_v26 = vpop.f32.mrf.mxu0 }
 0x435   : > { %v4364_v59 = vmul.f32 %v6443_v26, %v8881_v38 }
 0x436   : > { %v4324_v8 = vpop.f32.mrf.mxu0 }
 0x437   : > { %v4362_v28 = vmul.f32 %v8881_v38, %v4324_v8  ;;  %v4379_v58 = vadd.f32 %v8887_v51, %v4364_v59 }
 0x438   : > { %v6444_v53 = vpop.f32.mrf.mxu0 }
 0x439   : > { %v4365_v29 = vmul.f32 %v6444_v53, %v8881_v38  ;;  %v4377_v12 = vadd.f32 %v8887_v51, %v4362_v28 }
 0x43a   : > { %v6453_v47 = vpop.f32.mrf.mxu1  ;;  %v4327_v45 = vpop.f32.mrf.mxu0 }
 0x43b   : > { %v5471_v42 = vmul.f32 %v6453_v47, %v5910_v34  ;;  %v4363_v6 = vmul.f32 %v8881_v38, %v4327_v45  ;;  %v4380_v52 = vadd.f32 %v8887_v51, %v4365_v29 }
 0x43c   : > { %v5431_v3 = vpop.f32.mrf.mxu1 }
 0x43d   : > { %v5486_v22 = vadd.f32 %v5911_v4, %v5471_v42  ;;  %v5469_v63 = vmul.f32 %v5910_v34, %v5431_v3  ;;  %v4378_v49 = vadd.f32 %v8887_v51, %v4363_v6 }
 0x43e   : > { %v6454_v61 = vpop.f32.mrf.mxu1 }
 0x43f   : > { %v5494_v54 = vadd.f32 %v5486_v22, %v4379_v58  ;;  %v5484_v16 = vadd.f32 %v5911_v4, %v5469_v63  ;;  %v5472_v39 = vmul.f32 %v6454_v61, %v5910_v34 }
 0x440   : > { %v5434_v50 = vpop.f32.mrf.mxu1 }
 0x441   : > { %v5502_v19 = vmax.f32 %v5494_v54, 0.0  ;;  %v5492_v62 = vadd.f32 %v5484_v16, %v4377_v12  ;;  %v5487_v35 = vadd.f32 %v5911_v4, %v5472_v39  ;;  %v5470_v31 = vmul.f32 %v5910_v34, %v5434_v50 }
 0x443   : > { %5511 = vst.msk [vmem:[%s8905_s23 + $0x10] sm:$0xff] %vm5508_vm14, %v5502_v19  ;;  %v5500_v30 = vmax.f32 %v5492_v62, 0.0  ;;  %v5495_v0 = vadd.f32 %v5487_v35, %v4380_v52  ;;  %v5485_v55 = vadd.f32 %v5911_v4, %v5470_v31 }
 0x445   : > { %5509 = vst.msk [vmem:[%s8905_s23] sm:$0xff] %vm5508_vm14, %v5500_v30  ;;  %v5503_v13 = vmax.f32 %v5495_v0, 0.0  ;;  %v5493_v44 = vadd.f32 %v5485_v55, %v4378_v49 }
 0x447   : > { %5512 = vst.msk [vmem:[%s8905_s23 + $0x18] sm:$0xff] %vm5508_vm14, %v5503_v13  ;;  %v5501_v20 = vmax.f32 %v5493_v44, 0.0 }
 0x449   : > { %5510 = vst.msk [vmem:[%s8905_s23 + $0x8] sm:$0xff] %vm5508_vm14, %v5501_v20 }
 0x464   : > { %v6457_v1 = vpop.f32.mrf.mxu1 }
 0x465   : > { %v5475_v21 = vmul.f32 %v6457_v1, %v5910_v34 }
 0x466   : > { %v5447_v2 = vpop.f32.mrf.mxu1  ;;  %v6447_v9 = vpop.f32.mrf.mxu0 }
 0x467   : > { %v5473_v23 = vmul.f32 %v5910_v34, %v5447_v2  ;;  %v5490_v18 = vadd.f32 %v5911_v4, %v5475_v21  ;;  %v4368_v36 = vmul.f32 %v6447_v9, %v8881_v38 }
 0x468   : > { %v6458_v5 = vpop.f32.mrf.mxu1  ;;  %v4340_v17 = vpop.f32.mrf.mxu0 }
 0x469   : > { %v5476_v43 = vmul.f32 %v6458_v5, %v5910_v34  ;;  %v4383_v46 = vadd.f32 %v8887_v51, %v4368_v36  ;;  %v4366_v56 = vmul.f32 %v8881_v38, %v4340_v17  ;;  %v5488_v10 = vadd.f32 %v5911_v4, %v5473_v23 }
 0x46a   : > { %v5450_v25 = vpop.f32.mrf.mxu1  ;;  %v6448_v57 = vpop.f32.mrf.mxu0 }
 0x46b   : > { %v5498_v7 = vadd.f32 %v5490_v18, %v4383_v46  ;;  %v5474_v11 = vmul.f32 %v5910_v34, %v5450_v25  ;;  %v4381_v27 = vadd.f32 %v8887_v51, %v4366_v56  ;;  %v4369_v15 = vmul.f32 %v6448_v57, %v8881_v38 }
 0x46c   : > { %v5491_v40 = vadd.f32 %v5911_v4, %v5476_v43  ;;  %v4343_v37 = vpop.f32.mrf.mxu0 }
 0x46d   : > { %v5506_v14 = vmax.f32 %v5498_v7, 0.0  ;;  %v5496_v32 = vadd.f32 %v5488_v10, %v4381_v27  ;;  %v4384_v33 = vadd.f32 %v8887_v51, %v4369_v15  ;;  %v4367_v60 = vmul.f32 %v8881_v38, %v4343_v37 }
 0x46e   : > { %v5489_v24 = vadd.f32 %v5911_v4, %v5474_v11 }
 0x46f   : > { %5515 = vst.msk [vmem:[%s8905_s23 + $0x30] sm:$0xff] %vm5508_vm14, %v5506_v14  ;;  %v5504_v48 = vmax.f32 %v5496_v32, 0.0  ;;  %v5499_v41 = vadd.f32 %v5491_v40, %v4384_v33  ;;  %v4382_v26 = vadd.f32 %v8887_v51, %v4367_v60 }
 0x471   : > { %5513 = vst.msk [vmem:[%s8905_s23 + $0x20] sm:$0xff] %vm5508_vm14, %v5504_v48  ;;  %v5507_v59 = vmax.f32 %v5499_v41, 0.0  ;;  %v5497_v34 = vadd.f32 %v5489_v24, %v4382_v26 }
 0x473   : > { %5516 = vst.msk [vmem:[%s8905_s23 + $0x38] sm:$0xff] %vm5508_vm14, %v5507_v59  ;;  %v5505_v38 = vmax.f32 %v5497_v34, 0.0 }
 0x475   : > { %5514 = vst.msk [vmem:[%s8905_s23 + $0x28] sm:$0xff] %vm5508_vm14, %v5505_v38 }
 0x476   : > { %6529 = shalt.err (!%p6526_p3)
}
 0x477   : > { %s6530_s16 = scalar_lea.hbm %s8932_s21, 1024  ;;  %s6534_s24 = scalar_lea.hbm %s8995_s13, 2048 }
 0x478   : > { %p6531_p4 = scmp.ne.s32.totalorder %s8932_s21, %s6530_s16  ;;  %p6535_p9 = scmp.lt.s32.totalorder %s8932_s21, %s8995_s13 }
 0x479   : > { %p6536_p10 = scmp.lt.s32.totalorder %s6534_s24, %s6530_s16 }
 0x47a   : > { %p6532_p7 = pnand %p6531_p4, %p6691_p5 }
 0x47b   : > { %p6537_p11 = por %p6536_p10, %p6535_p9 }
 0x47c   : > { %p6533_p8 = pneg %p6532_p7 }
 0x47e   : > { %p6538_p12 = pnand %p6537_p11, %p6533_p8 }
 0x480   : > { %6541 = shalt.err (!%p6538_p12)
}
 0x481   : > { %s6581_s22 = smov 128   ;;  %s6582_s15 = smov 8  }
 0x482   : > { %6471 = dma.vmem_to_hbm [thread:$0]  (%p6691_p5), %s8934_s30, 1024, %s8932_s21, %s8942_s29, %s6581_s22, %s6581_s22, %s6582_s15  }
 0x483 PF: > { %p6477_p13 = scmp.ge.s32.totalorder %s6576_s28, 2  ;;  %s5546_s0 = sand.u32 1, %s6564_s25  }
 0x484   : > { %s5547_s1 = scalar_lea.sflag [#allocation3], %s5546_s0 }
 0x485   : > { %p6474_p0 = pnand %p6477_p13, %p6695_p6 }
 0x487   : > { %p6475_p1 = pneg %p6474_p0 }
 0x489   : > { %6559 = dma.done.wait (%p6475_p1), %s5547_s1, 1024  }
 0x48a   : > { %6561 = vsyncadd (%p6475_p1), %s5547_s1, 4294966272  ;;  %p23_p2 = scmp.ge.s32.totalorder %s6678_s14, 4   ;;  %s9359_s25 = smov %s6568_s26 }
 0x48b   : > { %s9360_s26 = smov %s6572_s27  ;;  %s9361_s27 = smov %s6689_s17 }
 0x48c   : > { %s9362_s28 = smov %s6678_s14  ;;  %25 = sbr.rel (!%p23_p2) target bundleno = 7 (0x7), region = 115 }
 0x491   :  { %5552 = vsyncpa [#allocation3], 1 }
 0x492   :  { %5554 = vsyncpa [#allocation3 + $0x1], 1 }

</bundles_post_ra>
